<compile_context>
chip_gen: v7x
topology: tpu7x:2x2x1
jax: 0.10.0
libtpu: 0.0.40
codegen_flags: <defaults>
</compile_context>

<pallas_src>
import jax
import jax.numpy as jnp
from jax.experimental import pallas as pl
from jax.experimental.pallas import tpu as pltpu

KH = KW = 4  # every layer is kernel_size=4, stride=2, padding=1

_WEIGHT_KEYS = ("t1", "t2", "t3", "t4", "t5a", "t5b", "t6a", "t6b")


# ----------------------------------------------------------------------------
# Fused kernel factory: 8 lane-dense bf16 GEMMs with manual weight prefetch.
# ----------------------------------------------------------------------------
def _make_kernel(bias_splits):
    """bias_splits: per-layer (start, size) static column ranges into the
    merged bias row, ordered (enc1, enc2, enc3, dec3, dec2, dec1)."""

    def kernel(x_ref, bias_ref,
               t1_hbm, t2_hbm, t3_hbm, t4_hbm, t5a_hbm, t5b_hbm, t6a_hbm, t6b_hbm,
               o_ref,
               t1_v, t2_v, t3_v, t4_v, t5a_v, t5b_v, t6a_v, t6b_v,
               sems):
        hbm = (t1_hbm, t2_hbm, t3_hbm, t4_hbm, t5a_hbm, t5b_hbm, t6a_hbm, t6b_hbm)
        vmem = (t1_v, t2_v, t3_v, t4_v, t5a_v, t5b_v, t6a_v, t6b_v)

        # Kick off all weight DMAs up front (issued in compute order); each
        # GEMM waits only on its own weight, so compute overlaps later DMAs.
        copies = []
        for i in range(len(hbm)):
            cp = pltpu.make_async_copy(hbm[i], vmem[i], sems.at[i])
            cp.start()
            copies.append(cp)

        def bias(layer):
            start, size = bias_splits[layer]
            return bias_ref[:, start:start + size]      # static slice -> free

        def dense(act_f32, w_idx, layer):
            copies[w_idx].wait()
            return jnp.dot(act_f32.astype(jnp.bfloat16), vmem[w_idx][...],
                           preferred_element_type=jnp.float32) + bias(layer)

        x = x_ref[...]                                           # (N, 3*16*16)
        e1 = jnp.maximum(dense(x, 0, 0), 0.0)                    # (N, 8*8*8)
        e2 = jnp.maximum(dense(e1, 1, 1), 0.0)                   # (N, 32*4*4)
        e3 = jnp.maximum(dense(e2, 2, 2), 0.0)                   # (N, 64*2*2)
        d3 = jnp.maximum(dense(e3, 3, 3), 0.0)                   # (N, 32*4*4)

        # decoder2: split-K over the [dec3 | enc2] skip concat (no HBM concat).
        copies[4].wait()
        copies[5].wait()
        d2 = jnp.maximum(
            jnp.dot(d3.astype(jnp.bfloat16), t5a_v[...],
                    preferred_element_type=jnp.float32)
            + jnp.dot(e2.astype(jnp.bfloat16), t5b_v[...],
                      preferred_element_type=jnp.float32)
            + bias(4), 0.0)                                      # (N, 8*8*8)

        # decoder1: split-K over the [dec2 | enc1] skip concat, sigmoid epilogue.
        copies[6].wait()
        copies[7].wait()
        d1 = jax.nn.sigmoid(
            jnp.dot(d2.astype(jnp.bfloat16), t6a_v[...],
                    preferred_element_type=jnp.float32)
            + jnp.dot(e1.astype(jnp.bfloat16), t6b_v[...],
                      preferred_element_type=jnp.float32)
            + bias(5))                                           # (N, 3*16*16)
        o_ref[...] = d1.astype(o_ref.dtype)

    return kernel


def unet_forward_fused(folded, x):
    """x: (N, 3, H, W) float32 NCHW.  Returns (N, 3, H, W) float32."""
    n, c, height, width = x.shape
    x_flat = x.reshape(n, c * height * width)            # contiguous -> free
    weights = [folded[k] for k in _WEIGHT_KEYS]
    bias_all = folded["bias"]                             # (1, 3072) f32

    # Static per-layer column ranges into the merged bias row (from shapes).
    layer_cols = [folded["t1"].shape[1], folded["t2"].shape[1],
                  folded["t3"].shape[1], folded["t4"].shape[1],
                  folded["t5a"].shape[1], folded["t6a"].shape[1]]
    starts, off = [], 0
    for sz in layer_cols:
        starts.append(off)
        off += sz
    bias_splits = tuple(zip(starts, layer_cols))
    out_cols = folded["t6a"].shape[1]                     # 3*H*W

    def vmem_spec(shape):
        return pl.BlockSpec(tuple(shape), lambda i, _r=len(shape): (0,) * _r)

    in_specs = ([vmem_spec(x_flat.shape), vmem_spec(bias_all.shape)]
                + [pl.BlockSpec(memory_space=pl.ANY)] * len(weights))
    scratch = [pltpu.VMEM(tuple(w.shape), w.dtype) for w in weights]
    scratch.append(pltpu.SemaphoreType.DMA((len(weights),)))

    out_flat = pl.pallas_call(
        _make_kernel(bias_splits),
        out_shape=jax.ShapeDtypeStruct((n, out_cols), jnp.float32),
        grid=(1,),
        in_specs=in_specs,
        out_specs=vmem_spec((n, out_cols)),
        scratch_shapes=scratch,
        compiler_params=pltpu.CompilerParams(
            dimension_semantics=("arbitrary",),
            vmem_limit_bytes=32 * 1024 * 1024,
        ),
    )(x_flat, bias_all, *weights)
    return out_flat.reshape(n, out_cols // (height * width), height, width)


# ----------------------------------------------------------------------------
# Parameter preprocessing (done once, outside the kernel): fold each
# (de)conv into a dense matrix on the NCHW-flat activation, via lax convs
# applied to an identity basis (exact), then cast the matrices to bf16.
# ----------------------------------------------------------------------------
def _conv_as_matrix(w, h_in, w_in):
    """Matrix of Conv2d(k=4,s=2,p=1), weight w: (Cout, Cin, 4, 4)."""
    cin = w.shape[1]
    basis = jnp.eye(cin * h_in * w_in, dtype=jnp.float32).reshape(-1, cin, h_in, w_in)
    cols = jax.lax.conv_general_dilated(
        basis, w, window_strides=(2, 2), padding=[(1, 1), (1, 1)],
        dimension_numbers=("NCHW", "OIHW", "NCHW"))
    return cols.reshape(cin * h_in * w_in, -1)


def _convT_as_matrix(w, h_in, w_in):
    """Matrix of ConvTranspose2d(k=4,s=2,p=1), weight w: (Cin, Cout, 4, 4)."""
    cin = w.shape[0]
    basis = jnp.eye(cin * h_in * w_in, dtype=jnp.float32).reshape(-1, cin, h_in, w_in)
    w_eff = jnp.flip(w, axis=(2, 3)).transpose(1, 0, 2, 3)    # (Cout, Cin, 4, 4)
    cols = jax.lax.conv_general_dilated(
        basis, w_eff, window_strides=(1, 1), padding=[(2, 2), (2, 2)],
        lhs_dilation=(2, 2), dimension_numbers=("NCHW", "OIHW", "NCHW"))
    return cols.reshape(cin * h_in * w_in, -1)


def build_folded_params(params, height, width):
    assert height % 8 == 0 and width % 8 == 0, "need H, W divisible by 8"
    w1, b1 = params["enc1"]
    w2, b2 = params["enc2"]
    w3, b3 = params["enc3"]
    w4, b4 = params["dec3"]
    w5, b5 = params["dec2"]
    w6, b6 = params["dec1"]
    h1, wd1 = height // 2, width // 2      # enc1 / dec2 output spatial
    h2, wd2 = height // 4, width // 4      # enc2 / dec3 output spatial
    h3, wd3 = height // 8, width // 8      # enc3 output spatial

    def bf(t):
        return t.astype(jnp.bfloat16)      # MXU-native weight feed

    t5 = _convT_as_matrix(w5, h2, wd2)     # rows: [dec3 chans | enc2 chans]
    t6 = _convT_as_matrix(w6, h1, wd1)     # rows: [dec2 chans | enc1 chans]

    # Biases stay f32 (added to the f32 accumulator), merged into one row in
    # layer order (enc1, enc2, enc3, dec3, dec2, dec1).
    bias_rows = [
        jnp.repeat(b1, h1 * wd1),
        jnp.repeat(b2, h2 * wd2),
        jnp.repeat(b3, h3 * wd3),
        jnp.repeat(b4, h2 * wd2),
        jnp.repeat(b5, h1 * wd1),
        jnp.repeat(b6, height * width),
    ]

    folded = {
        "t1": bf(_conv_as_matrix(w1, height, width)),
        "t2": bf(_conv_as_matrix(w2, h1, wd1)),
        "t3": bf(_conv_as_matrix(w3, h2, wd2)),
        "t4": bf(_convT_as_matrix(w4, h3, wd3)),
        "t5a": bf(t5[: t5.shape[0] // 2]),
        "t5b": bf(t5[t5.shape[0] // 2:]),
        "t6a": bf(t6[: t6.shape[0] // 2]),
        "t6b": bf(t6[t6.shape[0] // 2:]),
        "bias": jnp.concatenate(bias_rows)[None, :].astype(jnp.float32),
    }

    # Single-buffered weight footprint must fit VMEM (v7x has only 64 MiB).
    weight_bytes = sum(int(folded[k].size) * folded[k].dtype.itemsize
                       for k in _WEIGHT_KEYS)
    assert weight_bytes < 24 * 1024 * 1024, (
        f"folded weights ({weight_bytes} B) too large for the all-VMEM design")
    # TODO(synk): for larger spatial sizes, tile N (and K for t1/t6) by ~512
    # with an f32 VMEM accumulator instead of the fully-resident fold.
    return folded


# ----------------------------------------------------------------------------
# Parameter init (deterministic, PyTorch-default-like uniform ranges).
# ----------------------------------------------------------------------------
def _init_conv(key, cout, cin):
    kw, kb = jax.random.split(key)
    fan_in = cin * KH * KW
    bound = 1.0 / jnp.sqrt(fan_in)
    w = jax.random.uniform(kw, (cout, cin, KH, KW), jnp.float32, -bound, bound)
    b = jax.random.uniform(kb, (cout,), jnp.float32, -bound, bound)
    return w, b


def _init_convT(key, cin, cout):
    kw, kb = jax.random.split(key)
    fan_in = cout * KH * KW  # PyTorch fan_in for ConvTranspose2d weight (Cin,Cout,kh,kw)
    bound = 1.0 / jnp.sqrt(fan_in)
    w = jax.random.uniform(kw, (cin, cout, KH, KW), jnp.float32, -bound, bound)
    b = jax.random.uniform(kb, (cout,), jnp.float32, -bound, bound)
    return w, b


def init_params(key):
    keys = jax.random.split(key, 6)
    return {
        "enc1": _init_conv(keys[0], 8, 3),
        "enc2": _init_conv(keys[1], 32, 8),
        "enc3": _init_conv(keys[2], 64, 32),
        "dec3": _init_convT(keys[3], 64, 32),
        "dec2": _init_convT(keys[4], 64, 8),
        "dec1": _init_convT(keys[5], 16, 3),
    }


# ----------------------------------------------------------------------------
# Pure-JAX reference (lax convs, f32) for the correctness check.
# ----------------------------------------------------------------------------
def _ref_conv(x, w, b):
    y = jax.lax.conv_general_dilated(
        x, w, window_strides=(2, 2), padding=[(1, 1), (1, 1)],
        dimension_numbers=("NCHW", "OIHW", "NCHW"))
    return y + b.reshape(1, -1, 1, 1)


def _ref_convT(x, w, b):
    w_eff = jnp.flip(w, axis=(2, 3)).transpose(1, 0, 2, 3)
    y = jax.lax.conv_general_dilated(
        x, w_eff, window_strides=(1, 1), padding=[(2, 2), (2, 2)],
        lhs_dilation=(2, 2),
        dimension_numbers=("NCHW", "OIHW", "NCHW"))
    return y + b.reshape(1, -1, 1, 1)


def unet_reference(params, x):
    enc1 = jax.nn.relu(_ref_conv(x, *params["enc1"]))
    enc2 = jax.nn.relu(_ref_conv(enc1, *params["enc2"]))
    enc3 = jax.nn.relu(_ref_conv(enc2, *params["enc3"]))
    dec3 = jax.nn.relu(_ref_convT(enc3, *params["dec3"]))
    dec2 = jax.nn.relu(
        _ref_convT(jnp.concatenate([dec3, enc2], axis=1), *params["dec2"]))
    dec1 = jax.nn.sigmoid(
        _ref_convT(jnp.concatenate([dec2, enc1], axis=1), *params["dec1"]))
    return dec1


if __name__ == "__main__":
    key = jax.random.PRNGKey(0)
    kx, kp = jax.random.split(key)
    x = jax.random.uniform(kx, (2, 3, 16, 16), jnp.float32)  # NCHW, like PyTorch
    params = init_params(kp)

    # One-time weight fold (parameter preprocessing, outside the kernel).
    folded = build_folded_params(params, height=16, width=16)

    fwd = jax.jit(unet_forward_fused)
    out = jax.block_until_ready(fwd(folded, x))
    assert out.shape == (2, 3, 16, 16), out.shape

    ref = jax.block_until_ready(jax.jit(unet_reference)(params, x))
    max_err = float(jnp.max(jnp.abs(out - ref)))
    # bf16 weight/activation MXU feed -> ~1e-2 scale error budget.
    assert max_err < 3e-2, max_err

    print("KERNEL_OK")
</pallas_src>

<mosaic_0001>
module attributes {stable_mosaic.version = 11 : i64} {
  func.func @kernel(%arg0: i32, %arg1: memref<2x768xf32, #tpu.memory_space<vmem>>, %arg2: memref<1x3072xf32, #tpu.memory_space<vmem>>, %arg3: memref<768x512xbf16, #tpu.memory_space<any>>, %arg4: memref<512x512xbf16, #tpu.memory_space<any>>, %arg5: memref<512x256xbf16, #tpu.memory_space<any>>, %arg6: memref<256x512xbf16, #tpu.memory_space<any>>, %arg7: memref<512x512xbf16, #tpu.memory_space<any>>, %arg8: memref<512x512xbf16, #tpu.memory_space<any>>, %arg9: memref<512x768xbf16, #tpu.memory_space<any>>, %arg10: memref<512x768xbf16, #tpu.memory_space<any>>, %arg11: memref<2x768xf32, #tpu.memory_space<vmem>>, %arg12: memref<768x512xbf16, #tpu.memory_space<vmem>>, %arg13: memref<512x512xbf16, #tpu.memory_space<vmem>>, %arg14: memref<512x256xbf16, #tpu.memory_space<vmem>>, %arg15: memref<256x512xbf16, #tpu.memory_space<vmem>>, %arg16: memref<512x512xbf16, #tpu.memory_space<vmem>>, %arg17: memref<512x512xbf16, #tpu.memory_space<vmem>>, %arg18: memref<512x768xbf16, #tpu.memory_space<vmem>>, %arg19: memref<512x768xbf16, #tpu.memory_space<vmem>>, %arg20: memref<8x!tpu.dma_semaphore, #tpu.memory_space<semaphore_mem>>) attributes {dimension_semantics = [#tpu.dimension_semantics<arbitrary>], iteration_bounds = array<i64: 1>, scalar_prefetch = 0 : i64, scratch_operands = 9 : i64, tpu.core_type = #tpu.core_type<tc>, window_params = [{pipeline_mode = #tpu.pipeline_mode<synchronous>, transform_indices = @transform_0, window_bounds = array<i64: 2, 768>}, {pipeline_mode = #tpu.pipeline_mode<synchronous>, transform_indices = @transform_1, window_bounds = array<i64: 1, 3072>}, {}, {}, {}, {}, {}, {}, {}, {}, {pipeline_mode = #tpu.pipeline_mode<synchronous>, transform_indices = @transform_10, window_bounds = array<i64: 2, 768>}]} {
    %c0_i32 = arith.constant 0 : i32
    %0 = tpu.memref_slice %arg20[%c0_i32] : memref<8x!tpu.dma_semaphore, #tpu.memory_space<semaphore_mem>> -> memref<1x!tpu.dma_semaphore, #tpu.memory_space<semaphore_mem>>
    %1 = tpu.memref_squeeze %0 : memref<1x!tpu.dma_semaphore, #tpu.memory_space<semaphore_mem>> -> memref<!tpu.dma_semaphore, #tpu.memory_space<semaphore_mem>>
    tpu.enqueue_dma source(%arg3 : memref<768x512xbf16, #tpu.memory_space<any>>) target(%arg12 : memref<768x512xbf16, #tpu.memory_space<vmem>>) target_semaphore(%1 : memref<!tpu.dma_semaphore, #tpu.memory_space<semaphore_mem>>)
    %c1_i32 = arith.constant 1 : i32
    %2 = tpu.memref_slice %arg20[%c1_i32] : memref<8x!tpu.dma_semaphore, #tpu.memory_space<semaphore_mem>> -> memref<1x!tpu.dma_semaphore, #tpu.memory_space<semaphore_mem>>
    %3 = tpu.memref_squeeze %2 : memref<1x!tpu.dma_semaphore, #tpu.memory_space<semaphore_mem>> -> memref<!tpu.dma_semaphore, #tpu.memory_space<semaphore_mem>>
    tpu.enqueue_dma source(%arg4 : memref<512x512xbf16, #tpu.memory_space<any>>) target(%arg13 : memref<512x512xbf16, #tpu.memory_space<vmem>>) target_semaphore(%3 : memref<!tpu.dma_semaphore, #tpu.memory_space<semaphore_mem>>)
    %c2_i32 = arith.constant 2 : i32
    %4 = tpu.memref_slice %arg20[%c2_i32] : memref<8x!tpu.dma_semaphore, #tpu.memory_space<semaphore_mem>> -> memref<1x!tpu.dma_semaphore, #tpu.memory_space<semaphore_mem>>
    %5 = tpu.memref_squeeze %4 : memref<1x!tpu.dma_semaphore, #tpu.memory_space<semaphore_mem>> -> memref<!tpu.dma_semaphore, #tpu.memory_space<semaphore_mem>>
    tpu.enqueue_dma source(%arg5 : memref<512x256xbf16, #tpu.memory_space<any>>) target(%arg14 : memref<512x256xbf16, #tpu.memory_space<vmem>>) target_semaphore(%5 : memref<!tpu.dma_semaphore, #tpu.memory_space<semaphore_mem>>)
    %c3_i32 = arith.constant 3 : i32
    %6 = tpu.memref_slice %arg20[%c3_i32] : memref<8x!tpu.dma_semaphore, #tpu.memory_space<semaphore_mem>> -> memref<1x!tpu.dma_semaphore, #tpu.memory_space<semaphore_mem>>
    %7 = tpu.memref_squeeze %6 : memref<1x!tpu.dma_semaphore, #tpu.memory_space<semaphore_mem>> -> memref<!tpu.dma_semaphore, #tpu.memory_space<semaphore_mem>>
    tpu.enqueue_dma source(%arg6 : memref<256x512xbf16, #tpu.memory_space<any>>) target(%arg15 : memref<256x512xbf16, #tpu.memory_space<vmem>>) target_semaphore(%7 : memref<!tpu.dma_semaphore, #tpu.memory_space<semaphore_mem>>)
    %c4_i32 = arith.constant 4 : i32
    %8 = tpu.memref_slice %arg20[%c4_i32] : memref<8x!tpu.dma_semaphore, #tpu.memory_space<semaphore_mem>> -> memref<1x!tpu.dma_semaphore, #tpu.memory_space<semaphore_mem>>
    %9 = tpu.memref_squeeze %8 : memref<1x!tpu.dma_semaphore, #tpu.memory_space<semaphore_mem>> -> memref<!tpu.dma_semaphore, #tpu.memory_space<semaphore_mem>>
    tpu.enqueue_dma source(%arg7 : memref<512x512xbf16, #tpu.memory_space<any>>) target(%arg16 : memref<512x512xbf16, #tpu.memory_space<vmem>>) target_semaphore(%9 : memref<!tpu.dma_semaphore, #tpu.memory_space<semaphore_mem>>)
    %c5_i32 = arith.constant 5 : i32
    %10 = tpu.memref_slice %arg20[%c5_i32] : memref<8x!tpu.dma_semaphore, #tpu.memory_space<semaphore_mem>> -> memref<1x!tpu.dma_semaphore, #tpu.memory_space<semaphore_mem>>
    %11 = tpu.memref_squeeze %10 : memref<1x!tpu.dma_semaphore, #tpu.memory_space<semaphore_mem>> -> memref<!tpu.dma_semaphore, #tpu.memory_space<semaphore_mem>>
    tpu.enqueue_dma source(%arg8 : memref<512x512xbf16, #tpu.memory_space<any>>) target(%arg17 : memref<512x512xbf16, #tpu.memory_space<vmem>>) target_semaphore(%11 : memref<!tpu.dma_semaphore, #tpu.memory_space<semaphore_mem>>)
    %c6_i32 = arith.constant 6 : i32
    %12 = tpu.memref_slice %arg20[%c6_i32] : memref<8x!tpu.dma_semaphore, #tpu.memory_space<semaphore_mem>> -> memref<1x!tpu.dma_semaphore, #tpu.memory_space<semaphore_mem>>
    %13 = tpu.memref_squeeze %12 : memref<1x!tpu.dma_semaphore, #tpu.memory_space<semaphore_mem>> -> memref<!tpu.dma_semaphore, #tpu.memory_space<semaphore_mem>>
    tpu.enqueue_dma source(%arg9 : memref<512x768xbf16, #tpu.memory_space<any>>) target(%arg18 : memref<512x768xbf16, #tpu.memory_space<vmem>>) target_semaphore(%13 : memref<!tpu.dma_semaphore, #tpu.memory_space<semaphore_mem>>)
    %c7_i32 = arith.constant 7 : i32
    %14 = tpu.memref_slice %arg20[%c7_i32] : memref<8x!tpu.dma_semaphore, #tpu.memory_space<semaphore_mem>> -> memref<1x!tpu.dma_semaphore, #tpu.memory_space<semaphore_mem>>
    %15 = tpu.memref_squeeze %14 : memref<1x!tpu.dma_semaphore, #tpu.memory_space<semaphore_mem>> -> memref<!tpu.dma_semaphore, #tpu.memory_space<semaphore_mem>>
    tpu.enqueue_dma source(%arg10 : memref<512x768xbf16, #tpu.memory_space<any>>) target(%arg19 : memref<512x768xbf16, #tpu.memory_space<vmem>>) target_semaphore(%15 : memref<!tpu.dma_semaphore, #tpu.memory_space<semaphore_mem>>)
    %c0 = arith.constant 0 : index
    %c0_0 = arith.constant 0 : index
    %16 = vector.load %arg1[%c0, %c0_0] : memref<2x768xf32, #tpu.memory_space<vmem>>, vector<2x768xf32>
    %c0_i32_1 = arith.constant 0 : i32
    %17 = tpu.memref_slice %arg20[%c0_i32_1] : memref<8x!tpu.dma_semaphore, #tpu.memory_space<semaphore_mem>> -> memref<1x!tpu.dma_semaphore, #tpu.memory_space<semaphore_mem>>
    %18 = tpu.memref_squeeze %17 : memref<1x!tpu.dma_semaphore, #tpu.memory_space<semaphore_mem>> -> memref<!tpu.dma_semaphore, #tpu.memory_space<semaphore_mem>>
    tpu.wait_dma2 semaphore(%18 : memref<!tpu.dma_semaphore, #tpu.memory_space<semaphore_mem>>) src(%arg3 : memref<768x512xbf16, #tpu.memory_space<any>>) dst(%arg12 : memref<768x512xbf16, #tpu.memory_space<vmem>>)
    %19 = arith.truncf %16 : vector<2x768xf32> to vector<2x768xbf16>
    %c0_2 = arith.constant 0 : index
    %c0_3 = arith.constant 0 : index
    %20 = vector.load %arg12[%c0_2, %c0_3] : memref<768x512xbf16, #tpu.memory_space<vmem>>, vector<768x512xbf16>
    %cst = arith.constant dense<0.000000e+00> : vector<2x512xf32>
    %21 = tpu.matmul %19, %20, %cst {dimension_numbers = #tpu.dot_dimension_numbers<[1], [0], [0], [1], [0, 0, 1, 1], [], []>} : vector<2x768xbf16>, vector<768x512xbf16>, vector<2x512xf32> -> vector<2x512xf32>
    %c0_4 = arith.constant 0 : index
    %c0_5 = arith.constant 0 : index
    %22 = vector.load %arg2[%c0_4, %c0_5] : memref<1x3072xf32, #tpu.memory_space<vmem>>, vector<1x512xf32>
    %23 = vector.broadcast %22 : vector<1x512xf32> to vector<2x512xf32>
    %24 = arith.addf %21, %23 : vector<2x512xf32>
    %cst_6 = arith.constant 0.000000e+00 : f32
    %25 = vector.broadcast %cst_6 : f32 to vector<2x512xf32>
    %26 = arith.maximumf %24, %25 : vector<2x512xf32>
    %c1_i32_7 = arith.constant 1 : i32
    %27 = tpu.memref_slice %arg20[%c1_i32_7] : memref<8x!tpu.dma_semaphore, #tpu.memory_space<semaphore_mem>> -> memref<1x!tpu.dma_semaphore, #tpu.memory_space<semaphore_mem>>
    %28 = tpu.memref_squeeze %27 : memref<1x!tpu.dma_semaphore, #tpu.memory_space<semaphore_mem>> -> memref<!tpu.dma_semaphore, #tpu.memory_space<semaphore_mem>>
    tpu.wait_dma2 semaphore(%28 : memref<!tpu.dma_semaphore, #tpu.memory_space<semaphore_mem>>) src(%arg4 : memref<512x512xbf16, #tpu.memory_space<any>>) dst(%arg13 : memref<512x512xbf16, #tpu.memory_space<vmem>>)
    %29 = arith.truncf %26 : vector<2x512xf32> to vector<2x512xbf16>
    %c0_8 = arith.constant 0 : index
    %c0_9 = arith.constant 0 : index
    %30 = vector.load %arg13[%c0_8, %c0_9] : memref<512x512xbf16, #tpu.memory_space<vmem>>, vector<512x512xbf16>
    %cst_10 = arith.constant dense<0.000000e+00> : vector<2x512xf32>
    %31 = tpu.matmul %29, %30, %cst_10 {dimension_numbers = #tpu.dot_dimension_numbers<[1], [0], [0], [1], [0, 0, 1, 1], [], []>} : vector<2x512xbf16>, vector<512x512xbf16>, vector<2x512xf32> -> vector<2x512xf32>
    %c0_11 = arith.constant 0 : index
    %c512 = arith.constant 512 : index
    %32 = vector.load %arg2[%c0_11, %c512] : memref<1x3072xf32, #tpu.memory_space<vmem>>, vector<1x512xf32>
    %33 = vector.broadcast %32 : vector<1x512xf32> to vector<2x512xf32>
    %34 = arith.addf %31, %33 : vector<2x512xf32>
    %cst_12 = arith.constant 0.000000e+00 : f32
    %35 = vector.broadcast %cst_12 : f32 to vector<2x512xf32>
    %36 = arith.maximumf %34, %35 : vector<2x512xf32>
    %c2_i32_13 = arith.constant 2 : i32
    %37 = tpu.memref_slice %arg20[%c2_i32_13] : memref<8x!tpu.dma_semaphore, #tpu.memory_space<semaphore_mem>> -> memref<1x!tpu.dma_semaphore, #tpu.memory_space<semaphore_mem>>
    %38 = tpu.memref_squeeze %37 : memref<1x!tpu.dma_semaphore, #tpu.memory_space<semaphore_mem>> -> memref<!tpu.dma_semaphore, #tpu.memory_space<semaphore_mem>>
    tpu.wait_dma2 semaphore(%38 : memref<!tpu.dma_semaphore, #tpu.memory_space<semaphore_mem>>) src(%arg5 : memref<512x256xbf16, #tpu.memory_space<any>>) dst(%arg14 : memref<512x256xbf16, #tpu.memory_space<vmem>>)
    %39 = arith.truncf %36 : vector<2x512xf32> to vector<2x512xbf16>
    %c0_14 = arith.constant 0 : index
    %c0_15 = arith.constant 0 : index
    %40 = vector.load %arg14[%c0_14, %c0_15] : memref<512x256xbf16, #tpu.memory_space<vmem>>, vector<512x256xbf16>
    %cst_16 = arith.constant dense<0.000000e+00> : vector<2x256xf32>
    %41 = tpu.matmul %39, %40, %cst_16 {dimension_numbers = #tpu.dot_dimension_numbers<[1], [0], [0], [1], [0, 0, 1, 1], [], []>} : vector<2x512xbf16>, vector<512x256xbf16>, vector<2x256xf32> -> vector<2x256xf32>
    %c0_17 = arith.constant 0 : index
    %c1024 = arith.constant 1024 : index
    %42 = vector.load %arg2[%c0_17, %c1024] : memref<1x3072xf32, #tpu.memory_space<vmem>>, vector<1x256xf32>
    %43 = vector.broadcast %42 : vector<1x256xf32> to vector<2x256xf32>
    %44 = arith.addf %41, %43 : vector<2x256xf32>
    %cst_18 = arith.constant 0.000000e+00 : f32
    %45 = vector.broadcast %cst_18 : f32 to vector<2x256xf32>
    %46 = arith.maximumf %44, %45 : vector<2x256xf32>
    %c3_i32_19 = arith.constant 3 : i32
    %47 = tpu.memref_slice %arg20[%c3_i32_19] : memref<8x!tpu.dma_semaphore, #tpu.memory_space<semaphore_mem>> -> memref<1x!tpu.dma_semaphore, #tpu.memory_space<semaphore_mem>>
    %48 = tpu.memref_squeeze %47 : memref<1x!tpu.dma_semaphore, #tpu.memory_space<semaphore_mem>> -> memref<!tpu.dma_semaphore, #tpu.memory_space<semaphore_mem>>
    tpu.wait_dma2 semaphore(%48 : memref<!tpu.dma_semaphore, #tpu.memory_space<semaphore_mem>>) src(%arg6 : memref<256x512xbf16, #tpu.memory_space<any>>) dst(%arg15 : memref<256x512xbf16, #tpu.memory_space<vmem>>)
    %49 = arith.truncf %46 : vector<2x256xf32> to vector<2x256xbf16>
    %c0_20 = arith.constant 0 : index
    %c0_21 = arith.constant 0 : index
    %50 = vector.load %arg15[%c0_20, %c0_21] : memref<256x512xbf16, #tpu.memory_space<vmem>>, vector<256x512xbf16>
    %cst_22 = arith.constant dense<0.000000e+00> : vector<2x512xf32>
    %51 = tpu.matmul %49, %50, %cst_22 {dimension_numbers = #tpu.dot_dimension_numbers<[1], [0], [0], [1], [0, 0, 1, 1], [], []>} : vector<2x256xbf16>, vector<256x512xbf16>, vector<2x512xf32> -> vector<2x512xf32>
    %c0_23 = arith.constant 0 : index
    %c1280 = arith.constant 1280 : index
    %52 = vector.load %arg2[%c0_23, %c1280] : memref<1x3072xf32, #tpu.memory_space<vmem>>, vector<1x512xf32>
    %53 = vector.broadcast %52 : vector<1x512xf32> to vector<2x512xf32>
    %54 = arith.addf %51, %53 : vector<2x512xf32>
    %cst_24 = arith.constant 0.000000e+00 : f32
    %55 = vector.broadcast %cst_24 : f32 to vector<2x512xf32>
    %56 = arith.maximumf %54, %55 : vector<2x512xf32>
    %c4_i32_25 = arith.constant 4 : i32
    %57 = tpu.memref_slice %arg20[%c4_i32_25] : memref<8x!tpu.dma_semaphore, #tpu.memory_space<semaphore_mem>> -> memref<1x!tpu.dma_semaphore, #tpu.memory_space<semaphore_mem>>
    %58 = tpu.memref_squeeze %57 : memref<1x!tpu.dma_semaphore, #tpu.memory_space<semaphore_mem>> -> memref<!tpu.dma_semaphore, #tpu.memory_space<semaphore_mem>>
    tpu.wait_dma2 semaphore(%58 : memref<!tpu.dma_semaphore, #tpu.memory_space<semaphore_mem>>) src(%arg7 : memref<512x512xbf16, #tpu.memory_space<any>>) dst(%arg16 : memref<512x512xbf16, #tpu.memory_space<vmem>>)
    %c5_i32_26 = arith.constant 5 : i32
    %59 = tpu.memref_slice %arg20[%c5_i32_26] : memref<8x!tpu.dma_semaphore, #tpu.memory_space<semaphore_mem>> -> memref<1x!tpu.dma_semaphore, #tpu.memory_space<semaphore_mem>>
    %60 = tpu.memref_squeeze %59 : memref<1x!tpu.dma_semaphore, #tpu.memory_space<semaphore_mem>> -> memref<!tpu.dma_semaphore, #tpu.memory_space<semaphore_mem>>
    tpu.wait_dma2 semaphore(%60 : memref<!tpu.dma_semaphore, #tpu.memory_space<semaphore_mem>>) src(%arg8 : memref<512x512xbf16, #tpu.memory_space<any>>) dst(%arg17 : memref<512x512xbf16, #tpu.memory_space<vmem>>)
    %61 = arith.truncf %56 : vector<2x512xf32> to vector<2x512xbf16>
    %c0_27 = arith.constant 0 : index
    %c0_28 = arith.constant 0 : index
    %62 = vector.load %arg16[%c0_27, %c0_28] : memref<512x512xbf16, #tpu.memory_space<vmem>>, vector<512x512xbf16>
    %cst_29 = arith.constant dense<0.000000e+00> : vector<2x512xf32>
    %63 = tpu.matmul %61, %62, %cst_29 {dimension_numbers = #tpu.dot_dimension_numbers<[1], [0], [0], [1], [0, 0, 1, 1], [], []>} : vector<2x512xbf16>, vector<512x512xbf16>, vector<2x512xf32> -> vector<2x512xf32>
    %64 = arith.truncf %36 : vector<2x512xf32> to vector<2x512xbf16>
    %c0_30 = arith.constant 0 : index
    %c0_31 = arith.constant 0 : index
    %65 = vector.load %arg17[%c0_30, %c0_31] : memref<512x512xbf16, #tpu.memory_space<vmem>>, vector<512x512xbf16>
    %cst_32 = arith.constant dense<0.000000e+00> : vector<2x512xf32>
    %66 = tpu.matmul %64, %65, %cst_32 {dimension_numbers = #tpu.dot_dimension_numbers<[1], [0], [0], [1], [0, 0, 1, 1], [], []>} : vector<2x512xbf16>, vector<512x512xbf16>, vector<2x512xf32> -> vector<2x512xf32>
    %67 = arith.addf %63, %66 : vector<2x512xf32>
    %c0_33 = arith.constant 0 : index
    %c1792 = arith.constant 1792 : index
    %68 = vector.load %arg2[%c0_33, %c1792] : memref<1x3072xf32, #tpu.memory_space<vmem>>, vector<1x512xf32>
    %69 = vector.broadcast %68 : vector<1x512xf32> to vector<2x512xf32>
    %70 = arith.addf %67, %69 : vector<2x512xf32>
    %cst_34 = arith.constant 0.000000e+00 : f32
    %71 = vector.broadcast %cst_34 : f32 to vector<2x512xf32>
    %72 = arith.maximumf %70, %71 : vector<2x512xf32>
    %c6_i32_35 = arith.constant 6 : i32
    %73 = tpu.memref_slice %arg20[%c6_i32_35] : memref<8x!tpu.dma_semaphore, #tpu.memory_space<semaphore_mem>> -> memref<1x!tpu.dma_semaphore, #tpu.memory_space<semaphore_mem>>
    %74 = tpu.memref_squeeze %73 : memref<1x!tpu.dma_semaphore, #tpu.memory_space<semaphore_mem>> -> memref<!tpu.dma_semaphore, #tpu.memory_space<semaphore_mem>>
    tpu.wait_dma2 semaphore(%74 : memref<!tpu.dma_semaphore, #tpu.memory_space<semaphore_mem>>) src(%arg9 : memref<512x768xbf16, #tpu.memory_space<any>>) dst(%arg18 : memref<512x768xbf16, #tpu.memory_space<vmem>>)
    %c7_i32_36 = arith.constant 7 : i32
    %75 = tpu.memref_slice %arg20[%c7_i32_36] : memref<8x!tpu.dma_semaphore, #tpu.memory_space<semaphore_mem>> -> memref<1x!tpu.dma_semaphore, #tpu.memory_space<semaphore_mem>>
    %76 = tpu.memref_squeeze %75 : memref<1x!tpu.dma_semaphore, #tpu.memory_space<semaphore_mem>> -> memref<!tpu.dma_semaphore, #tpu.memory_space<semaphore_mem>>
    tpu.wait_dma2 semaphore(%76 : memref<!tpu.dma_semaphore, #tpu.memory_space<semaphore_mem>>) src(%arg10 : memref<512x768xbf16, #tpu.memory_space<any>>) dst(%arg19 : memref<512x768xbf16, #tpu.memory_space<vmem>>)
    %77 = arith.truncf %72 : vector<2x512xf32> to vector<2x512xbf16>
    %c0_37 = arith.constant 0 : index
    %c0_38 = arith.constant 0 : index
    %78 = vector.load %arg18[%c0_37, %c0_38] : memref<512x768xbf16, #tpu.memory_space<vmem>>, vector<512x768xbf16>
    %cst_39 = arith.constant dense<0.000000e+00> : vector<2x768xf32>
    %79 = tpu.matmul %77, %78, %cst_39 {dimension_numbers = #tpu.dot_dimension_numbers<[1], [0], [0], [1], [0, 0, 1, 1], [], []>} : vector<2x512xbf16>, vector<512x768xbf16>, vector<2x768xf32> -> vector<2x768xf32>
    %80 = arith.truncf %26 : vector<2x512xf32> to vector<2x512xbf16>
    %c0_40 = arith.constant 0 : index
    %c0_41 = arith.constant 0 : index
    %81 = vector.load %arg19[%c0_40, %c0_41] : memref<512x768xbf16, #tpu.memory_space<vmem>>, vector<512x768xbf16>
    %cst_42 = arith.constant dense<0.000000e+00> : vector<2x768xf32>
    %82 = tpu.matmul %80, %81, %cst_42 {dimension_numbers = #tpu.dot_dimension_numbers<[1], [0], [0], [1], [0, 0, 1, 1], [], []>} : vector<2x512xbf16>, vector<512x768xbf16>, vector<2x768xf32> -> vector<2x768xf32>
    %83 = arith.addf %79, %82 : vector<2x768xf32>
    %c0_43 = arith.constant 0 : index
    %c2304 = arith.constant 2304 : index
    %84 = vector.load %arg2[%c0_43, %c2304] : memref<1x3072xf32, #tpu.memory_space<vmem>>, vector<1x768xf32>
    %85 = vector.broadcast %84 : vector<1x768xf32> to vector<2x768xf32>
    %86 = arith.addf %83, %85 : vector<2x768xf32>
    %87 = arith.negf %86 : vector<2x768xf32>
    %88 = math.exp %87 : vector<2x768xf32>
    %cst_44 = arith.constant 1.000000e+00 : f32
    %89 = vector.broadcast %cst_44 : f32 to vector<2x768xf32>
    %90 = arith.addf %89, %88 : vector<2x768xf32>
    %91 = arith.divf %89, %90 : vector<2x768xf32>
    %c0_45 = arith.constant 0 : index
    %c0_46 = arith.constant 0 : index
    %92 = vector.load %arg11[%c0_45, %c0_46] : memref<2x768xf32, #tpu.memory_space<vmem>>, vector<2x768xf32>
    tpu.vector_store %arg11[%c0_45, %c0_46], %91 {strides = array<i32>} : memref<2x768xf32, #tpu.memory_space<vmem>>, vector<2x768xf32>,
    return
  }
  func.func @transform_0(%arg0: i32) -> (i32, i32) {
    %c0_i32 = arith.constant 0 : i32
    %c0_i32_0 = arith.constant 0 : i32
    %c0_i32_1 = arith.constant 0 : i32
    return %c0_i32, %c0_i32_0 : i32, i32
  }
  func.func @transform_1(%arg0: i32) -> (i32, i32) {
    %c0_i32 = arith.constant 0 : i32
    %c0_i32_0 = arith.constant 0 : i32
    %c0_i32_1 = arith.constant 0 : i32
    return %c0_i32, %c0_i32_0 : i32, i32
  }
  func.func @transform_10(%arg0: i32) -> (i32, i32) {
    %c0_i32 = arith.constant 0 : i32
    %c0_i32_0 = arith.constant 0 : i32
    %c0_i32_1 = arith.constant 0 : i32
    return %c0_i32, %c0_i32_0 : i32, i32
  }
}

</mosaic_0001>

<bundles_post_ra>
// kernel: unet_forward_fused.1
= control target key start
LH: loop header
LB: loop body
LE: loop exit
PB: predicated region body
PF: predicated region fallthrough
CT: control target
= control target key end

     0   :  { %s23_s13 = sld [smem:[#allocation0]]   ;;  %s3298_s14 = smov [#allocation2]   ;;  %s3791_s0 = inlined_call_operand.vmem [shape: f32[2,768], index: 0, kind: input, shape index: {}]   ;;  %s3792_s1 = inlined_call_operand.vmem [shape: f32[1,3072], index: 1, kind: input, shape index: {}]   ;;  %s3793_s2 = inlined_call_operand.hbm [shape: bf16[768,512], index: 2, kind: input, shape index: {}]   ;;  %s3794_s3 = inlined_call_operand.hbm [shape: bf16[512,512], index: 3, kind: input, shape index: {}]   ;;  %s3795_s4 = inlined_call_operand.hbm [shape: bf16[512,256], index: 4, kind: input, shape index: {}]   ;;  %s3796_s5 = inlined_call_operand.hbm [shape: bf16[256,512], index: 5, kind: input, shape index: {}]   ;;  %s3797_s6 = inlined_call_operand.hbm [shape: bf16[512,512], index: 6, kind: input, shape index: {}]   ;;  %s3798_s7 = inlined_call_operand.hbm [shape: bf16[512,512], index: 7, kind: input, shape index: {}]   ;;  %s3799_s8 = inlined_call_operand.hbm [shape: bf16[512,768], index: 8, kind: input, shape index: {}]   ;;  %s3800_s9 = inlined_call_operand.hbm [shape: bf16[512,768], index: 9, kind: input, shape index: {}]   ;;  %s3801_s10 = inlined_call_operand.vmem [shape: f32[2,768], index: 10, kind: output, shape index: {}]  }
   0x1   :  { %s31_s15 = sshll.u32 %s3298_s14, 4  ;;  %s3299_s16 = smov 512   ;;  %s32_s15 = int_to_ptr.vmem [resolvable:$true] %s31_s15 }
   0x2   :  { %35 = sst [smem:[#allocation12]] %s3299_s16  ;;  %s3300_s17 = smov 4  }
   0x3   :  { %37 = sst [smem:[#allocation12 + $0x1]] %s3299_s16  ;;  %s3301_s18 = smov 64  }
   0x4   :  { %39 = sst [smem:[#allocation12 + $0x2]] %s3300_s17  ;;  %s3302_s20 = smov 128  }
   0x5   :  { %41 = sst [smem:[#allocation12 + $0x3]] %s3301_s18  ;;  %s3303_s22 = smov 2  }
   0x6   :  { %s3154_s19 = sshll.u32 %s23_s13, 26  ;;  %43 = sst [smem:[#allocation12 + $0x4]] %s3302_s20 }
   0x7   :  { %s3392_s21 = sadd.s32 134217728, %s3154_s19  ;;  %45 = sst [smem:[#allocation12 + $0x5]] %s3303_s22 }
   0x8   :  { %s3304_s23 = smov 256   ;;  %49 = sst [smem:[#allocation12 + $0x7]] %s3301_s18 }
   0x9   :  { %47 = sst [smem:[#allocation12 + $0x6]] %s3304_s23  ;;  %s3305_s24 = smov [#allocation10]  }
   0xa   :  { %51 = sst [smem:[#allocation12 + $0x8]] %s3300_s17  ;;  %s3306_s25 = smov [#allocation11]  }
   0xb   :  { %53 = dma.general %s3793_s2, 24576, %s32_s15, %s3305_s24, %s3306_s25, [#allocation12], %s3392_s21, 0  }
   0xc   :  { %70 = sst [smem:[#allocation14]] %s3299_s16  ;;  %s3307_s28 = smov [#allocation3]  }
   0xd   :  { %72 = sst [smem:[#allocation14 + $0x1]] %s3299_s16  ;;  %s66_s29 = sshll.u32 %s3307_s28, 4  ;;  %s67_s29 = int_to_ptr.vmem [resolvable:$true] %s66_s29 }
   0xe   :  { %74 = sst [smem:[#allocation14 + $0x2]] %s3300_s17  ;;  %s3308_s2 = smov [#allocation10 + $0x1]  }
   0xf   :  { %76 = sst [smem:[#allocation14 + $0x3]] %s3301_s18  ;;  %s3309_s30 = smov [#allocation13]  }
  0x10   :  { %78 = sst [smem:[#allocation14 + $0x4]] %s3302_s20  ;;  %s3310_s13 = smov [#allocation4]  }
  0x11   :  { %80 = sst [smem:[#allocation14 + $0x5]] %s3303_s22  ;;  %s101_s14 = sshll.u32 %s3310_s13, 4  ;;  %s102_s14 = int_to_ptr.vmem [resolvable:$true] %s101_s14 }
  0x12   :  { %82 = sst [smem:[#allocation14 + $0x6]] %s3304_s23  ;;  %s3312_s15 = smov [#allocation15]  }
  0x13   :  { %84 = sst [smem:[#allocation14 + $0x7]] %s3301_s18  ;;  %s3313_s25 = smov [#allocation5]  }
  0x14   :  { %86 = sst [smem:[#allocation14 + $0x8]] %s3300_s17  ;;  %s136_s26 = sshll.u32 %s3313_s25, 4  ;;  %s137_s26 = int_to_ptr.vmem [resolvable:$true] %s136_s26 }
  0x15   :  { %88 = dma.general %s3794_s3, 16384, %s67_s29, %s3308_s2, %s3309_s30, [#allocation14], %s3392_s21, 0  }
  0x16   :  { %105 = sst [smem:[#allocation16]] %s3304_s23  ;;  %s3311_s3 = smov [#allocation10 + $0x2]  }
  0x17   :  { %107 = sst [smem:[#allocation16 + $0x1]] %s3304_s23  ;;  %s3315_s27 = smov [#allocation17]  }
  0x18   :  { %109 = sst [smem:[#allocation16 + $0x2]] %s3303_s22  ;;  %s3316_s2 = smov [#allocation6]  }
  0x19   :  { %111 = sst [smem:[#allocation16 + $0x3]] %s3301_s18  ;;  %s171_s30 = sshll.u32 %s3316_s2, 4  ;;  %s172_s30 = int_to_ptr.vmem [resolvable:$true] %s171_s30 }
  0x1a   :  { %113 = sst [smem:[#allocation16 + $0x4]] %s3302_s20  ;;  %s3318_s11 = smov [#allocation19]  }
  0x1b   :  { %115 = sst [smem:[#allocation16 + $0x5]] %s3303_s22  ;;  %s3323_s25 = smov [#allocation8]  }
  0x1c   :  { %117 = sst [smem:[#allocation16 + $0x6]] %s3302_s20  ;;  %s3328_s2 = smov [#allocation9]  }
  0x1d   :  { %119 = sst [smem:[#allocation16 + $0x7]] %s3301_s18 }
  0x1e   :  { %121 = sst [smem:[#allocation16 + $0x8]] %s3300_s17 }
  0x1f   :  { %123 = dma.general %s3795_s4, 8192, %s102_s14, %s3311_s3, %s3312_s15, [#allocation16], %s3392_s21, 0  }
  0x20   :  { %140 = sst [smem:[#allocation18]] %s3299_s16  ;;  %s3314_s4 = smov [#allocation10 + $0x3]  }
  0x21   :  { %142 = sst [smem:[#allocation18 + $0x1]] %s3299_s16  ;;  %s3319_s14 = smov [#allocation7]  }
  0x22   :  { %144 = sst [smem:[#allocation18 + $0x2]] %s3300_s17  ;;  %s206_s3 = sshll.u32 %s3319_s14, 4  ;;  %s207_s3 = int_to_ptr.vmem [resolvable:$true] %s206_s3 }
  0x23   :  { %146 = sst [smem:[#allocation18 + $0x3]] %s3301_s18  ;;  %s3321_s15 = smov [#allocation21]  }
  0x24   :  { %148 = sst [smem:[#allocation18 + $0x4]] %s3302_s20 }
  0x25   :  { %150 = sst [smem:[#allocation18 + $0x5]] %s3303_s22 }
  0x26   :  { %152 = sst [smem:[#allocation18 + $0x6]] %s3304_s23 }
  0x27   :  { %154 = sst [smem:[#allocation18 + $0x7]] %s3301_s18 }
  0x28   :  { %156 = sst [smem:[#allocation18 + $0x8]] %s3300_s17 }
  0x29   :  { %158 = dma.general %s3796_s5, 8192, %s137_s26, %s3314_s4, %s3315_s27, [#allocation18], %s3392_s21, 0  }
  0x2a   :  { %175 = sst [smem:[#allocation20]] %s3299_s16  ;;  %s3317_s5 = smov [#allocation10 + $0x4]  }
  0x2b   :  { %177 = sst [smem:[#allocation20 + $0x1]] %s3299_s16  ;;  %s241_s26 = sshll.u32 %s3323_s25, 4  ;;  %s242_s26 = int_to_ptr.vmem [resolvable:$true] %s241_s26 }
  0x2c   :  { %179 = sst [smem:[#allocation20 + $0x2]] %s3300_s17  ;;  %s3324_s4 = smov 6  }
  0x2d   :  { %181 = sst [smem:[#allocation20 + $0x3]] %s3301_s18  ;;  %s3327_s27 = smov [#allocation23]  }
  0x2e   :  { %183 = sst [smem:[#allocation20 + $0x4]] %s3302_s20 }
  0x2f   :  { %185 = sst [smem:[#allocation20 + $0x5]] %s3303_s22 }
  0x30   :  { %187 = sst [smem:[#allocation20 + $0x6]] %s3304_s23 }
  0x31   :  { %189 = sst [smem:[#allocation20 + $0x7]] %s3301_s18 }
  0x32   :  { %191 = sst [smem:[#allocation20 + $0x8]] %s3300_s17 }
  0x33   :  { %193 = dma.general %s3797_s6, 16384, %s172_s30, %s3317_s5, %s3318_s11, [#allocation20], %s3392_s21, 0  }
  0x34   :  { %210 = sst [smem:[#allocation22]] %s3299_s16  ;;  %s3320_s6 = smov [#allocation10 + $0x5]  }
  0x35   :  { %212 = sst [smem:[#allocation22 + $0x1]] %s3299_s16  ;;  %s3322_s16 = smov 768  }
  0x36   :  { %214 = sst [smem:[#allocation22 + $0x2]] %s3300_s17  ;;  %s276_s30 = sshll.u32 %s3328_s2, 4  ;;  %s277_s30 = int_to_ptr.vmem [resolvable:$true] %s276_s30 }
  0x37   :  { %216 = sst [smem:[#allocation22 + $0x3]] %s3301_s18  ;;  %s3329_s5 = smov [#allocation10 + $0x7]  }
  0x38   :  { %218 = sst [smem:[#allocation22 + $0x4]] %s3302_s20  ;;  %s3330_s11 = smov [#allocation25]  }
  0x39   :  { %220 = sst [smem:[#allocation22 + $0x5]] %s3303_s22 }
  0x3a   :  { %222 = sst [smem:[#allocation22 + $0x6]] %s3304_s23  ;;  %s3325_s23 = smov 384  }
  0x3b   :  { %224 = sst [smem:[#allocation22 + $0x7]] %s3301_s18 }
  0x3c   :  { %226 = sst [smem:[#allocation22 + $0x8]] %s3300_s17 }
  0x3d   :  { %228 = dma.general %s3798_s7, 16384, %s207_s3, %s3320_s6, %s3321_s15, [#allocation22], %s3392_s21, 0  }
  0x3e   :  { %245 = sst [smem:[#allocation24]] %s3322_s16  ;;  %s3326_s7 = smov [#allocation10 + $0x6]  }
  0x3f   :  { %247 = sst [smem:[#allocation24 + $0x1]] %s3322_s16 }
  0x40   :  { %249 = sst [smem:[#allocation24 + $0x2]] %s3324_s4 }
  0x41   :  { %251 = sst [smem:[#allocation24 + $0x3]] %s3301_s18 }
  0x42   :  { %253 = sst [smem:[#allocation24 + $0x4]] %s3302_s20 }
  0x43   :  { %255 = sst [smem:[#allocation24 + $0x5]] %s3303_s22 }
  0x44   :  { %257 = sst [smem:[#allocation24 + $0x6]] %s3325_s23 }
  0x45   :  { %259 = sst [smem:[#allocation24 + $0x7]] %s3301_s18 }
  0x46   :  { %261 = sst [smem:[#allocation24 + $0x8]] %s3300_s17 }
  0x47   :  { %263 = dma.general %s3799_s8, 24576, %s242_s26, %s3326_s7, %s3327_s27, [#allocation24], %s3392_s21, 0  }
  0x48   :  { %280 = sst [smem:[#allocation26]] %s3322_s16 }
  0x49   :  { %282 = sst [smem:[#allocation26 + $0x1]] %s3322_s16 }
  0x4a   :  { %284 = sst [smem:[#allocation26 + $0x2]] %s3324_s4 }
  0x4b   :  { %286 = sst [smem:[#allocation26 + $0x3]] %s3301_s18 }
  0x4c   :  { %288 = sst [smem:[#allocation26 + $0x4]] %s3302_s20 }
  0x4d   :  { %290 = sst [smem:[#allocation26 + $0x5]] %s3303_s22 }
  0x4e   :  { %292 = sst [smem:[#allocation26 + $0x6]] %s3325_s23 }
  0x4f   :  { %294 = sst [smem:[#allocation26 + $0x7]] %s3301_s18 }
  0x50   :  { %296 = sst [smem:[#allocation26 + $0x8]] %s3300_s17 }
  0x51   :  { %298 = dma.general %s3800_s9, 24576, %s277_s30, %s3329_s5, %s3330_s11, [#allocation26], %s3392_s21, 0  }
  0x52   :  { %v3488_v0 = vld [vmem:[%s3791_s0] sm:$0xff]  ;;  %v3493_v1 = vld.sshfl [vmem:[%s3791_s0 + $0x8] sm:$0x33 pattern:$0x76325410] }
  0x53   :  { %3282 = dma.done.wait [#allocation10], 24576 }
  0x54   :  { %3283 = vsyncadd [#allocation10], 4294942720  ;;  %v311_v2 = vlaneseq  ;;  %v3331_v3 = vmov 1983009808   ;;  %v345_v8 = vld [vmem:[#allocation2 + $0x8] sm:$0xff]  ;;  %v347_v9 = vld [vmem:[#allocation2 + $0x18] sm:$0xff] }
  0x55   :  { %v309_v4 = vunpack.c.l.s4 %v3331_v3  ;;  %v344_v10 = vld [vmem:[#allocation2] sm:$0xff]  ;;  %558 = vmatprep.subr.bf16.mxu0 %v345_v8  ;;  %681 = vmatprep.subr.bf16.mxu1 %v347_v9  ;;  %v346_v12 = vld [vmem:[#allocation2 + $0x10] sm:$0xff]  ;;  %v349_v13 = vld [vmem:[#allocation2 + $0x28] sm:$0xff]  ;;  %v307_v9 = vcombine.high %v3488_v0, %v3488_v0 }
  0x56   :  { %v3495_v5 = vshrl.u32 %v311_v2, 7  ;;  %v351_v14 = vld [vmem:[#allocation2 + $0x38] sm:$0xff]  ;;  %559 = vmatpush1.bf16.msra.mxu0 %v344_v10  ;;  %682 = vmatpush1.bf16.msra.mxu1 %v346_v12  ;;  %v348_v16 = vld [vmem:[#allocation2 + $0x20] sm:$0xff]  ;;  %v350_v17 = vld [vmem:[#allocation2 + $0x30] sm:$0xff] }
  0x57   :  { %v310_v6 = vunpack.c.0.s8 %v309_v4  ;;  %560 = vmatprep.subr.bf16.mxu0 %v349_v13  ;;  %683 = vmatprep.subr.bf16.mxu1 %v351_v14  ;;  %v353_v18 = vld [vmem:[#allocation2 + $0x48] sm:$0xff]  ;;  %v355_v19 = vld [vmem:[#allocation2 + $0x58] sm:$0xff]  ;;  %v352_v21 = vld [vmem:[#allocation2 + $0x40] sm:$0xff] }
  0x58   :  { %v354_v22 = vld [vmem:[#allocation2 + $0x50] sm:$0xff]  ;;  %v357_v23 = vld [vmem:[#allocation2 + $0x68] sm:$0xff]  ;;  %v359_v24 = vld [vmem:[#allocation2 + $0x78] sm:$0xff] }
  0x59   :  { %v3498_v7 = vsub.s32 %v310_v6, %v3495_v5  ;;  %v356_v25 = vld [vmem:[#allocation2 + $0x60] sm:$0xff]  ;;  %v358_v26 = vld [vmem:[#allocation2 + $0x70] sm:$0xff]  ;;  %v361_v27 = vld [vmem:[#allocation2 + $0x88] sm:$0xff] }
  0x5a   :  { %561 = vmatpush1.bf16.msra.mxu0 %v348_v16  ;;  %684 = vmatpush1.bf16.msra.mxu1 %v350_v17  ;;  %v363_v28 = vld [vmem:[#allocation2 + $0x98] sm:$0xff]  ;;  %v360_v29 = vld [vmem:[#allocation2 + $0x80] sm:$0xff]  ;;  %v362_v30 = vld [vmem:[#allocation2 + $0x90] sm:$0xff] }
  0x5b   :  { %v3502_v11 = vrot.slane %v3488_v0, %v3498_v7  ;;  %562 = vmatprep.subr.bf16.mxu0 %v353_v18  ;;  %685 = vmatprep.subr.bf16.mxu1 %v355_v19  ;;  %v365_v31 = vld [vmem:[#allocation2 + $0xa8] sm:$0xff]  ;;  %v367_v32 = vld [vmem:[#allocation2 + $0xb8] sm:$0xff]  ;;  %v364_v33 = vld [vmem:[#allocation2 + $0xa0] sm:$0xff] }
  0x5c   :  { %v366_v34 = vld [vmem:[#allocation2 + $0xb0] sm:$0xff]  ;;  %v369_v35 = vld [vmem:[#allocation2 + $0xc8] sm:$0xff]  ;;  %v371_v36 = vld [vmem:[#allocation2 + $0xd8] sm:$0xff] }
  0x5d   :  { %v322_v15 = vcombine.high %v3502_v11, %v3502_v11  ;;  %v368_v37 = vld [vmem:[#allocation2 + $0xc0] sm:$0xff]  ;;  %v370_v38 = vld [vmem:[#allocation2 + $0xd0] sm:$0xff]  ;;  %v373_v39 = vld [vmem:[#allocation2 + $0xe8] sm:$0xff] }
  0x5e   :  { %563 = vmatpush1.bf16.msra.mxu0 %v352_v21  ;;  %686 = vmatpush1.bf16.msra.mxu1 %v354_v22  ;;  %v375_v40 = vld [vmem:[#allocation2 + $0xf8] sm:$0xff]  ;;  %v372_v41 = vld [vmem:[#allocation2 + $0xe0] sm:$0xff]  ;;  %v374_v42 = vld [vmem:[#allocation2 + $0xf0] sm:$0xff] }
  0x5f   :  { %v339_v20 = vpack.c.bf16 %v322_v15, %v322_v15  ;;  %564 = vmatprep.subr.bf16.mxu0 %v357_v23  ;;  %687 = vmatprep.subr.bf16.mxu1 %v359_v24  ;;  %v377_v43 = vld [vmem:[#allocation2 + $0x108] sm:$0xff]  ;;  %v379_v44 = vld [vmem:[#allocation2 + $0x118] sm:$0xff]  ;;  %v376_v45 = vld [vmem:[#allocation2 + $0x100] sm:$0xff]  ;;  %v3509_v15 = vrot.slane %v307_v9, %v3498_v7 }
  0x60   :  { %v378_v46 = vld [vmem:[#allocation2 + $0x110] sm:$0xff]  ;;  %v381_v47 = vld [vmem:[#allocation2 + $0x128] sm:$0xff]  ;;  %v383_v48 = vld [vmem:[#allocation2 + $0x138] sm:$0xff] }
  0x61   :  { %590 = vmatprep.mubr.bf16.mxu0 %v339_v20  ;;  %713 = vmatprep.mubr.bf16.mxu1 %v339_v20  ;;  %v380_v49 = vld [vmem:[#allocation2 + $0x120] sm:$0xff]  ;;  %v382_v50 = vld [vmem:[#allocation2 + $0x130] sm:$0xff]  ;;  %v385_v51 = vld [vmem:[#allocation2 + $0x148] sm:$0xff]  ;;  %v323_v0 = vcombine.high %v3509_v15, %v3509_v15  ;;  %v338_v20 = vpack.c.bf16 %v3502_v11, %v3502_v11 }
  0x62   :  { %565 = vmatpush1.bf16.msra.mxu0 %v356_v25  ;;  %688 = vmatpush1.bf16.msra.mxu1 %v358_v26  ;;  %v387_v52 = vld [vmem:[#allocation2 + $0x158] sm:$0xff]  ;;  %v384_v53 = vld [vmem:[#allocation2 + $0x140] sm:$0xff]  ;;  %v386_v54 = vld [vmem:[#allocation2 + $0x150] sm:$0xff] }
  0x63   :  { %566 = vmatprep.subr.bf16.mxu0 %v361_v27  ;;  %689 = vmatprep.subr.bf16.mxu1 %v363_v28  ;;  %v389_v55 = vld [vmem:[#allocation2 + $0x168] sm:$0xff]  ;;  %v391_v56 = vld [vmem:[#allocation2 + $0x178] sm:$0xff]  ;;  %v388_v57 = vld [vmem:[#allocation2 + $0x160] sm:$0xff]  ;;  %v341_v25 = vpack.c.bf16 %v323_v0, %v323_v0 }
  0x64   :  { %v390_v58 = vld [vmem:[#allocation2 + $0x170] sm:$0xff]  ;;  %v393_v59 = vld [vmem:[#allocation2 + $0x188] sm:$0xff]  ;;  %v395_v60 = vld [vmem:[#allocation2 + $0x198] sm:$0xff] }
  0x65   :  { %v392_v61 = vld [vmem:[#allocation2 + $0x180] sm:$0xff]  ;;  %v394_v62 = vld [vmem:[#allocation2 + $0x190] sm:$0xff]  ;;  %v397_v63 = vld [vmem:[#allocation2 + $0x1a8] sm:$0xff] }
  0x66   :  { %567 = vmatpush1.bf16.msra.mxu0 %v360_v29  ;;  %690 = vmatpush1.bf16.msra.mxu1 %v362_v30  ;;  %v399_v2 = vld [vmem:[#allocation2 + $0x1b8] sm:$0xff]  ;;  %v396_v3 = vld [vmem:[#allocation2 + $0x1a0] sm:$0xff]  ;;  %v398_v4 = vld [vmem:[#allocation2 + $0x1b0] sm:$0xff] }
  0x67   :  { %568 = vmatprep.subr.bf16.mxu0 %v365_v31  ;;  %691 = vmatprep.subr.bf16.mxu1 %v367_v32  ;;  %v401_v6 = vld [vmem:[#allocation2 + $0x1c8] sm:$0xff]  ;;  %v403_v8 = vld [vmem:[#allocation2 + $0x1d8] sm:$0xff]  ;;  %v400_v10 = vld [vmem:[#allocation2 + $0x1c0] sm:$0xff] }
  0x68   :  { %v402_v12 = vld [vmem:[#allocation2 + $0x1d0] sm:$0xff]  ;;  %v405_v13 = vld [vmem:[#allocation2 + $0x1e8] sm:$0xff]  ;;  %v407_v14 = vld [vmem:[#allocation2 + $0x1f8] sm:$0xff] }
  0x69   :  { %v404_v16 = vld [vmem:[#allocation2 + $0x1e0] sm:$0xff]  ;;  %v406_v17 = vld [vmem:[#allocation2 + $0x1f0] sm:$0xff]  ;;  %v409_v18 = vld [vmem:[#allocation2 + $0x208] sm:$0xff] }
  0x6a   :  { %569 = vmatpush1.bf16.msra.mxu0 %v364_v33  ;;  %692 = vmatpush1.bf16.msra.mxu1 %v366_v34  ;;  %v411_v19 = vld [vmem:[#allocation2 + $0x218] sm:$0xff]  ;;  %v408_v21 = vld [vmem:[#allocation2 + $0x200] sm:$0xff]  ;;  %v410_v22 = vld [vmem:[#allocation2 + $0x210] sm:$0xff] }
  0x6b   :  { %570 = vmatprep.subr.bf16.mxu0 %v369_v35  ;;  %693 = vmatprep.subr.bf16.mxu1 %v371_v36  ;;  %v413_v23 = vld [vmem:[#allocation2 + $0x228] sm:$0xff]  ;;  %v415_v24 = vld [vmem:[#allocation2 + $0x238] sm:$0xff]  ;;  %v412_v26 = vld [vmem:[#allocation2 + $0x220] sm:$0xff] }
  0x6c   :  { %v414_v27 = vld [vmem:[#allocation2 + $0x230] sm:$0xff]  ;;  %v417_v28 = vld [vmem:[#allocation2 + $0x248] sm:$0xff]  ;;  %v419_v29 = vld [vmem:[#allocation2 + $0x258] sm:$0xff] }
  0x6d   :  { %v416_v11 = vld [vmem:[#allocation2 + $0x240] sm:$0xff]  ;;  %v418_v30 = vld [vmem:[#allocation2 + $0x250] sm:$0xff]  ;;  %v421_v31 = vld [vmem:[#allocation2 + $0x268] sm:$0xff] }
  0x6e   :  { %571 = vmatpush1.bf16.msra.mxu0 %v368_v37  ;;  %694 = vmatpush1.bf16.msra.mxu1 %v370_v38  ;;  %v423_v32 = vld [vmem:[#allocation2 + $0x278] sm:$0xff]  ;;  %v420_v33 = vld [vmem:[#allocation2 + $0x260] sm:$0xff]  ;;  %v422_v34 = vld [vmem:[#allocation2 + $0x270] sm:$0xff] }
  0x6f   :  { %572 = vmatprep.subr.bf16.mxu0 %v373_v39  ;;  %695 = vmatprep.subr.bf16.mxu1 %v375_v40  ;;  %v425_v35 = vld [vmem:[#allocation2 + $0x288] sm:$0xff]  ;;  %v427_v36 = vld [vmem:[#allocation2 + $0x298] sm:$0xff]  ;;  %v424_v37 = vld [vmem:[#allocation2 + $0x280] sm:$0xff] }
  0x70   :  { %v426_v38 = vld [vmem:[#allocation2 + $0x290] sm:$0xff]  ;;  %v429_v39 = vld [vmem:[#allocation2 + $0x2a8] sm:$0xff]  ;;  %v431_v40 = vld [vmem:[#allocation2 + $0x2b8] sm:$0xff] }
  0x71   :  { %v456_v9 = vld [vmem:[#allocation2 + $0x380] sm:$0xff]  ;;  %v466_v0 = vld [vmem:[#allocation2 + $0x3d0] sm:$0xff] }
  0x72   :  { %573 = vmatpush1.bf16.msra.mxu0 %v372_v41  ;;  %696 = vmatpush1.bf16.msra.mxu1 %v374_v42  ;;  %v428_v41 = vld [vmem:[#allocation2 + $0x2a0] sm:$0xff]  ;;  %v430_v42 = vld [vmem:[#allocation2 + $0x2b0] sm:$0xff] }
  0x73   :  { %574 = vmatprep.subr.bf16.mxu0 %v377_v43  ;;  %697 = vmatprep.subr.bf16.mxu1 %v379_v44  ;;  %v433_v43 = vld [vmem:[#allocation2 + $0x2c8] sm:$0xff]  ;;  %v435_v44 = vld [vmem:[#allocation2 + $0x2d8] sm:$0xff] }
  0x76   :  { %575 = vmatpush1.bf16.msra.mxu0 %v376_v45  ;;  %698 = vmatpush1.bf16.msra.mxu1 %v378_v46  ;;  %v432_v45 = vld [vmem:[#allocation2 + $0x2c0] sm:$0xff]  ;;  %v434_v46 = vld [vmem:[#allocation2 + $0x2d0] sm:$0xff] }
  0x77   :  { %576 = vmatprep.subr.bf16.mxu0 %v381_v47  ;;  %699 = vmatprep.subr.bf16.mxu1 %v383_v48  ;;  %v437_v47 = vld [vmem:[#allocation2 + $0x2e8] sm:$0xff]  ;;  %v439_v48 = vld [vmem:[#allocation2 + $0x2f8] sm:$0xff] }
  0x7a   :  { %577 = vmatpush1.bf16.msra.mxu0 %v380_v49  ;;  %700 = vmatpush1.bf16.msra.mxu1 %v382_v50  ;;  %v436_v49 = vld [vmem:[#allocation2 + $0x2e0] sm:$0xff]  ;;  %v438_v50 = vld [vmem:[#allocation2 + $0x2f0] sm:$0xff] }
  0x7b   :  { %578 = vmatprep.subr.bf16.mxu0 %v385_v51  ;;  %701 = vmatprep.subr.bf16.mxu1 %v387_v52  ;;  %v441_v51 = vld [vmem:[#allocation2 + $0x308] sm:$0xff]  ;;  %v443_v52 = vld [vmem:[#allocation2 + $0x318] sm:$0xff] }
  0x7e   :  { %579 = vmatpush1.bf16.msra.mxu0 %v384_v53  ;;  %702 = vmatpush1.bf16.msra.mxu1 %v386_v54  ;;  %v440_v53 = vld [vmem:[#allocation2 + $0x300] sm:$0xff]  ;;  %v442_v54 = vld [vmem:[#allocation2 + $0x310] sm:$0xff] }
  0x7f   :  { %580 = vmatprep.subr.bf16.mxu0 %v389_v55  ;;  %703 = vmatprep.subr.bf16.mxu1 %v391_v56  ;;  %v445_v55 = vld [vmem:[#allocation2 + $0x328] sm:$0xff]  ;;  %v447_v56 = vld [vmem:[#allocation2 + $0x338] sm:$0xff] }
  0x82   :  { %581 = vmatpush1.bf16.msra.mxu0 %v388_v57  ;;  %704 = vmatpush1.bf16.msra.mxu1 %v390_v58  ;;  %v444_v57 = vld [vmem:[#allocation2 + $0x320] sm:$0xff]  ;;  %v446_v58 = vld [vmem:[#allocation2 + $0x330] sm:$0xff] }
  0x83   :  { %582 = vmatprep.subr.bf16.mxu0 %v393_v59  ;;  %705 = vmatprep.subr.bf16.mxu1 %v395_v60  ;;  %v449_v59 = vld [vmem:[#allocation2 + $0x348] sm:$0xff]  ;;  %v451_v60 = vld [vmem:[#allocation2 + $0x358] sm:$0xff] }
  0x86   :  { %583 = vmatpush1.bf16.msra.mxu0 %v392_v61  ;;  %706 = vmatpush1.bf16.msra.mxu1 %v394_v62  ;;  %v448_v61 = vld [vmem:[#allocation2 + $0x340] sm:$0xff]  ;;  %v450_v62 = vld [vmem:[#allocation2 + $0x350] sm:$0xff] }
  0x87   :  { %584 = vmatprep.subr.bf16.mxu0 %v397_v63  ;;  %707 = vmatprep.subr.bf16.mxu1 %v399_v2  ;;  %v453_v63 = vld [vmem:[#allocation2 + $0x368] sm:$0xff]  ;;  %v455_v2 = vld [vmem:[#allocation2 + $0x378] sm:$0xff] }
  0x8a   :  { %585 = vmatpush1.bf16.msra.mxu0 %v396_v3  ;;  %708 = vmatpush1.bf16.msra.mxu1 %v398_v4  ;;  %v452_v3 = vld [vmem:[#allocation2 + $0x360] sm:$0xff]  ;;  %v454_v4 = vld [vmem:[#allocation2 + $0x370] sm:$0xff] }
  0x8b   :  { %586 = vmatprep.subr.bf16.mxu0 %v401_v6  ;;  %709 = vmatprep.subr.bf16.mxu1 %v403_v8  ;;  %v457_v6 = vld [vmem:[#allocation2 + $0x388] sm:$0xff]  ;;  %v459_v8 = vld [vmem:[#allocation2 + $0x398] sm:$0xff] }
  0x8e   :  { %587 = vmatpush1.bf16.msra.mxu0 %v400_v10  ;;  %710 = vmatpush1.bf16.msra.mxu1 %v402_v12  ;;  %v458_v10 = vld [vmem:[#allocation2 + $0x390] sm:$0xff]  ;;  %v461_v12 = vld [vmem:[#allocation2 + $0x3a8] sm:$0xff] }
  0x8f   :  { %588 = vmatprep.subr.bf16.mxu0 %v405_v13  ;;  %711 = vmatprep.subr.bf16.mxu1 %v407_v14  ;;  %v463_v13 = vld [vmem:[#allocation2 + $0x3b8] sm:$0xff]  ;;  %v460_v14 = vld [vmem:[#allocation2 + $0x3a0] sm:$0xff] }
  0x92   :  { %589 = vmatpush1.bf16.msra.mxu0 %v404_v16  ;;  %712 = vmatpush1.bf16.msra.mxu1 %v406_v17  ;;  %v462_v16 = vld [vmem:[#allocation2 + $0x3b0] sm:$0xff]  ;;  %v465_v17 = vld [vmem:[#allocation2 + $0x3c8] sm:$0xff] }
  0x93   :  { %599 = vmatprep.subr.bf16.mxu0 %v409_v18  ;;  %722 = vmatprep.subr.bf16.mxu1 %v411_v19  ;;  %v467_v18 = vld [vmem:[#allocation2 + $0x3d8] sm:$0xff]  ;;  %v464_v19 = vld [vmem:[#allocation2 + $0x3c0] sm:$0xff] }
  0x95   :  { %591 = vmatmul.mubr.bf16.vlgmr.msra.gmra.mrb[0].mxu0 %v338_v20  ;;  %714 = vmatmul.mubr.bf16.vlgmr.msra.gmra.mrb[0].mxu1 %v338_v20  ;;  %v469_v20 = vld [vmem:[#allocation2 + $0x3e8] sm:$0xff] }
  0x96   :  { %600 = vmatpush1.bf16.msra.mxu0 %v408_v21  ;;  %723 = vmatpush1.bf16.msra.mxu1 %v410_v22  ;;  %v471_v21 = vld [vmem:[#allocation2 + $0x3f8] sm:$0xff]  ;;  %v468_v22 = vld [vmem:[#allocation2 + $0x3e0] sm:$0xff] }
  0x97   :  { %601 = vmatprep.subr.bf16.mxu0 %v413_v23  ;;  %724 = vmatprep.subr.bf16.mxu1 %v415_v24  ;;  %v470_v23 = vld [vmem:[#allocation2 + $0x3f0] sm:$0xff]  ;;  %v473_v24 = vld [vmem:[#allocation2 + $0x408] sm:$0xff] }
  0x98   :  { %631 = vmatprep.mubr.bf16.mxu0 %v341_v25  ;;  %754 = vmatprep.mubr.bf16.mxu1 %v341_v25  ;;  %v475_v25 = vld [vmem:[#allocation2 + $0x418] sm:$0xff] }
  0x9a   :  { %602 = vmatpush1.bf16.msra.mxu0 %v412_v26  ;;  %725 = vmatpush1.bf16.msra.mxu1 %v414_v27  ;;  %v331_v26 = vcombine.high %v3493_v1, %v3493_v1  ;;  %v340_v27 = vpack.c.bf16 %v3509_v15, %v3509_v15  ;;  %v480_v15 = vld [vmem:[#allocation2 + $0x440] sm:$0xff] }
  0x9b   :  { %603 = vmatprep.subr.bf16.mxu0 %v417_v28  ;;  %726 = vmatprep.subr.bf16.mxu1 %v419_v29  ;;  %v472_v28 = vld [vmem:[#allocation2 + $0x400] sm:$0xff]  ;;  %v474_v29 = vld [vmem:[#allocation2 + $0x410] sm:$0xff] }
  0x9e   :  { %604 = vmatpush1.bf16.msra.mxu0 %v416_v11  ;;  %727 = vmatpush1.bf16.msra.mxu1 %v418_v30  ;;  %v477_v11 = vld [vmem:[#allocation2 + $0x428] sm:$0xff]  ;;  %v479_v30 = vld [vmem:[#allocation2 + $0x438] sm:$0xff] }
  0x9f   :  { %605 = vmatprep.subr.bf16.mxu0 %v421_v31  ;;  %728 = vmatprep.subr.bf16.mxu1 %v423_v32  ;;  %v343_v31 = vpack.c.bf16 %v331_v26, %v331_v26  ;;  %v476_v32 = vld [vmem:[#allocation2 + $0x420] sm:$0xff]  ;;  %v533_v26 = vld [vmem:[#allocation2 + $0x5e8] sm:$0xff] }
  0xa2   :  { %606 = vmatpush1.bf16.msra.mxu0 %v420_v33  ;;  %729 = vmatpush1.bf16.msra.mxu1 %v422_v34  ;;  %v478_v33 = vld [vmem:[#allocation2 + $0x430] sm:$0xff]  ;;  %v481_v34 = vld [vmem:[#allocation2 + $0x448] sm:$0xff] }
  0xa3   :  { %607 = vmatprep.subr.bf16.mxu0 %v425_v35  ;;  %730 = vmatprep.subr.bf16.mxu1 %v427_v36  ;;  %v483_v35 = vld [vmem:[#allocation2 + $0x458] sm:$0xff]  ;;  %v482_v36 = vld [vmem:[#allocation2 + $0x450] sm:$0xff] }
  0xa6   :  { %608 = vmatpush1.bf16.msra.mxu0 %v424_v37  ;;  %731 = vmatpush1.bf16.msra.mxu1 %v426_v38  ;;  %v485_v37 = vld [vmem:[#allocation2 + $0x468] sm:$0xff]  ;;  %v487_v38 = vld [vmem:[#allocation2 + $0x478] sm:$0xff] }
  0xa7   :  { %609 = vmatprep.subr.bf16.mxu0 %v429_v39  ;;  %732 = vmatprep.subr.bf16.mxu1 %v431_v40  ;;  %v484_v39 = vld [vmem:[#allocation2 + $0x460] sm:$0xff]  ;;  %v486_v40 = vld [vmem:[#allocation2 + $0x470] sm:$0xff] }
  0xaa   :  { %610 = vmatpush1.bf16.msra.mxu0 %v428_v41  ;;  %733 = vmatpush1.bf16.msra.mxu1 %v430_v42  ;;  %v489_v41 = vld [vmem:[#allocation2 + $0x488] sm:$0xff]  ;;  %v491_v42 = vld [vmem:[#allocation2 + $0x498] sm:$0xff] }
  0xab   :  { %611 = vmatprep.subr.bf16.mxu0 %v433_v43  ;;  %734 = vmatprep.subr.bf16.mxu1 %v435_v44  ;;  %v488_v43 = vld [vmem:[#allocation2 + $0x480] sm:$0xff]  ;;  %v490_v44 = vld [vmem:[#allocation2 + $0x490] sm:$0xff] }
  0xae   :  { %612 = vmatpush1.bf16.msra.mxu0 %v432_v45  ;;  %735 = vmatpush1.bf16.msra.mxu1 %v434_v46  ;;  %v493_v45 = vld [vmem:[#allocation2 + $0x4a8] sm:$0xff]  ;;  %v495_v46 = vld [vmem:[#allocation2 + $0x4b8] sm:$0xff] }
  0xaf   :  { %613 = vmatprep.subr.bf16.mxu0 %v437_v47  ;;  %736 = vmatprep.subr.bf16.mxu1 %v439_v48  ;;  %v492_v47 = vld [vmem:[#allocation2 + $0x4a0] sm:$0xff]  ;;  %v494_v48 = vld [vmem:[#allocation2 + $0x4b0] sm:$0xff] }
  0xb2   :  { %614 = vmatpush1.bf16.msra.mxu0 %v436_v49  ;;  %737 = vmatpush1.bf16.msra.mxu1 %v438_v50  ;;  %v497_v49 = vld [vmem:[#allocation2 + $0x4c8] sm:$0xff]  ;;  %v499_v50 = vld [vmem:[#allocation2 + $0x4d8] sm:$0xff] }
  0xb3   :  { %615 = vmatprep.subr.bf16.mxu0 %v441_v51  ;;  %738 = vmatprep.subr.bf16.mxu1 %v443_v52  ;;  %v496_v51 = vld [vmem:[#allocation2 + $0x4c0] sm:$0xff]  ;;  %v498_v52 = vld [vmem:[#allocation2 + $0x4d0] sm:$0xff] }
  0xb6   :  { %616 = vmatpush1.bf16.msra.mxu0 %v440_v53  ;;  %739 = vmatpush1.bf16.msra.mxu1 %v442_v54  ;;  %v501_v53 = vld [vmem:[#allocation2 + $0x4e8] sm:$0xff]  ;;  %v503_v54 = vld [vmem:[#allocation2 + $0x4f8] sm:$0xff] }
  0xb7   :  { %617 = vmatprep.subr.bf16.mxu0 %v445_v55  ;;  %740 = vmatprep.subr.bf16.mxu1 %v447_v56  ;;  %v500_v55 = vld [vmem:[#allocation2 + $0x4e0] sm:$0xff]  ;;  %v502_v56 = vld [vmem:[#allocation2 + $0x4f0] sm:$0xff] }
  0xba   :  { %618 = vmatpush1.bf16.msra.mxu0 %v444_v57  ;;  %741 = vmatpush1.bf16.msra.mxu1 %v446_v58  ;;  %v505_v57 = vld [vmem:[#allocation2 + $0x508] sm:$0xff]  ;;  %v507_v58 = vld [vmem:[#allocation2 + $0x518] sm:$0xff] }
  0xbb   :  { %619 = vmatprep.subr.bf16.mxu0 %v449_v59  ;;  %742 = vmatprep.subr.bf16.mxu1 %v451_v60  ;;  %v504_v59 = vld [vmem:[#allocation2 + $0x500] sm:$0xff]  ;;  %v506_v60 = vld [vmem:[#allocation2 + $0x510] sm:$0xff] }
  0xbe   :  { %620 = vmatpush1.bf16.msra.mxu0 %v448_v61  ;;  %743 = vmatpush1.bf16.msra.mxu1 %v450_v62  ;;  %v509_v61 = vld [vmem:[#allocation2 + $0x528] sm:$0xff]  ;;  %v511_v62 = vld [vmem:[#allocation2 + $0x538] sm:$0xff] }
  0xbf   :  { %621 = vmatprep.subr.bf16.mxu0 %v453_v63  ;;  %744 = vmatprep.subr.bf16.mxu1 %v455_v2  ;;  %v508_v63 = vld [vmem:[#allocation2 + $0x520] sm:$0xff]  ;;  %v510_v2 = vld [vmem:[#allocation2 + $0x530] sm:$0xff] }
  0xc2   :  { %622 = vmatpush1.bf16.msra.mxu0 %v452_v3  ;;  %745 = vmatpush1.bf16.msra.mxu1 %v454_v4  ;;  %v513_v3 = vld [vmem:[#allocation2 + $0x548] sm:$0xff]  ;;  %v515_v4 = vld [vmem:[#allocation2 + $0x558] sm:$0xff] }
  0xc3   :  { %623 = vmatprep.subr.bf16.mxu0 %v457_v6  ;;  %746 = vmatprep.subr.bf16.mxu1 %v459_v8  ;;  %v512_v6 = vld [vmem:[#allocation2 + $0x540] sm:$0xff]  ;;  %v514_v8 = vld [vmem:[#allocation2 + $0x550] sm:$0xff] }
  0xc6   :  { %624 = vmatpush1.bf16.msra.mxu0 %v456_v9  ;;  %747 = vmatpush1.bf16.msra.mxu1 %v458_v10  ;;  %v517_v9 = vld [vmem:[#allocation2 + $0x568] sm:$0xff]  ;;  %v519_v10 = vld [vmem:[#allocation2 + $0x578] sm:$0xff] }
  0xc7   :  { %625 = vmatprep.subr.bf16.mxu0 %v461_v12  ;;  %748 = vmatprep.subr.bf16.mxu1 %v463_v13  ;;  %v516_v12 = vld [vmem:[#allocation2 + $0x560] sm:$0xff]  ;;  %v518_v13 = vld [vmem:[#allocation2 + $0x570] sm:$0xff] }
  0xca   :  { %626 = vmatpush1.bf16.msra.mxu0 %v460_v14  ;;  %749 = vmatpush1.bf16.msra.mxu1 %v462_v16  ;;  %v521_v14 = vld [vmem:[#allocation2 + $0x588] sm:$0xff]  ;;  %v523_v16 = vld [vmem:[#allocation2 + $0x598] sm:$0xff] }
  0xcb   :  { %627 = vmatprep.subr.bf16.mxu0 %v465_v17  ;;  %750 = vmatprep.subr.bf16.mxu1 %v467_v18  ;;  %v520_v17 = vld [vmem:[#allocation2 + $0x580] sm:$0xff]  ;;  %v522_v18 = vld [vmem:[#allocation2 + $0x590] sm:$0xff] }
  0xce   :  { %628 = vmatpush1.bf16.msra.mxu0 %v464_v19  ;;  %751 = vmatpush1.bf16.msra.mxu1 %v466_v0  ;;  %v525_v19 = vld [vmem:[#allocation2 + $0x5a8] sm:$0xff]  ;;  %v527_v0 = vld [vmem:[#allocation2 + $0x5b8] sm:$0xff] }
  0xcf   :  { %629 = vmatprep.subr.bf16.mxu0 %v469_v20  ;;  %752 = vmatprep.subr.bf16.mxu1 %v471_v21  ;;  %v524_v20 = vld [vmem:[#allocation2 + $0x5a0] sm:$0xff]  ;;  %v526_v21 = vld [vmem:[#allocation2 + $0x5b0] sm:$0xff] }
  0xd2   :  { %630 = vmatpush1.bf16.msra.mxu0 %v468_v22  ;;  %753 = vmatpush1.bf16.msra.mxu1 %v470_v23  ;;  %v529_v22 = vld [vmem:[#allocation2 + $0x5c8] sm:$0xff]  ;;  %v531_v23 = vld [vmem:[#allocation2 + $0x5d8] sm:$0xff] }
  0xd3   :  { %640 = vmatprep.subr.bf16.mxu0 %v473_v24  ;;  %763 = vmatprep.subr.bf16.mxu1 %v475_v25  ;;  %v528_v24 = vld [vmem:[#allocation2 + $0x5c0] sm:$0xff]  ;;  %v530_v25 = vld [vmem:[#allocation2 + $0x5d0] sm:$0xff] }
  0xd5   :  { %632 = vmatmul.mubr.bf16.vlgmr.msra.gmra.mrb[0].mxu0 %v340_v27  ;;  %755 = vmatmul.mubr.bf16.vlgmr.msra.gmra.mrb[0].mxu1 %v340_v27  ;;  %v535_v27 = vld [vmem:[#allocation2 + $0x5f8] sm:$0xff] }
  0xd6   :  { %641 = vmatpush1.bf16.msra.mxu0 %v472_v28  ;;  %764 = vmatpush1.bf16.msra.mxu1 %v474_v29  ;;  %v532_v28 = vld [vmem:[#allocation2 + $0x5e0] sm:$0xff]  ;;  %v534_v29 = vld [vmem:[#allocation2 + $0x5f0] sm:$0xff] }
  0xd7   :  { %642 = vmatprep.subr.bf16.mxu0 %v477_v11  ;;  %765 = vmatprep.subr.bf16.mxu1 %v479_v30  ;;  %v342_v11 = vpack.c.bf16 %v3493_v1, %v3493_v1  ;;  %v3522_v30 = vsub.s32 0, %v3495_v5 }
  0xd8   :  { %672 = vmatprep.mubr.bf16.mxu0 %v343_v31  ;;  %795 = vmatprep.mubr.bf16.mxu1 %v343_v31  ;;  %v3525_v31 = vsub.s32 2, %v3495_v5 }
  0xda   :  { %643 = vmatpush1.bf16.msra.mxu0 %v476_v32  ;;  %766 = vmatpush1.bf16.msra.mxu1 %v478_v33  ;;  %v536_v32 = vld [vmem:[%s3792_s1] sm:$0xf]  ;;  %v3531_v33 = vsub.s32 1, %v3495_v5 }
  0xdb   :  { %644 = vmatprep.subr.bf16.mxu0 %v481_v34  ;;  %767 = vmatprep.subr.bf16.mxu1 %v483_v35  ;;  %v3534_v34 = vsub.s32 3, %v3495_v5  ;;  %v541_v1 = vrot.slane %v536_v32, %v3522_v30  ;;  %v549_v35 = vrot.slane %v536_v32, %v3525_v31 }
  0xde   :  { %645 = vmatpush1.bf16.msra.mxu0 %v480_v15  ;;  %768 = vmatpush1.bf16.msra.mxu1 %v482_v36  ;;  %v545_v15 = vrot.slane %v536_v32, %v3531_v33  ;;  %v553_v36 = vrot.slane %v536_v32, %v3534_v34 }
  0xdf   :  { %646 = vmatprep.subr.bf16.mxu0 %v485_v37  ;;  %769 = vmatprep.subr.bf16.mxu1 %v487_v38 }
  0xe2   :  { %647 = vmatpush1.bf16.msra.mxu0 %v484_v39  ;;  %770 = vmatpush1.bf16.msra.mxu1 %v486_v40 }
  0xe3   :  { %648 = vmatprep.subr.bf16.mxu0 %v489_v41  ;;  %771 = vmatprep.subr.bf16.mxu1 %v491_v42 }
  0xe6   :  { %649 = vmatpush1.bf16.msra.mxu0 %v488_v43  ;;  %772 = vmatpush1.bf16.msra.mxu1 %v490_v44 }
  0xe7   :  { %650 = vmatprep.subr.bf16.mxu0 %v493_v45  ;;  %773 = vmatprep.subr.bf16.mxu1 %v495_v46 }
  0xea   :  { %651 = vmatpush1.bf16.msra.mxu0 %v492_v47  ;;  %774 = vmatpush1.bf16.msra.mxu1 %v494_v48 }
  0xeb   :  { %652 = vmatprep.subr.bf16.mxu0 %v497_v49  ;;  %775 = vmatprep.subr.bf16.mxu1 %v499_v50 }
  0xee   :  { %653 = vmatpush1.bf16.msra.mxu0 %v496_v51  ;;  %776 = vmatpush1.bf16.msra.mxu1 %v498_v52 }
  0xef   :  { %654 = vmatprep.subr.bf16.mxu0 %v501_v53  ;;  %777 = vmatprep.subr.bf16.mxu1 %v503_v54 }
  0xf2   :  { %655 = vmatpush1.bf16.msra.mxu0 %v500_v55  ;;  %778 = vmatpush1.bf16.msra.mxu1 %v502_v56 }
  0xf3   :  { %656 = vmatprep.subr.bf16.mxu0 %v505_v57  ;;  %779 = vmatprep.subr.bf16.mxu1 %v507_v58 }
  0xf6   :  { %657 = vmatpush1.bf16.msra.mxu0 %v504_v59  ;;  %780 = vmatpush1.bf16.msra.mxu1 %v506_v60 }
  0xf7   :  { %658 = vmatprep.subr.bf16.mxu0 %v509_v61  ;;  %781 = vmatprep.subr.bf16.mxu1 %v511_v62 }
  0xfa   :  { %659 = vmatpush1.bf16.msra.mxu0 %v508_v63  ;;  %782 = vmatpush1.bf16.msra.mxu1 %v510_v2 }
  0xfb   :  { %660 = vmatprep.subr.bf16.mxu0 %v513_v3  ;;  %783 = vmatprep.subr.bf16.mxu1 %v515_v4 }
  0xfe   :  { %661 = vmatpush1.bf16.msra.mxu0 %v512_v6  ;;  %784 = vmatpush1.bf16.msra.mxu1 %v514_v8 }
  0xff   :  { %662 = vmatprep.subr.bf16.mxu0 %v517_v9  ;;  %785 = vmatprep.subr.bf16.mxu1 %v519_v10 }
 0x102   :  { %663 = vmatpush1.bf16.msra.mxu0 %v516_v12  ;;  %786 = vmatpush1.bf16.msra.mxu1 %v518_v13 }
 0x103   :  { %664 = vmatprep.subr.bf16.mxu0 %v521_v14  ;;  %787 = vmatprep.subr.bf16.mxu1 %v523_v16 }
 0x106   :  { %665 = vmatpush1.bf16.msra.mxu0 %v520_v17  ;;  %788 = vmatpush1.bf16.msra.mxu1 %v522_v18 }
 0x107   :  { %666 = vmatprep.subr.bf16.mxu0 %v525_v19  ;;  %789 = vmatprep.subr.bf16.mxu1 %v527_v0 }
 0x10a   :  { %667 = vmatpush1.bf16.msra.mxu0 %v524_v20  ;;  %790 = vmatpush1.bf16.msra.mxu1 %v526_v21 }
 0x10b   :  { %668 = vmatprep.subr.bf16.mxu0 %v529_v22  ;;  %791 = vmatprep.subr.bf16.mxu1 %v531_v23 }
 0x10e   :  { %669 = vmatpush1.bf16.msra.mxu0 %v528_v24  ;;  %792 = vmatpush1.bf16.msra.mxu1 %v530_v25 }
 0x10f   :  { %670 = vmatprep.subr.bf16.mxu0 %v533_v26  ;;  %793 = vmatprep.subr.bf16.mxu1 %v535_v27 }
 0x112   :  { %671 = vmatpush1.bf16.msra.mxu0 %v532_v28  ;;  %794 = vmatpush1.bf16.msra.mxu1 %v534_v29 }
 0x115   :  { %673 = vmatmul.mubr.bf16.vlgmr.msra.gmra.mrb[0].mxu0 %v342_v11  ;;  %796 = vmatmul.mubr.bf16.vlgmr.msra.gmra.mrb[0].mxu1 %v342_v11 }
 0x1e8   :  { %v674_v37 = vpop.f32.mrb[0].mxu0  ;;  %v797_v38 = vpop.f32.mrb[0].mxu1 }
 0x1e9   :  { %v3540_v39 = vadd.f32 %v674_v37, %v541_v1  ;;  %v3542_v40 = vadd.f32 %v797_v38, %v549_v35  ;;  %v676_v41 = vpop.f32.mrb[1].mxu0  ;;  %v799_v42 = vpop.f32.mrb[1].mxu1 }
 0x1ea   :  { %v3187_v43 = vadd.f32 %v676_v41, %v545_v15  ;;  %v3544_v44 = vadd.f32 %v799_v42, %v553_v36  ;;  %v678_v45 = vpop.f32.mrb[2].mxu0  ;;  %v801_v46 = vpop.f32.mrb[2].mxu1 }
 0x1eb   :  { %v804_v47 = vmax.f32 %v3540_v39, 0.0  ;;  %v806_v48 = vmax.f32 %v3542_v40, 0.0  ;;  %v679_v49 = vpop.f32.mrb[3].mxu0  ;;  %v802_v50 = vpop.f32.mrb[3].mxu1 }
 0x1ec   :  { %v805_v51 = vmax.f32 %v3187_v43, 0.0  ;;  %v807_v52 = vmax.f32 %v3544_v44, 0.0 }
 0x1ed   :  { %3284 = dma.done.wait [#allocation10 + $0x1], 16384 }
 0x1ee   :  { %3285 = vsyncadd [#allocation10 + $0x1], 4294950912  ;;  %v3549_v53 = vpack.c.bf16 %v805_v51, %v805_v51  ;;  %v817_v54 = vld [vmem:[#allocation3 + $0x8] sm:$0xff]  ;;  %v819_v55 = vld [vmem:[#allocation3 + $0x18] sm:$0xff] }
 0x1ef   :  { %v816_v56 = vld [vmem:[#allocation3] sm:$0xff]  ;;  %966 = vmatprep.subr.bf16.mxu0 %v817_v54  ;;  %1048 = vmatprep.subr.bf16.mxu1 %v819_v55  ;;  %v818_v57 = vld [vmem:[#allocation3 + $0x10] sm:$0xff]  ;;  %v821_v58 = vld [vmem:[#allocation3 + $0x28] sm:$0xff] }
 0x1f0   :  { %998 = vmatprep.mubr.bf16.mxu0 %v3549_v53  ;;  %1080 = vmatprep.mubr.bf16.mxu1 %v3549_v53  ;;  %v823_v59 = vld [vmem:[#allocation3 + $0x38] sm:$0xff]  ;;  %v820_v60 = vld [vmem:[#allocation3 + $0x20] sm:$0xff]  ;;  %v822_v61 = vld [vmem:[#allocation3 + $0x30] sm:$0xff] }
 0x1f1   :  { %967 = vmatpush1.bf16.msra.mxu0 %v816_v56  ;;  %1049 = vmatpush1.bf16.msra.mxu1 %v818_v57  ;;  %v825_v62 = vld [vmem:[#allocation3 + $0x48] sm:$0xff]  ;;  %v827_v63 = vld [vmem:[#allocation3 + $0x58] sm:$0xff]  ;;  %v824_v2 = vld [vmem:[#allocation3 + $0x40] sm:$0xff] }
 0x1f2   :  { %968 = vmatprep.subr.bf16.mxu0 %v821_v58  ;;  %1050 = vmatprep.subr.bf16.mxu1 %v823_v59  ;;  %v826_v3 = vld [vmem:[#allocation3 + $0x50] sm:$0xff]  ;;  %v829_v4 = vld [vmem:[#allocation3 + $0x68] sm:$0xff]  ;;  %v831_v6 = vld [vmem:[#allocation3 + $0x78] sm:$0xff] }
 0x1f3   :  { %v828_v8 = vld [vmem:[#allocation3 + $0x60] sm:$0xff]  ;;  %v830_v9 = vld [vmem:[#allocation3 + $0x70] sm:$0xff]  ;;  %v833_v10 = vld [vmem:[#allocation3 + $0x88] sm:$0xff] }
 0x1f4   :  { %v835_v12 = vld [vmem:[#allocation3 + $0x98] sm:$0xff]  ;;  %v832_v13 = vld [vmem:[#allocation3 + $0x80] sm:$0xff]  ;;  %v834_v14 = vld [vmem:[#allocation3 + $0x90] sm:$0xff] }
 0x1f5   :  { %969 = vmatpush1.bf16.msra.mxu0 %v820_v60  ;;  %1051 = vmatpush1.bf16.msra.mxu1 %v822_v61  ;;  %v837_v16 = vld [vmem:[#allocation3 + $0xa8] sm:$0xff]  ;;  %v839_v17 = vld [vmem:[#allocation3 + $0xb8] sm:$0xff]  ;;  %v836_v18 = vld [vmem:[#allocation3 + $0xa0] sm:$0xff] }
 0x1f6   :  { %970 = vmatprep.subr.bf16.mxu0 %v825_v62  ;;  %1052 = vmatprep.subr.bf16.mxu1 %v827_v63  ;;  %v838_v19 = vld [vmem:[#allocation3 + $0xb0] sm:$0xff]  ;;  %v841_v0 = vld [vmem:[#allocation3 + $0xc8] sm:$0xff]  ;;  %v843_v20 = vld [vmem:[#allocation3 + $0xd8] sm:$0xff] }
 0x1f7   :  { %v840_v21 = vld [vmem:[#allocation3 + $0xc0] sm:$0xff]  ;;  %v842_v22 = vld [vmem:[#allocation3 + $0xd0] sm:$0xff]  ;;  %v845_v23 = vld [vmem:[#allocation3 + $0xe8] sm:$0xff] }
 0x1f8   :  { %v847_v24 = vld [vmem:[#allocation3 + $0xf8] sm:$0xff]  ;;  %v844_v25 = vld [vmem:[#allocation3 + $0xe0] sm:$0xff]  ;;  %v846_v26 = vld [vmem:[#allocation3 + $0xf0] sm:$0xff] }
 0x1f9   :  { %971 = vmatpush1.bf16.msra.mxu0 %v824_v2  ;;  %1053 = vmatpush1.bf16.msra.mxu1 %v826_v3  ;;  %v849_v27 = vld [vmem:[#allocation3 + $0x108] sm:$0xff]  ;;  %v851_v28 = vld [vmem:[#allocation3 + $0x118] sm:$0xff]  ;;  %v848_v29 = vld [vmem:[#allocation3 + $0x100] sm:$0xff] }
 0x1fa   :  { %972 = vmatprep.subr.bf16.mxu0 %v829_v4  ;;  %1054 = vmatprep.subr.bf16.mxu1 %v831_v6  ;;  %v850_v11 = vld [vmem:[#allocation3 + $0x110] sm:$0xff]  ;;  %v853_v32 = vld [vmem:[#allocation3 + $0x128] sm:$0xff]  ;;  %v855_v1 = vld [vmem:[#allocation3 + $0x138] sm:$0xff] }
 0x1fb   :  { %v852_v35 = vld [vmem:[#allocation3 + $0x120] sm:$0xff]  ;;  %v854_v15 = vld [vmem:[#allocation3 + $0x130] sm:$0xff]  ;;  %v857_v36 = vld [vmem:[#allocation3 + $0x148] sm:$0xff] }
 0x1fc   :  { %v859_v37 = vld [vmem:[#allocation3 + $0x158] sm:$0xff]  ;;  %v856_v38 = vld [vmem:[#allocation3 + $0x140] sm:$0xff]  ;;  %v858_v41 = vld [vmem:[#allocation3 + $0x150] sm:$0xff] }
 0x1fd   :  { %973 = vmatpush1.bf16.msra.mxu0 %v828_v8  ;;  %1055 = vmatpush1.bf16.msra.mxu1 %v830_v9  ;;  %v861_v42 = vld [vmem:[#allocation3 + $0x168] sm:$0xff]  ;;  %v863_v43 = vld [vmem:[#allocation3 + $0x178] sm:$0xff]  ;;  %v860_v45 = vld [vmem:[#allocation3 + $0x160] sm:$0xff]  ;;  %v3556_v9 = vpack.c.bf16 %v804_v47, %v804_v47 }
 0x1fe   :  { %974 = vmatprep.subr.bf16.mxu0 %v833_v10  ;;  %1056 = vmatprep.subr.bf16.mxu1 %v835_v12  ;;  %v862_v46 = vld [vmem:[#allocation3 + $0x170] sm:$0xff]  ;;  %v865_v49 = vld [vmem:[#allocation3 + $0x188] sm:$0xff]  ;;  %v867_v50 = vld [vmem:[#allocation3 + $0x198] sm:$0xff] }
 0x1ff   :  { %v864_v51 = vld [vmem:[#allocation3 + $0x180] sm:$0xff]  ;;  %v866_v54 = vld [vmem:[#allocation3 + $0x190] sm:$0xff]  ;;  %v869_v55 = vld [vmem:[#allocation3 + $0x1a8] sm:$0xff] }
 0x200   :  { %v871_v56 = vld [vmem:[#allocation3 + $0x1b8] sm:$0xff]  ;;  %v868_v57 = vld [vmem:[#allocation3 + $0x1a0] sm:$0xff]  ;;  %v870_v58 = vld [vmem:[#allocation3 + $0x1b0] sm:$0xff] }
 0x201   :  { %975 = vmatpush1.bf16.msra.mxu0 %v832_v13  ;;  %1057 = vmatpush1.bf16.msra.mxu1 %v834_v14  ;;  %v873_v59 = vld [vmem:[#allocation3 + $0x1c8] sm:$0xff]  ;;  %v875_v60 = vld [vmem:[#allocation3 + $0x1d8] sm:$0xff]  ;;  %v872_v61 = vld [vmem:[#allocation3 + $0x1c0] sm:$0xff] }
 0x202   :  { %976 = vmatprep.subr.bf16.mxu0 %v837_v16  ;;  %1058 = vmatprep.subr.bf16.mxu1 %v839_v17  ;;  %v874_v62 = vld [vmem:[#allocation3 + $0x1d0] sm:$0xff]  ;;  %v877_v63 = vld [vmem:[#allocation3 + $0x1e8] sm:$0xff]  ;;  %v879_v2 = vld [vmem:[#allocation3 + $0x1f8] sm:$0xff]  ;;  %v3561_v16 = vpack.c.bf16 %v807_v52, %v807_v52 }
 0x203   :  { %v876_v3 = vld [vmem:[#allocation3 + $0x1e0] sm:$0xff]  ;;  %v878_v4 = vld [vmem:[#allocation3 + $0x1f0] sm:$0xff]  ;;  %v881_v6 = vld [vmem:[#allocation3 + $0x208] sm:$0xff] }
 0x204   :  { %v883_v8 = vld [vmem:[#allocation3 + $0x218] sm:$0xff]  ;;  %v880_v10 = vld [vmem:[#allocation3 + $0x200] sm:$0xff]  ;;  %v882_v12 = vld [vmem:[#allocation3 + $0x210] sm:$0xff] }
 0x205   :  { %977 = vmatpush1.bf16.msra.mxu0 %v836_v18  ;;  %1059 = vmatpush1.bf16.msra.mxu1 %v838_v19  ;;  %v885_v13 = vld [vmem:[#allocation3 + $0x228] sm:$0xff]  ;;  %v887_v14 = vld [vmem:[#allocation3 + $0x238] sm:$0xff]  ;;  %v884_v39 = vld [vmem:[#allocation3 + $0x220] sm:$0xff] }
 0x206   :  { %978 = vmatprep.subr.bf16.mxu0 %v841_v0  ;;  %1060 = vmatprep.subr.bf16.mxu1 %v843_v20  ;;  %v886_v47 = vld [vmem:[#allocation3 + $0x230] sm:$0xff]  ;;  %v889_v17 = vld [vmem:[#allocation3 + $0x248] sm:$0xff]  ;;  %v891_v18 = vld [vmem:[#allocation3 + $0x258] sm:$0xff] }
 0x207   :  { %v888_v44 = vld [vmem:[#allocation3 + $0x240] sm:$0xff]  ;;  %v890_v52 = vld [vmem:[#allocation3 + $0x250] sm:$0xff]  ;;  %v893_v19 = vld [vmem:[#allocation3 + $0x268] sm:$0xff] }
 0x208   :  { %v895_v0 = vld [vmem:[#allocation3 + $0x278] sm:$0xff]  ;;  %v892_v20 = vld [vmem:[#allocation3 + $0x260] sm:$0xff] }
 0x209   :  { %979 = vmatpush1.bf16.msra.mxu0 %v840_v21  ;;  %1061 = vmatpush1.bf16.msra.mxu1 %v842_v22  ;;  %v894_v21 = vld [vmem:[#allocation3 + $0x270] sm:$0xff]  ;;  %v897_v22 = vld [vmem:[#allocation3 + $0x288] sm:$0xff] }
 0x20a   :  { %980 = vmatprep.subr.bf16.mxu0 %v845_v23  ;;  %1062 = vmatprep.subr.bf16.mxu1 %v847_v24  ;;  %v899_v23 = vld [vmem:[#allocation3 + $0x298] sm:$0xff]  ;;  %v896_v24 = vld [vmem:[#allocation3 + $0x280] sm:$0xff] }
 0x20d   :  { %981 = vmatpush1.bf16.msra.mxu0 %v844_v25  ;;  %1063 = vmatpush1.bf16.msra.mxu1 %v846_v26  ;;  %v898_v25 = vld [vmem:[#allocation3 + $0x290] sm:$0xff]  ;;  %v901_v26 = vld [vmem:[#allocation3 + $0x2a8] sm:$0xff] }
 0x20e   :  { %982 = vmatprep.subr.bf16.mxu0 %v849_v27  ;;  %1064 = vmatprep.subr.bf16.mxu1 %v851_v28  ;;  %v903_v27 = vld [vmem:[#allocation3 + $0x2b8] sm:$0xff]  ;;  %v900_v28 = vld [vmem:[#allocation3 + $0x2a0] sm:$0xff] }
 0x211   :  { %983 = vmatpush1.bf16.msra.mxu0 %v848_v29  ;;  %1065 = vmatpush1.bf16.msra.mxu1 %v850_v11  ;;  %v902_v29 = vld [vmem:[#allocation3 + $0x2b0] sm:$0xff]  ;;  %v905_v11 = vld [vmem:[#allocation3 + $0x2c8] sm:$0xff] }
 0x212   :  { %984 = vmatprep.subr.bf16.mxu0 %v853_v32  ;;  %1066 = vmatprep.subr.bf16.mxu1 %v855_v1  ;;  %v907_v32 = vld [vmem:[#allocation3 + $0x2d8] sm:$0xff]  ;;  %v904_v1 = vld [vmem:[#allocation3 + $0x2c0] sm:$0xff] }
 0x215   :  { %985 = vmatpush1.bf16.msra.mxu0 %v852_v35  ;;  %1067 = vmatpush1.bf16.msra.mxu1 %v854_v15  ;;  %v906_v35 = vld [vmem:[#allocation3 + $0x2d0] sm:$0xff]  ;;  %v909_v15 = vld [vmem:[#allocation3 + $0x2e8] sm:$0xff] }
 0x216   :  { %986 = vmatprep.subr.bf16.mxu0 %v857_v36  ;;  %1068 = vmatprep.subr.bf16.mxu1 %v859_v37  ;;  %v911_v36 = vld [vmem:[#allocation3 + $0x2f8] sm:$0xff]  ;;  %v908_v37 = vld [vmem:[#allocation3 + $0x2e0] sm:$0xff] }
 0x219   :  { %987 = vmatpush1.bf16.msra.mxu0 %v856_v38  ;;  %1069 = vmatpush1.bf16.msra.mxu1 %v858_v41  ;;  %v910_v38 = vld [vmem:[#allocation3 + $0x2f0] sm:$0xff]  ;;  %v913_v41 = vld [vmem:[#allocation3 + $0x308] sm:$0xff] }
 0x21a   :  { %988 = vmatprep.subr.bf16.mxu0 %v861_v42  ;;  %1070 = vmatprep.subr.bf16.mxu1 %v863_v43  ;;  %v915_v42 = vld [vmem:[#allocation3 + $0x318] sm:$0xff]  ;;  %v912_v43 = vld [vmem:[#allocation3 + $0x300] sm:$0xff] }
 0x21d   :  { %989 = vmatpush1.bf16.msra.mxu0 %v860_v45  ;;  %1071 = vmatpush1.bf16.msra.mxu1 %v862_v46  ;;  %v914_v45 = vld [vmem:[#allocation3 + $0x310] sm:$0xff]  ;;  %v917_v46 = vld [vmem:[#allocation3 + $0x328] sm:$0xff] }
 0x21e   :  { %990 = vmatprep.subr.bf16.mxu0 %v865_v49  ;;  %1072 = vmatprep.subr.bf16.mxu1 %v867_v50  ;;  %v919_v49 = vld [vmem:[#allocation3 + $0x338] sm:$0xff]  ;;  %v916_v50 = vld [vmem:[#allocation3 + $0x320] sm:$0xff] }
 0x221   :  { %991 = vmatpush1.bf16.msra.mxu0 %v864_v51  ;;  %1073 = vmatpush1.bf16.msra.mxu1 %v866_v54  ;;  %v918_v51 = vld [vmem:[#allocation3 + $0x330] sm:$0xff]  ;;  %v921_v54 = vld [vmem:[#allocation3 + $0x348] sm:$0xff] }
 0x222   :  { %992 = vmatprep.subr.bf16.mxu0 %v869_v55  ;;  %1074 = vmatprep.subr.bf16.mxu1 %v871_v56  ;;  %v923_v55 = vld [vmem:[#allocation3 + $0x358] sm:$0xff]  ;;  %v920_v56 = vld [vmem:[#allocation3 + $0x340] sm:$0xff] }
 0x225   :  { %993 = vmatpush1.bf16.msra.mxu0 %v868_v57  ;;  %1075 = vmatpush1.bf16.msra.mxu1 %v870_v58  ;;  %v922_v57 = vld [vmem:[#allocation3 + $0x350] sm:$0xff]  ;;  %v925_v58 = vld [vmem:[#allocation3 + $0x368] sm:$0xff] }
 0x226   :  { %994 = vmatprep.subr.bf16.mxu0 %v873_v59  ;;  %1076 = vmatprep.subr.bf16.mxu1 %v875_v60  ;;  %v927_v59 = vld [vmem:[#allocation3 + $0x378] sm:$0xff]  ;;  %v924_v60 = vld [vmem:[#allocation3 + $0x360] sm:$0xff] }
 0x229   :  { %995 = vmatpush1.bf16.msra.mxu0 %v872_v61  ;;  %1077 = vmatpush1.bf16.msra.mxu1 %v874_v62  ;;  %v926_v61 = vld [vmem:[#allocation3 + $0x370] sm:$0xff]  ;;  %v929_v62 = vld [vmem:[#allocation3 + $0x388] sm:$0xff] }
 0x22a   :  { %996 = vmatprep.subr.bf16.mxu0 %v877_v63  ;;  %1078 = vmatprep.subr.bf16.mxu1 %v879_v2  ;;  %v931_v63 = vld [vmem:[#allocation3 + $0x398] sm:$0xff]  ;;  %v928_v2 = vld [vmem:[#allocation3 + $0x380] sm:$0xff] }
 0x22d   :  { %997 = vmatpush1.bf16.msra.mxu0 %v876_v3  ;;  %1079 = vmatpush1.bf16.msra.mxu1 %v878_v4  ;;  %v930_v3 = vld [vmem:[#allocation3 + $0x390] sm:$0xff]  ;;  %v933_v4 = vld [vmem:[#allocation3 + $0x3a8] sm:$0xff] }
 0x22e   :  { %1007 = vmatprep.subr.bf16.mxu0 %v881_v6  ;;  %1089 = vmatprep.subr.bf16.mxu1 %v883_v8  ;;  %v935_v6 = vld [vmem:[#allocation3 + $0x3b8] sm:$0xff]  ;;  %v932_v8 = vld [vmem:[#allocation3 + $0x3a0] sm:$0xff] }
 0x230   :  { %999 = vmatmul.mubr.bf16.vlgmr.msra.gmra.mrb[4].mxu0 %v3556_v9  ;;  %1081 = vmatmul.mubr.bf16.vlgmr.msra.gmra.mrb[4].mxu1 %v3556_v9 }
 0x231   :  { %1008 = vmatpush1.bf16.msra.mxu0 %v880_v10  ;;  %1090 = vmatpush1.bf16.msra.mxu1 %v882_v12  ;;  %v934_v10 = vld [vmem:[#allocation3 + $0x3b0] sm:$0xff]  ;;  %v937_v12 = vld [vmem:[#allocation3 + $0x3c8] sm:$0xff] }
 0x232   :  { %1009 = vmatprep.subr.bf16.mxu0 %v885_v13  ;;  %1091 = vmatprep.subr.bf16.mxu1 %v887_v14  ;;  %v939_v13 = vld [vmem:[#allocation3 + $0x3d8] sm:$0xff]  ;;  %v936_v14 = vld [vmem:[#allocation3 + $0x3c0] sm:$0xff] }
 0x233   :  { %1039 = vmatprep.mubr.bf16.mxu0 %v3561_v16  ;;  %1121 = vmatprep.mubr.bf16.mxu1 %v3561_v16 }
 0x235   :  { %1010 = vmatpush1.bf16.msra.mxu0 %v884_v39  ;;  %1092 = vmatpush1.bf16.msra.mxu1 %v886_v47  ;;  %v938_v39 = vld [vmem:[#allocation3 + $0x3d0] sm:$0xff]  ;;  %v941_v47 = vld [vmem:[#allocation3 + $0x3e8] sm:$0xff] }
 0x236   :  { %1011 = vmatprep.subr.bf16.mxu0 %v889_v17  ;;  %1093 = vmatprep.subr.bf16.mxu1 %v891_v18  ;;  %v943_v17 = vld [vmem:[#allocation3 + $0x3f8] sm:$0xff]  ;;  %v940_v18 = vld [vmem:[#allocation3 + $0x3e0] sm:$0xff] }
 0x239   :  { %1012 = vmatpush1.bf16.msra.mxu0 %v888_v44  ;;  %1094 = vmatpush1.bf16.msra.mxu1 %v890_v52  ;;  %v942_v44 = vld [vmem:[#allocation3 + $0x3f0] sm:$0xff]  ;;  %v3570_v52 = vpack.c.bf16 %v806_v48, %v806_v48 }
 0x23a   :  { %1013 = vmatprep.subr.bf16.mxu0 %v893_v19  ;;  %1095 = vmatprep.subr.bf16.mxu1 %v895_v0  ;;  %v944_v19 = vld [vmem:[%s3792_s1 + $0x4] sm:$0xf] }
 0x23b   :  { %v949_v0 = vrot.slane %v944_v19, %v3522_v30  ;;  %v961_v40 = vrot.slane %v944_v19, %v3534_v34 }
 0x23d   :  { %1014 = vmatpush1.bf16.msra.mxu0 %v892_v20  ;;  %1096 = vmatpush1.bf16.msra.mxu1 %v894_v21  ;;  %v957_v20 = vrot.slane %v944_v19, %v3525_v31  ;;  %v953_v21 = vrot.slane %v944_v19, %v3531_v33 }
 0x23e   :  { %1015 = vmatprep.subr.bf16.mxu0 %v897_v22  ;;  %1097 = vmatprep.subr.bf16.mxu1 %v899_v23 }
 0x241   :  { %1016 = vmatpush1.bf16.msra.mxu0 %v896_v24  ;;  %1098 = vmatpush1.bf16.msra.mxu1 %v898_v25 }
 0x242   :  { %1017 = vmatprep.subr.bf16.mxu0 %v901_v26  ;;  %1099 = vmatprep.subr.bf16.mxu1 %v903_v27 }
 0x245   :  { %1018 = vmatpush1.bf16.msra.mxu0 %v900_v28  ;;  %1100 = vmatpush1.bf16.msra.mxu1 %v902_v29 }
 0x246   :  { %1019 = vmatprep.subr.bf16.mxu0 %v905_v11  ;;  %1101 = vmatprep.subr.bf16.mxu1 %v907_v32 }
 0x249   :  { %1020 = vmatpush1.bf16.msra.mxu0 %v904_v1  ;;  %1102 = vmatpush1.bf16.msra.mxu1 %v906_v35 }
 0x24a   :  { %1021 = vmatprep.subr.bf16.mxu0 %v909_v15  ;;  %1103 = vmatprep.subr.bf16.mxu1 %v911_v36 }
 0x24d   :  { %1022 = vmatpush1.bf16.msra.mxu0 %v908_v37  ;;  %1104 = vmatpush1.bf16.msra.mxu1 %v910_v38 }
 0x24e   :  { %1023 = vmatprep.subr.bf16.mxu0 %v913_v41  ;;  %1105 = vmatprep.subr.bf16.mxu1 %v915_v42 }
 0x251   :  { %1024 = vmatpush1.bf16.msra.mxu0 %v912_v43  ;;  %1106 = vmatpush1.bf16.msra.mxu1 %v914_v45 }
 0x252   :  { %1025 = vmatprep.subr.bf16.mxu0 %v917_v46  ;;  %1107 = vmatprep.subr.bf16.mxu1 %v919_v49 }
 0x255   :  { %1026 = vmatpush1.bf16.msra.mxu0 %v916_v50  ;;  %1108 = vmatpush1.bf16.msra.mxu1 %v918_v51 }
 0x256   :  { %1027 = vmatprep.subr.bf16.mxu0 %v921_v54  ;;  %1109 = vmatprep.subr.bf16.mxu1 %v923_v55 }
 0x259   :  { %1028 = vmatpush1.bf16.msra.mxu0 %v920_v56  ;;  %1110 = vmatpush1.bf16.msra.mxu1 %v922_v57 }
 0x25a   :  { %1029 = vmatprep.subr.bf16.mxu0 %v925_v58  ;;  %1111 = vmatprep.subr.bf16.mxu1 %v927_v59 }
 0x25d   :  { %1030 = vmatpush1.bf16.msra.mxu0 %v924_v60  ;;  %1112 = vmatpush1.bf16.msra.mxu1 %v926_v61 }
 0x25e   :  { %1031 = vmatprep.subr.bf16.mxu0 %v929_v62  ;;  %1113 = vmatprep.subr.bf16.mxu1 %v931_v63 }
 0x261   :  { %1032 = vmatpush1.bf16.msra.mxu0 %v928_v2  ;;  %1114 = vmatpush1.bf16.msra.mxu1 %v930_v3 }
 0x262   :  { %1033 = vmatprep.subr.bf16.mxu0 %v933_v4  ;;  %1115 = vmatprep.subr.bf16.mxu1 %v935_v6 }
 0x265   :  { %1034 = vmatpush1.bf16.msra.mxu0 %v932_v8  ;;  %1116 = vmatpush1.bf16.msra.mxu1 %v934_v10 }
 0x266   :  { %1035 = vmatprep.subr.bf16.mxu0 %v937_v12  ;;  %1117 = vmatprep.subr.bf16.mxu1 %v939_v13 }
 0x269   :  { %1036 = vmatpush1.bf16.msra.mxu0 %v936_v14  ;;  %1118 = vmatpush1.bf16.msra.mxu1 %v938_v39 }
 0x26a   :  { %1037 = vmatprep.subr.bf16.mxu0 %v941_v47  ;;  %1119 = vmatprep.subr.bf16.mxu1 %v943_v17 }
 0x26d   :  { %1038 = vmatpush1.bf16.msra.mxu0 %v940_v18  ;;  %1120 = vmatpush1.bf16.msra.mxu1 %v942_v44 }
 0x270   :  { %1040 = vmatmul.mubr.bf16.vlgmr.msra.gmra.mrb[4].mxu0 %v3570_v52  ;;  %1122 = vmatmul.mubr.bf16.vlgmr.msra.gmra.mrb[4].mxu1 %v3570_v52 }
 0x343   :  { %v1041_v48 = vpop.f32.mrb[4].mxu0  ;;  %v1123_v22 = vpop.f32.mrb[4].mxu1 }
 0x344   :  { %v3581_v23 = vadd.f32 %v1041_v48, %v949_v0  ;;  %v3583_v24 = vadd.f32 %v1123_v22, %v957_v20  ;;  %v1043_v25 = vpop.f32.mrb[5].mxu0  ;;  %v1125_v26 = vpop.f32.mrb[5].mxu1 }
 0x345   :  { %v3191_v27 = vadd.f32 %v1043_v25, %v953_v21  ;;  %v3585_v28 = vadd.f32 %v1125_v26, %v961_v40  ;;  %v1045_v29 = vpop.f32.mrb[6].mxu0  ;;  %v1127_v11 = vpop.f32.mrb[6].mxu1 }
 0x346   :  { %v1130_v32 = vmax.f32 %v3581_v23, 0.0  ;;  %v1132_v1 = vmax.f32 %v3583_v24, 0.0  ;;  %v1046_v35 = vpop.f32.mrb[7].mxu0  ;;  %v1128_v15 = vpop.f32.mrb[7].mxu1 }
 0x347   :  { %v1131_v36 = vmax.f32 %v3191_v27, 0.0  ;;  %v1133_v37 = vmax.f32 %v3585_v28, 0.0 }
 0x348   :  { %3286 = dma.done.wait [#allocation10 + $0x2], 8192 }
 0x349   :  { %3287 = vsyncadd [#allocation10 + $0x2], 4294959104  ;;  %v3590_v38 = vpack.c.bf16 %v1131_v36, %v1131_v36  ;;  %v1142_v41 = vld [vmem:[#allocation4 + $0x8] sm:$0xff]  ;;  %v1141_v42 = vld [vmem:[#allocation4] sm:$0xff]  ;;  %v3596_v0 = vpack.c.bf16 %v1130_v32, %v1130_v32  ;;  %v3601_v20 = vpack.c.bf16 %v1133_v37, %v1133_v37 }
 0x34a   :  { %v1144_v43 = vld [vmem:[#allocation4 + $0x18] sm:$0xff]  ;;  %1217 = vmatprep.subr.bf16.mxu0 %v1142_v41  ;;  %v1143_v45 = vld [vmem:[#allocation4 + $0x10] sm:$0xff]  ;;  %v1146_v46 = vld [vmem:[#allocation4 + $0x28] sm:$0xff] }
 0x34b   :  { %1249 = vmatprep.mubr.bf16.mxu0 %v3590_v38  ;;  %1218 = vmatpush1.bf16.msra.mxu0 %v1141_v42  ;;  %v1145_v49 = vld [vmem:[#allocation4 + $0x20] sm:$0xff]  ;;  %v1148_v50 = vld [vmem:[#allocation4 + $0x38] sm:$0xff]  ;;  %v1147_v51 = vld [vmem:[#allocation4 + $0x30] sm:$0xff] }
 0x34c   :  { %1219 = vmatprep.subr.bf16.mxu0 %v1144_v43  ;;  %v1150_v54 = vld [vmem:[#allocation4 + $0x48] sm:$0xff]  ;;  %v1149_v55 = vld [vmem:[#allocation4 + $0x40] sm:$0xff]  ;;  %v1152_v56 = vld [vmem:[#allocation4 + $0x58] sm:$0xff] }
 0x34d   :  { %v1151_v57 = vld [vmem:[#allocation4 + $0x50] sm:$0xff]  ;;  %v1154_v58 = vld [vmem:[#allocation4 + $0x68] sm:$0xff]  ;;  %v1153_v59 = vld [vmem:[#allocation4 + $0x60] sm:$0xff] }
 0x34e   :  { %v1156_v60 = vld [vmem:[#allocation4 + $0x78] sm:$0xff]  ;;  %v1155_v61 = vld [vmem:[#allocation4 + $0x70] sm:$0xff]  ;;  %v1158_v62 = vld [vmem:[#allocation4 + $0x88] sm:$0xff] }
 0x34f   :  { %1220 = vmatpush1.bf16.msra.mxu0 %v1143_v45  ;;  %v1157_v63 = vld [vmem:[#allocation4 + $0x80] sm:$0xff]  ;;  %v1160_v2 = vld [vmem:[#allocation4 + $0x98] sm:$0xff]  ;;  %v1159_v3 = vld [vmem:[#allocation4 + $0x90] sm:$0xff] }
 0x350   :  { %1221 = vmatprep.subr.bf16.mxu0 %v1146_v46  ;;  %v1162_v4 = vld [vmem:[#allocation4 + $0xa8] sm:$0xff]  ;;  %v1161_v6 = vld [vmem:[#allocation4 + $0xa0] sm:$0xff]  ;;  %v1164_v8 = vld [vmem:[#allocation4 + $0xb8] sm:$0xff] }
 0x351   :  { %v1163_v10 = vld [vmem:[#allocation4 + $0xb0] sm:$0xff]  ;;  %v1166_v12 = vld [vmem:[#allocation4 + $0xc8] sm:$0xff]  ;;  %v1165_v13 = vld [vmem:[#allocation4 + $0xc0] sm:$0xff] }
 0x352   :  { %v1168_v14 = vld [vmem:[#allocation4 + $0xd8] sm:$0xff]  ;;  %v1167_v39 = vld [vmem:[#allocation4 + $0xd0] sm:$0xff]  ;;  %v1170_v47 = vld [vmem:[#allocation4 + $0xe8] sm:$0xff] }
 0x353   :  { %1222 = vmatpush1.bf16.msra.mxu0 %v1145_v49  ;;  %v1169_v17 = vld [vmem:[#allocation4 + $0xe0] sm:$0xff]  ;;  %v1172_v18 = vld [vmem:[#allocation4 + $0xf8] sm:$0xff]  ;;  %v1171_v44 = vld [vmem:[#allocation4 + $0xf0] sm:$0xff] }
 0x354   :  { %1223 = vmatprep.subr.bf16.mxu0 %v1148_v50  ;;  %v1174_v19 = vld [vmem:[#allocation4 + $0x108] sm:$0xff]  ;;  %v1173_v21 = vld [vmem:[#allocation4 + $0x100] sm:$0xff]  ;;  %v1176_v40 = vld [vmem:[#allocation4 + $0x118] sm:$0xff] }
 0x355   :  { %v1175_v48 = vld [vmem:[#allocation4 + $0x110] sm:$0xff]  ;;  %v1178_v22 = vld [vmem:[#allocation4 + $0x128] sm:$0xff]  ;;  %v1177_v23 = vld [vmem:[#allocation4 + $0x120] sm:$0xff] }
 0x356   :  { %v1180_v25 = vld [vmem:[#allocation4 + $0x138] sm:$0xff]  ;;  %v1179_v26 = vld [vmem:[#allocation4 + $0x130] sm:$0xff]  ;;  %v1182_v27 = vld [vmem:[#allocation4 + $0x148] sm:$0xff] }
 0x357   :  { %1224 = vmatpush1.bf16.msra.mxu0 %v1147_v51  ;;  %v1181_v28 = vld [vmem:[#allocation4 + $0x140] sm:$0xff]  ;;  %v1184_v29 = vld [vmem:[#allocation4 + $0x158] sm:$0xff]  ;;  %v1183_v11 = vld [vmem:[#allocation4 + $0x150] sm:$0xff] }
 0x358   :  { %1225 = vmatprep.subr.bf16.mxu0 %v1150_v54  ;;  %v1186_v32 = vld [vmem:[#allocation4 + $0x168] sm:$0xff]  ;;  %v1185_v35 = vld [vmem:[#allocation4 + $0x160] sm:$0xff]  ;;  %v1188_v15 = vld [vmem:[#allocation4 + $0x178] sm:$0xff] }
 0x359   :  { %v1187_v36 = vld [vmem:[#allocation4 + $0x170] sm:$0xff]  ;;  %v1190_v37 = vld [vmem:[#allocation4 + $0x188] sm:$0xff]  ;;  %v1189_v41 = vld [vmem:[#allocation4 + $0x180] sm:$0xff] }
 0x35a   :  { %v1192_v42 = vld [vmem:[#allocation4 + $0x198] sm:$0xff]  ;;  %v1191_v43 = vld [vmem:[#allocation4 + $0x190] sm:$0xff]  ;;  %v1194_v45 = vld [vmem:[#allocation4 + $0x1a8] sm:$0xff] }
 0x35b   :  { %1226 = vmatpush1.bf16.msra.mxu0 %v1149_v55  ;;  %v1193_v46 = vld [vmem:[#allocation4 + $0x1a0] sm:$0xff]  ;;  %v1196_v49 = vld [vmem:[#allocation4 + $0x1b8] sm:$0xff]  ;;  %v1195_v50 = vld [vmem:[#allocation4 + $0x1b0] sm:$0xff] }
 0x35c   :  { %1227 = vmatprep.subr.bf16.mxu0 %v1152_v56  ;;  %v1198_v51 = vld [vmem:[#allocation4 + $0x1c8] sm:$0xff]  ;;  %v1197_v54 = vld [vmem:[#allocation4 + $0x1c0] sm:$0xff]  ;;  %v1200_v55 = vld [vmem:[#allocation4 + $0x1d8] sm:$0xff] }
 0x35d   :  { %v1199_v56 = vld [vmem:[#allocation4 + $0x1d0] sm:$0xff] }
 0x35f   :  { %1228 = vmatpush1.bf16.msra.mxu0 %v1151_v57  ;;  %v1202_v57 = vld [vmem:[#allocation4 + $0x1e8] sm:$0xff] }
 0x360   :  { %1229 = vmatprep.subr.bf16.mxu0 %v1154_v58  ;;  %v1201_v58 = vld [vmem:[#allocation4 + $0x1e0] sm:$0xff] }
 0x363   :  { %1230 = vmatpush1.bf16.msra.mxu0 %v1153_v59  ;;  %v1204_v59 = vld [vmem:[#allocation4 + $0x1f8] sm:$0xff] }
 0x364   :  { %1231 = vmatprep.subr.bf16.mxu0 %v1156_v60  ;;  %v1203_v60 = vld [vmem:[#allocation4 + $0x1f0] sm:$0xff] }
 0x367   :  { %1232 = vmatpush1.bf16.msra.mxu0 %v1155_v61  ;;  %v3608_v61 = vpack.c.bf16 %v1132_v1, %v1132_v1 }
 0x368   :  { %1233 = vmatprep.subr.bf16.mxu0 %v1158_v62  ;;  %v1205_v62 = vld [vmem:[%s3792_s1 + $0x8] sm:$0x3] }
 0x36b   :  { %1234 = vmatpush1.bf16.msra.mxu0 %v1157_v63  ;;  %v1210_v63 = vrot.slane %v1205_v62, %v3522_v30 }
 0x36c   :  { %1235 = vmatprep.subr.bf16.mxu0 %v1160_v2  ;;  %v1214_v2 = vrot.slane %v1205_v62, %v3531_v33 }
 0x36f   :  { %1236 = vmatpush1.bf16.msra.mxu0 %v1159_v3 }
 0x370   :  { %1237 = vmatprep.subr.bf16.mxu0 %v1162_v4 }
 0x373   :  { %1238 = vmatpush1.bf16.msra.mxu0 %v1161_v6 }
 0x374   :  { %1239 = vmatprep.subr.bf16.mxu0 %v1164_v8 }
 0x377   :  { %1240 = vmatpush1.bf16.msra.mxu0 %v1163_v10 }
 0x378   :  { %1241 = vmatprep.subr.bf16.mxu0 %v1166_v12 }
 0x37b   :  { %1242 = vmatpush1.bf16.msra.mxu0 %v1165_v13 }
 0x37c   :  { %1243 = vmatprep.subr.bf16.mxu0 %v1168_v14 }
 0x37f   :  { %1244 = vmatpush1.bf16.msra.mxu0 %v1167_v39 }
 0x380   :  { %1245 = vmatprep.subr.bf16.mxu0 %v1170_v47 }
 0x383   :  { %1246 = vmatpush1.bf16.msra.mxu0 %v1169_v17 }
 0x384   :  { %1247 = vmatprep.subr.bf16.mxu0 %v1172_v18 }
 0x387   :  { %1248 = vmatpush1.bf16.msra.mxu0 %v1171_v44 }
 0x388   :  { %1258 = vmatprep.subr.bf16.mxu0 %v1174_v19 }
 0x38a   :  { %1250 = vmatmul.mubr.bf16.vlgmr.msra.gmra.mrb[8].mxu0 %v3596_v0 }
 0x38b   :  { %1259 = vmatpush1.bf16.msra.mxu0 %v1173_v21  ;;  %1290 = vmatprep.mubr.bf16.mxu0 %v3601_v20 }
 0x38c   :  { %1260 = vmatprep.subr.bf16.mxu0 %v1176_v40 }
 0x38f   :  { %1261 = vmatpush1.bf16.msra.mxu0 %v1175_v48 }
 0x390   :  { %1262 = vmatprep.subr.bf16.mxu0 %v1178_v22 }
 0x393   :  { %1263 = vmatpush1.bf16.msra.mxu0 %v1177_v23 }
 0x394   :  { %1264 = vmatprep.subr.bf16.mxu0 %v1180_v25 }
 0x397   :  { %1265 = vmatpush1.bf16.msra.mxu0 %v1179_v26 }
 0x398   :  { %1266 = vmatprep.subr.bf16.mxu0 %v1182_v27 }
 0x39b   :  { %1267 = vmatpush1.bf16.msra.mxu0 %v1181_v28 }
 0x39c   :  { %1268 = vmatprep.subr.bf16.mxu0 %v1184_v29 }
 0x39f   :  { %1269 = vmatpush1.bf16.msra.mxu0 %v1183_v11 }
 0x3a0   :  { %1270 = vmatprep.subr.bf16.mxu0 %v1186_v32 }
 0x3a3   :  { %1271 = vmatpush1.bf16.msra.mxu0 %v1185_v35 }
 0x3a4   :  { %1272 = vmatprep.subr.bf16.mxu0 %v1188_v15 }
 0x3a7   :  { %1273 = vmatpush1.bf16.msra.mxu0 %v1187_v36 }
 0x3a8   :  { %1274 = vmatprep.subr.bf16.mxu0 %v1190_v37 }
 0x3ab   :  { %1275 = vmatpush1.bf16.msra.mxu0 %v1189_v41 }
 0x3ac   :  { %1276 = vmatprep.subr.bf16.mxu0 %v1192_v42 }
 0x3af   :  { %1277 = vmatpush1.bf16.msra.mxu0 %v1191_v43 }
 0x3b0   :  { %1278 = vmatprep.subr.bf16.mxu0 %v1194_v45 }
 0x3b3   :  { %1279 = vmatpush1.bf16.msra.mxu0 %v1193_v46 }
 0x3b4   :  { %1280 = vmatprep.subr.bf16.mxu0 %v1196_v49 }
 0x3b7   :  { %1281 = vmatpush1.bf16.msra.mxu0 %v1195_v50 }
 0x3b8   :  { %1282 = vmatprep.subr.bf16.mxu0 %v1198_v51 }
 0x3bb   :  { %1283 = vmatpush1.bf16.msra.mxu0 %v1197_v54 }
 0x3bc   :  { %1284 = vmatprep.subr.bf16.mxu0 %v1200_v55 }
 0x3bf   :  { %1285 = vmatpush1.bf16.msra.mxu0 %v1199_v56 }
 0x3c0   :  { %1286 = vmatprep.subr.bf16.mxu0 %v1202_v57 }
 0x3c3   :  { %1287 = vmatpush1.bf16.msra.mxu0 %v1201_v58 }
 0x3c4   :  { %1288 = vmatprep.subr.bf16.mxu0 %v1204_v59 }
 0x3c7   :  { %1289 = vmatpush1.bf16.msra.mxu0 %v1203_v60 }
 0x3ca   :  { %1291 = vmatmul.mubr.bf16.vlgmr.msra.gmra.mrb[8].mxu0 %v3608_v61 }
 0x49d   :  { %v1292_v3 = vpop.f32.mrb[8].mxu0 }
 0x49e   :  { %v3616_v4 = vadd.f32 %v1292_v3, %v1210_v63  ;;  %v1294_v6 = vpop.f32.mrb[9].mxu0 }
 0x49f   :  { %v3195_v8 = vadd.f32 %v1294_v6, %v1214_v2  ;;  %v1296_v24 = vpop.f32.mrb[10].mxu0 }
 0x4a0   :  { %v1299_v1 = vmax.f32 %v3616_v4, 0.0  ;;  %v1297_v10 = vpop.f32.mrb[11].mxu0 }
 0x4a1   :  { %v1300_v12 = vmax.f32 %v3195_v8, 0.0 }
 0x4a2   :  { %3288 = dma.done.wait [#allocation10 + $0x3], 8192 }
 0x4a3   :  { %3289 = vsyncadd [#allocation10 + $0x3], 4294959104  ;;  %v3619_v13 = vpack.c.bf16 %v1300_v12, %v1300_v12  ;;  %v1308_v14 = vld [vmem:[#allocation5 + $0x8] sm:$0xff]  ;;  %v1307_v39 = vld [vmem:[#allocation5] sm:$0xff]  ;;  %v3625_v56 = vpack.c.bf16 %v1299_v1, %v1299_v1 }
 0x4a4   :  { %v1312_v47 = vld [vmem:[#allocation5 + $0x28] sm:$0xff]  ;;  %1393 = vmatprep.subr.bf16.mxu1 %v1308_v14  ;;  %v1311_v17 = vld [vmem:[#allocation5 + $0x20] sm:$0xff]  ;;  %v1310_v55 = vld [vmem:[#allocation5 + $0x18] sm:$0xff] }
 0x4a5   :  { %1425 = vmatprep.mubr.bf16.mxu1 %v3619_v13  ;;  %1394 = vmatpush1.bf16.msra.mxu1 %v1307_v39  ;;  %v1316_v18 = vld [vmem:[#allocation5 + $0x48] sm:$0xff]  ;;  %v1315_v44 = vld [vmem:[#allocation5 + $0x40] sm:$0xff]  ;;  %v1309_v57 = vld [vmem:[#allocation5 + $0x10] sm:$0xff] }
 0x4a6   :  { %1395 = vmatprep.subr.bf16.mxu1 %v1312_v47  ;;  %v1320_v19 = vld [vmem:[#allocation5 + $0x68] sm:$0xff]  ;;  %v1319_v21 = vld [vmem:[#allocation5 + $0x60] sm:$0xff]  ;;  %v1314_v58 = vld [vmem:[#allocation5 + $0x38] sm:$0xff] }
 0x4a7   :  { %v1324_v40 = vld [vmem:[#allocation5 + $0x88] sm:$0xff]  ;;  %v1323_v48 = vld [vmem:[#allocation5 + $0x80] sm:$0xff]  ;;  %v1313_v59 = vld [vmem:[#allocation5 + $0x30] sm:$0xff] }
 0x4a8   :  { %v1328_v22 = vld [vmem:[#allocation5 + $0xa8] sm:$0xff]  ;;  %v1327_v23 = vld [vmem:[#allocation5 + $0xa0] sm:$0xff]  ;;  %v1318_v60 = vld [vmem:[#allocation5 + $0x58] sm:$0xff] }
 0x4a9   :  { %1396 = vmatpush1.bf16.msra.mxu1 %v1311_v17  ;;  %v1332_v25 = vld [vmem:[#allocation5 + $0xc8] sm:$0xff]  ;;  %v1331_v26 = vld [vmem:[#allocation5 + $0xc0] sm:$0xff]  ;;  %v1317_v62 = vld [vmem:[#allocation5 + $0x50] sm:$0xff] }
 0x4aa   :  { %1397 = vmatprep.subr.bf16.mxu1 %v1316_v18  ;;  %v1336_v27 = vld [vmem:[#allocation5 + $0xe8] sm:$0xff]  ;;  %v1335_v28 = vld [vmem:[#allocation5 + $0xe0] sm:$0xff]  ;;  %v1322_v63 = vld [vmem:[#allocation5 + $0x78] sm:$0xff] }
 0x4ab   :  { %v1340_v29 = vld [vmem:[#allocation5 + $0x108] sm:$0xff]  ;;  %v1339_v11 = vld [vmem:[#allocation5 + $0x100] sm:$0xff]  ;;  %v1321_v2 = vld [vmem:[#allocation5 + $0x70] sm:$0xff] }
 0x4ac   :  { %v1344_v32 = vld [vmem:[#allocation5 + $0x128] sm:$0xff]  ;;  %v1343_v35 = vld [vmem:[#allocation5 + $0x120] sm:$0xff]  ;;  %v1326_v3 = vld [vmem:[#allocation5 + $0x98] sm:$0xff] }
 0x4ad   :  { %1398 = vmatpush1.bf16.msra.mxu1 %v1315_v44  ;;  %v1348_v15 = vld [vmem:[#allocation5 + $0x148] sm:$0xff]  ;;  %v1347_v36 = vld [vmem:[#allocation5 + $0x140] sm:$0xff]  ;;  %v1325_v4 = vld [vmem:[#allocation5 + $0x90] sm:$0xff] }
 0x4ae   :  { %1399 = vmatprep.subr.bf16.mxu1 %v1320_v19  ;;  %v1352_v37 = vld [vmem:[#allocation5 + $0x168] sm:$0xff]  ;;  %v1351_v41 = vld [vmem:[#allocation5 + $0x160] sm:$0xff]  ;;  %v1330_v6 = vld [vmem:[#allocation5 + $0xb8] sm:$0xff] }
 0x4af   :  { %v1356_v42 = vld [vmem:[#allocation5 + $0x188] sm:$0xff]  ;;  %v1355_v43 = vld [vmem:[#allocation5 + $0x180] sm:$0xff]  ;;  %v1329_v8 = vld [vmem:[#allocation5 + $0xb0] sm:$0xff] }
 0x4b0   :  { %v1360_v45 = vld [vmem:[#allocation5 + $0x1a8] sm:$0xff]  ;;  %v1359_v46 = vld [vmem:[#allocation5 + $0x1a0] sm:$0xff]  ;;  %v1334_v24 = vld [vmem:[#allocation5 + $0xd8] sm:$0xff] }
 0x4b1   :  { %1400 = vmatpush1.bf16.msra.mxu1 %v1319_v21  ;;  %v1364_v49 = vld [vmem:[#allocation5 + $0x1c8] sm:$0xff]  ;;  %v1363_v50 = vld [vmem:[#allocation5 + $0x1c0] sm:$0xff]  ;;  %v1333_v1 = vld [vmem:[#allocation5 + $0xd0] sm:$0xff] }
 0x4b2   :  { %1401 = vmatprep.subr.bf16.mxu1 %v1324_v40  ;;  %v1368_v51 = vld [vmem:[#allocation5 + $0x1e8] sm:$0xff]  ;;  %v1367_v54 = vld [vmem:[#allocation5 + $0x1e0] sm:$0xff]  ;;  %v1338_v10 = vld [vmem:[#allocation5 + $0xf8] sm:$0xff] }
 0x4b3   :  { %v1337_v12 = vld [vmem:[#allocation5 + $0xf0] sm:$0xff]  ;;  %v1346_v39 = vld [vmem:[#allocation5 + $0x138] sm:$0xff] }
 0x4b4   :  { %v1341_v14 = vld [vmem:[#allocation5 + $0x110] sm:$0xff]  ;;  %v1350_v17 = vld [vmem:[#allocation5 + $0x158] sm:$0xff] }
 0x4b5   :  { %1402 = vmatpush1.bf16.msra.mxu1 %v1323_v48  ;;  %v1345_v47 = vld [vmem:[#allocation5 + $0x130] sm:$0xff]  ;;  %v1354_v44 = vld [vmem:[#allocation5 + $0x178] sm:$0xff] }
 0x4b6   :  { %1403 = vmatprep.subr.bf16.mxu1 %v1328_v22  ;;  %v1349_v18 = vld [vmem:[#allocation5 + $0x150] sm:$0xff]  ;;  %v1358_v21 = vld [vmem:[#allocation5 + $0x198] sm:$0xff] }
 0x4b7   :  { %v1353_v19 = vld [vmem:[#allocation5 + $0x170] sm:$0xff]  ;;  %v1362_v48 = vld [vmem:[#allocation5 + $0x1b8] sm:$0xff] }
 0x4b8   :  { %v1357_v40 = vld [vmem:[#allocation5 + $0x190] sm:$0xff] }
 0x4b9   :  { %1404 = vmatpush1.bf16.msra.mxu1 %v1327_v23  ;;  %v1361_v22 = vld [vmem:[#allocation5 + $0x1b0] sm:$0xff]  ;;  %v1366_v23 = vld [vmem:[#allocation5 + $0x1d8] sm:$0xff] }
 0x4ba   :  { %1405 = vmatprep.subr.bf16.mxu1 %v1332_v25  ;;  %v1365_v25 = vld [vmem:[#allocation5 + $0x1d0] sm:$0xff] }
 0x4bd   :  { %1406 = vmatpush1.bf16.msra.mxu1 %v1331_v26  ;;  %v1370_v26 = vld [vmem:[#allocation5 + $0x1f8] sm:$0xff] }
 0x4be   :  { %1407 = vmatprep.subr.bf16.mxu1 %v1336_v27  ;;  %v1369_v27 = vld [vmem:[#allocation5 + $0x1f0] sm:$0xff] }
 0x4c1   :  { %1408 = vmatpush1.bf16.msra.mxu1 %v1335_v28  ;;  %v1371_v28 = vld [vmem:[%s3792_s1 + $0xa] sm:$0xf] }
 0x4c2   :  { %1409 = vmatprep.subr.bf16.mxu1 %v1340_v29  ;;  %v1376_v29 = vrot.slane %v1371_v28, %v3522_v30 }
 0x4c5   :  { %1410 = vmatpush1.bf16.msra.mxu1 %v1339_v11  ;;  %v1380_v11 = vrot.slane %v1371_v28, %v3531_v33 }
 0x4c6   :  { %1411 = vmatprep.subr.bf16.mxu1 %v1344_v32 }
 0x4c9   :  { %1412 = vmatpush1.bf16.msra.mxu1 %v1343_v35 }
 0x4ca   :  { %1413 = vmatprep.subr.bf16.mxu1 %v1348_v15 }
 0x4cd   :  { %1414 = vmatpush1.bf16.msra.mxu1 %v1347_v36 }
 0x4ce   :  { %1415 = vmatprep.subr.bf16.mxu1 %v1352_v37 }
 0x4d1   :  { %1416 = vmatpush1.bf16.msra.mxu1 %v1351_v41 }
 0x4d2   :  { %1417 = vmatprep.subr.bf16.mxu1 %v1356_v42 }
 0x4d5   :  { %1418 = vmatpush1.bf16.msra.mxu1 %v1355_v43 }
 0x4d6   :  { %1419 = vmatprep.subr.bf16.mxu1 %v1360_v45  ;;  %v1384_v45 = vrot.slane %v1371_v28, %v3525_v31 }
 0x4d9   :  { %1420 = vmatpush1.bf16.msra.mxu1 %v1359_v46  ;;  %v1388_v46 = vrot.slane %v1371_v28, %v3534_v34 }
 0x4da   :  { %1421 = vmatprep.subr.bf16.mxu1 %v1364_v49 }
 0x4dd   :  { %1422 = vmatpush1.bf16.msra.mxu1 %v1363_v50 }
 0x4de   :  { %1423 = vmatprep.subr.bf16.mxu1 %v1368_v51 }
 0x4e1   :  { %1424 = vmatpush1.bf16.msra.mxu1 %v1367_v54 }
 0x4e2   :  { %1434 = vmatprep.subr.bf16.mxu1 %v1310_v55 }
 0x4e4   :  { %1426 = vmatmul.mubr.bf16.vlgmr.msra.gmra.mrb[8].mxu1 %v3625_v56 }
 0x4e5   :  { %1435 = vmatpush1.bf16.msra.mxu1 %v1309_v57  ;;  %1466 = vmatprep.mubr.bf16.mxu1 %v3619_v13  ;;  %v1342_v13 = vld [vmem:[#allocation5 + $0x118] sm:$0xff] }
 0x4e6   :  { %1436 = vmatprep.subr.bf16.mxu1 %v1314_v58 }
 0x4e9   :  { %1437 = vmatpush1.bf16.msra.mxu1 %v1313_v59 }
 0x4ea   :  { %1438 = vmatprep.subr.bf16.mxu1 %v1318_v60 }
 0x4ed   :  { %1439 = vmatpush1.bf16.msra.mxu1 %v1317_v62 }
 0x4ee   :  { %1440 = vmatprep.subr.bf16.mxu1 %v1322_v63 }
 0x4f1   :  { %1441 = vmatpush1.bf16.msra.mxu1 %v1321_v2 }
 0x4f2   :  { %1442 = vmatprep.subr.bf16.mxu1 %v1326_v3 }
 0x4f5   :  { %1443 = vmatpush1.bf16.msra.mxu1 %v1325_v4 }
 0x4f6   :  { %1444 = vmatprep.subr.bf16.mxu1 %v1330_v6 }
 0x4f9   :  { %1445 = vmatpush1.bf16.msra.mxu1 %v1329_v8 }
 0x4fa   :  { %1446 = vmatprep.subr.bf16.mxu1 %v1334_v24 }
 0x4fd   :  { %1447 = vmatpush1.bf16.msra.mxu1 %v1333_v1 }
 0x4fe   :  { %1448 = vmatprep.subr.bf16.mxu1 %v1338_v10 }
 0x501   :  { %1449 = vmatpush1.bf16.msra.mxu1 %v1337_v12 }
 0x502   :  { %1450 = vmatprep.subr.bf16.mxu1 %v1342_v13 }
 0x505   :  { %1451 = vmatpush1.bf16.msra.mxu1 %v1341_v14 }
 0x506   :  { %1452 = vmatprep.subr.bf16.mxu1 %v1346_v39 }
 0x509   :  { %1453 = vmatpush1.bf16.msra.mxu1 %v1345_v47 }
 0x50a   :  { %1454 = vmatprep.subr.bf16.mxu1 %v1350_v17 }
 0x50d   :  { %1455 = vmatpush1.bf16.msra.mxu1 %v1349_v18 }
 0x50e   :  { %1456 = vmatprep.subr.bf16.mxu1 %v1354_v44 }
 0x511   :  { %1457 = vmatpush1.bf16.msra.mxu1 %v1353_v19 }
 0x512   :  { %1458 = vmatprep.subr.bf16.mxu1 %v1358_v21 }
 0x515   :  { %1459 = vmatpush1.bf16.msra.mxu1 %v1357_v40 }
 0x516   :  { %1460 = vmatprep.subr.bf16.mxu1 %v1362_v48 }
 0x519   :  { %1461 = vmatpush1.bf16.msra.mxu1 %v1361_v22 }
 0x51a   :  { %1462 = vmatprep.subr.bf16.mxu1 %v1366_v23 }
 0x51d   :  { %1463 = vmatpush1.bf16.msra.mxu1 %v1365_v25 }
 0x51e   :  { %1464 = vmatprep.subr.bf16.mxu1 %v1370_v26 }
 0x521   :  { %1465 = vmatpush1.bf16.msra.mxu1 %v1369_v27 }
 0x524   :  { %1467 = vmatmul.mubr.bf16.vlgmr.msra.gmra.mrb[12].mxu1 %v3625_v56 }
 0x5b7   :  { %v1427_v32 = vpop.f32.mrb[8].mxu1 }
 0x5b8   :  { %v3635_v35 = vadd.f32 %v1427_v32, %v1376_v29  ;;  %v1429_v15 = vpop.f32.mrb[9].mxu1 }
 0x5b9   :  { %v3637_v36 = vadd.f32 %v1429_v15, %v1380_v11  ;;  %v1431_v37 = vpop.f32.mrb[10].mxu1 }
 0x5ba   :  { %v1475_v41 = vmax.f32 %v3635_v35, 0.0  ;;  %v1432_v42 = vpop.f32.mrb[11].mxu1 }
 0x5bb   :  { %v1476_v43 = vmax.f32 %v3637_v36, 0.0 }
 0x5f7   :  { %v1468_v49 = vpop.f32.mrb[12].mxu1 }
 0x5f8   :  { %v3643_v50 = vadd.f32 %v1468_v49, %v1384_v45  ;;  %v1470_v51 = vpop.f32.mrb[13].mxu1 }
 0x5f9   :  { %v3645_v54 = vadd.f32 %v1470_v51, %v1388_v46  ;;  %v1472_v55 = vpop.f32.mrb[14].mxu1 }
 0x5fa   :  { %v1477_v56 = vmax.f32 %v3643_v50, 0.0  ;;  %v1473_v57 = vpop.f32.mrb[15].mxu1 }
 0x5fb   :  { %v1478_v58 = vmax.f32 %v3645_v54, 0.0 }
 0x5fc   :  { %3290 = dma.done.wait [#allocation10 + $0x4], 16384 }
 0x5fd   :  { %3291 = vsyncadd [#allocation10 + $0x4], 4294950912 }
 0x5fe   :  { %3292 = dma.done.wait [#allocation10 + $0x5], 16384 }
 0x5ff   :  { %3293 = vsyncadd [#allocation10 + $0x5], 4294950912  ;;  %1775 = vmatprep.mubr.bf16.mxu0 %v3590_v38  ;;  %1816 = vmatprep.mubr.bf16.mxu1 %v3601_v20  ;;  %v1616_v59 = vld [vmem:[#allocation7 + $0x8] sm:$0xff]  ;;  %v1615_v62 = vld [vmem:[#allocation7] sm:$0xff] }
 0x600   :  { %v1680_v60 = vld [vmem:[#allocation7 + $0x208] sm:$0xff]  ;;  %1743 = vmatprep.subr.bf16.mxu0 %v1616_v59  ;;  %v1679_v63 = vld [vmem:[#allocation7 + $0x200] sm:$0xff]  ;;  %v1493_v35 = vld [vmem:[#allocation6 + $0x30] sm:$0xff] }
 0x601   :  { %1784 = vmatprep.subr.bf16.mxu1 %v1680_v60  ;;  %v1620_v2 = vld [vmem:[#allocation7 + $0x28] sm:$0xff]  ;;  %1744 = vmatpush1.bf16.msra.mxu0 %v1615_v62  ;;  %v1619_v4 = vld [vmem:[#allocation7 + $0x20] sm:$0xff]  ;;  %v1498_v50 = vld [vmem:[#allocation6 + $0x58] sm:$0xff] }
 0x602   :  { %v1684_v3 = vld [vmem:[#allocation7 + $0x228] sm:$0xff]  ;;  %1785 = vmatpush1.bf16.msra.mxu1 %v1679_v63  ;;  %1745 = vmatprep.subr.bf16.mxu0 %v1620_v2  ;;  %v1683_v6 = vld [vmem:[#allocation7 + $0x220] sm:$0xff] }
 0x603   :  { %1786 = vmatprep.subr.bf16.mxu1 %v1684_v3  ;;  %v1624_v8 = vld [vmem:[#allocation7 + $0x48] sm:$0xff]  ;;  %v1623_v1 = vld [vmem:[#allocation7 + $0x40] sm:$0xff] }
 0x604   :  { %v1688_v24 = vld [vmem:[#allocation7 + $0x248] sm:$0xff]  ;;  %v1687_v10 = vld [vmem:[#allocation7 + $0x240] sm:$0xff] }
 0x605   :  { %1746 = vmatpush1.bf16.msra.mxu0 %v1619_v4  ;;  %v1628_v12 = vld [vmem:[#allocation7 + $0x68] sm:$0xff]  ;;  %v1627_v14 = vld [vmem:[#allocation7 + $0x60] sm:$0xff] }
 0x606   :  { %1787 = vmatpush1.bf16.msra.mxu1 %v1683_v6  ;;  %1747 = vmatprep.subr.bf16.mxu0 %v1624_v8  ;;  %v1692_v13 = vld [vmem:[#allocation7 + $0x268] sm:$0xff]  ;;  %v1691_v39 = vld [vmem:[#allocation7 + $0x260] sm:$0xff] }
 0x607   :  { %1788 = vmatprep.subr.bf16.mxu1 %v1688_v24  ;;  %v1632_v47 = vld [vmem:[#allocation7 + $0x88] sm:$0xff]  ;;  %v1631_v18 = vld [vmem:[#allocation7 + $0x80] sm:$0xff] }
 0x608   :  { %v1696_v17 = vld [vmem:[#allocation7 + $0x288] sm:$0xff]  ;;  %v1695_v44 = vld [vmem:[#allocation7 + $0x280] sm:$0xff] }
 0x609   :  { %1748 = vmatpush1.bf16.msra.mxu0 %v1623_v1  ;;  %v1636_v19 = vld [vmem:[#allocation7 + $0xa8] sm:$0xff]  ;;  %v1635_v40 = vld [vmem:[#allocation7 + $0xa0] sm:$0xff] }
 0x60a   :  { %1789 = vmatpush1.bf16.msra.mxu1 %v1687_v10  ;;  %1749 = vmatprep.subr.bf16.mxu0 %v1628_v12  ;;  %v1700_v21 = vld [vmem:[#allocation7 + $0x2a8] sm:$0xff]  ;;  %v1699_v48 = vld [vmem:[#allocation7 + $0x2a0] sm:$0xff] }
 0x60b   :  { %1790 = vmatprep.subr.bf16.mxu1 %v1692_v13  ;;  %v1640_v22 = vld [vmem:[#allocation7 + $0xc8] sm:$0xff]  ;;  %v1639_v25 = vld [vmem:[#allocation7 + $0xc0] sm:$0xff] }
 0x60c   :  { %v1704_v23 = vld [vmem:[#allocation7 + $0x2c8] sm:$0xff]  ;;  %v1703_v26 = vld [vmem:[#allocation7 + $0x2c0] sm:$0xff] }
 0x60d   :  { %1750 = vmatpush1.bf16.msra.mxu0 %v1627_v14  ;;  %v1644_v27 = vld [vmem:[#allocation7 + $0xe8] sm:$0xff]  ;;  %v1643_v29 = vld [vmem:[#allocation7 + $0xe0] sm:$0xff] }
 0x60e   :  { %1791 = vmatpush1.bf16.msra.mxu1 %v1691_v39  ;;  %1751 = vmatprep.subr.bf16.mxu0 %v1632_v47  ;;  %v1708_v28 = vld [vmem:[#allocation7 + $0x2e8] sm:$0xff]  ;;  %v1707_v11 = vld [vmem:[#allocation7 + $0x2e0] sm:$0xff] }
 0x60f   :  { %1792 = vmatprep.subr.bf16.mxu1 %v1696_v17  ;;  %v1648_v32 = vld [vmem:[#allocation7 + $0x108] sm:$0xff]  ;;  %v1647_v37 = vld [vmem:[#allocation7 + $0x100] sm:$0xff] }
 0x610   :  { %v1712_v15 = vld [vmem:[#allocation7 + $0x308] sm:$0xff]  ;;  %v1711_v42 = vld [vmem:[#allocation7 + $0x300] sm:$0xff] }
 0x611   :  { %1752 = vmatpush1.bf16.msra.mxu0 %v1631_v18  ;;  %v1652_v45 = vld [vmem:[#allocation7 + $0x128] sm:$0xff]  ;;  %v1651_v49 = vld [vmem:[#allocation7 + $0x120] sm:$0xff] }
 0x612   :  { %1793 = vmatpush1.bf16.msra.mxu1 %v1695_v44  ;;  %1753 = vmatprep.subr.bf16.mxu0 %v1636_v19  ;;  %v1716_v46 = vld [vmem:[#allocation7 + $0x328] sm:$0xff]  ;;  %v1715_v51 = vld [vmem:[#allocation7 + $0x320] sm:$0xff] }
 0x613   :  { %1794 = vmatprep.subr.bf16.mxu1 %v1700_v21  ;;  %v1656_v55 = vld [vmem:[#allocation7 + $0x148] sm:$0xff]  ;;  %v1655_v59 = vld [vmem:[#allocation7 + $0x140] sm:$0xff] }
 0x614   :  { %v1720_v57 = vld [vmem:[#allocation7 + $0x348] sm:$0xff]  ;;  %v1719_v60 = vld [vmem:[#allocation7 + $0x340] sm:$0xff] }
 0x615   :  { %1754 = vmatpush1.bf16.msra.mxu0 %v1635_v40  ;;  %v1660_v62 = vld [vmem:[#allocation7 + $0x168] sm:$0xff]  ;;  %v1659_v2 = vld [vmem:[#allocation7 + $0x160] sm:$0xff]  ;;  %v1618_v40 = vld [vmem:[#allocation7 + $0x18] sm:$0xff] }
 0x616   :  { %1795 = vmatpush1.bf16.msra.mxu1 %v1699_v48  ;;  %1755 = vmatprep.subr.bf16.mxu0 %v1640_v22  ;;  %v1724_v63 = vld [vmem:[#allocation7 + $0x368] sm:$0xff]  ;;  %v1723_v3 = vld [vmem:[#allocation7 + $0x360] sm:$0xff]  ;;  %v1682_v48 = vld [vmem:[#allocation7 + $0x218] sm:$0xff] }
 0x617   :  { %1796 = vmatprep.subr.bf16.mxu1 %v1704_v23  ;;  %v1664_v4 = vld [vmem:[#allocation7 + $0x188] sm:$0xff]  ;;  %v1663_v8 = vld [vmem:[#allocation7 + $0x180] sm:$0xff]  ;;  %v1617_v22 = vld [vmem:[#allocation7 + $0x10] sm:$0xff] }
 0x618   :  { %v1728_v6 = vld [vmem:[#allocation7 + $0x388] sm:$0xff]  ;;  %v1727_v24 = vld [vmem:[#allocation7 + $0x380] sm:$0xff]  ;;  %v1681_v23 = vld [vmem:[#allocation7 + $0x210] sm:$0xff] }
 0x619   :  { %1756 = vmatpush1.bf16.msra.mxu0 %v1639_v25  ;;  %v1668_v1 = vld [vmem:[#allocation7 + $0x1a8] sm:$0xff]  ;;  %v1667_v12 = vld [vmem:[#allocation7 + $0x1a0] sm:$0xff]  ;;  %v1622_v25 = vld [vmem:[#allocation7 + $0x38] sm:$0xff] }
 0x61a   :  { %1797 = vmatpush1.bf16.msra.mxu1 %v1703_v26  ;;  %1757 = vmatprep.subr.bf16.mxu0 %v1644_v27  ;;  %v1732_v10 = vld [vmem:[#allocation7 + $0x3a8] sm:$0xff]  ;;  %v1731_v13 = vld [vmem:[#allocation7 + $0x3a0] sm:$0xff]  ;;  %v1686_v26 = vld [vmem:[#allocation7 + $0x238] sm:$0xff] }
 0x61b   :  { %1798 = vmatprep.subr.bf16.mxu1 %v1708_v28  ;;  %v1672_v14 = vld [vmem:[#allocation7 + $0x1c8] sm:$0xff]  ;;  %v1671_v47 = vld [vmem:[#allocation7 + $0x1c0] sm:$0xff]  ;;  %v1621_v27 = vld [vmem:[#allocation7 + $0x30] sm:$0xff] }
 0x61c   :  { %v1736_v39 = vld [vmem:[#allocation7 + $0x3c8] sm:$0xff]  ;;  %v1735_v17 = vld [vmem:[#allocation7 + $0x3c0] sm:$0xff]  ;;  %v1685_v28 = vld [vmem:[#allocation7 + $0x230] sm:$0xff] }
 0x61d   :  { %1758 = vmatpush1.bf16.msra.mxu0 %v1643_v29  ;;  %v1676_v18 = vld [vmem:[#allocation7 + $0x1e8] sm:$0xff]  ;;  %v1675_v19 = vld [vmem:[#allocation7 + $0x1e0] sm:$0xff]  ;;  %v1626_v29 = vld [vmem:[#allocation7 + $0x58] sm:$0xff] }
 0x61e   :  { %1799 = vmatpush1.bf16.msra.mxu1 %v1707_v11  ;;  %1759 = vmatprep.subr.bf16.mxu0 %v1648_v32  ;;  %v1740_v44 = vld [vmem:[#allocation7 + $0x3e8] sm:$0xff]  ;;  %v1739_v21 = vld [vmem:[#allocation7 + $0x3e0] sm:$0xff]  ;;  %v1690_v11 = vld [vmem:[#allocation7 + $0x258] sm:$0xff] }
 0x61f   :  { %1800 = vmatprep.subr.bf16.mxu1 %v1712_v15  ;;  %v1625_v32 = vld [vmem:[#allocation7 + $0x50] sm:$0xff]  ;;  %v1560_v36 = vld [vmem:[#allocation6 + $0x248] sm:$0xff] }
 0x620   :  { %v1689_v15 = vld [vmem:[#allocation7 + $0x250] sm:$0xff]  ;;  %v1500_v54 = vld [vmem:[#allocation6 + $0x68] sm:$0xff] }
 0x621   :  { %1760 = vmatpush1.bf16.msra.mxu0 %v1647_v37  ;;  %v1630_v37 = vld [vmem:[#allocation7 + $0x78] sm:$0xff] }
 0x622   :  { %1801 = vmatpush1.bf16.msra.mxu1 %v1711_v42  ;;  %1761 = vmatprep.subr.bf16.mxu0 %v1652_v45  ;;  %v1694_v42 = vld [vmem:[#allocation7 + $0x278] sm:$0xff]  ;;  %v1629_v45 = vld [vmem:[#allocation7 + $0x70] sm:$0xff] }
 0x623   :  { %1802 = vmatprep.subr.bf16.mxu1 %v1716_v46  ;;  %v1693_v46 = vld [vmem:[#allocation7 + $0x270] sm:$0xff] }
 0x625   :  { %1762 = vmatpush1.bf16.msra.mxu0 %v1651_v49  ;;  %v1634_v49 = vld [vmem:[#allocation7 + $0x98] sm:$0xff] }
 0x626   :  { %1803 = vmatpush1.bf16.msra.mxu1 %v1715_v51  ;;  %1763 = vmatprep.subr.bf16.mxu0 %v1656_v55  ;;  %v1698_v51 = vld [vmem:[#allocation7 + $0x298] sm:$0xff] }
 0x627   :  { %1804 = vmatprep.subr.bf16.mxu1 %v1720_v57  ;;  %v1638_v55 = vld [vmem:[#allocation7 + $0xb8] sm:$0xff] }
 0x628   :  { %v1702_v57 = vld [vmem:[#allocation7 + $0x2b8] sm:$0xff] }
 0x629   :  { %1764 = vmatpush1.bf16.msra.mxu0 %v1655_v59  ;;  %v1637_v59 = vld [vmem:[#allocation7 + $0xb0] sm:$0xff] }
 0x62a   :  { %1805 = vmatpush1.bf16.msra.mxu1 %v1719_v60  ;;  %1765 = vmatprep.subr.bf16.mxu0 %v1660_v62  ;;  %v1701_v60 = vld [vmem:[#allocation7 + $0x2b0] sm:$0xff]  ;;  %v1642_v62 = vld [vmem:[#allocation7 + $0xd8] sm:$0xff] }
 0x62b   :  { %1806 = vmatprep.subr.bf16.mxu1 %v1724_v63  ;;  %v1706_v63 = vld [vmem:[#allocation7 + $0x2d8] sm:$0xff] }
 0x62d   :  { %1766 = vmatpush1.bf16.msra.mxu0 %v1659_v2  ;;  %v1641_v2 = vld [vmem:[#allocation7 + $0xd0] sm:$0xff] }
 0x62e   :  { %1807 = vmatpush1.bf16.msra.mxu1 %v1723_v3  ;;  %1767 = vmatprep.subr.bf16.mxu0 %v1664_v4  ;;  %v1705_v3 = vld [vmem:[#allocation7 + $0x2d0] sm:$0xff]  ;;  %v1646_v4 = vld [vmem:[#allocation7 + $0xf8] sm:$0xff] }
 0x62f   :  { %1808 = vmatprep.subr.bf16.mxu1 %v1728_v6  ;;  %v1710_v6 = vld [vmem:[#allocation7 + $0x2f8] sm:$0xff] }
 0x631   :  { %1768 = vmatpush1.bf16.msra.mxu0 %v1663_v8  ;;  %v1645_v8 = vld [vmem:[#allocation7 + $0xf0] sm:$0xff] }
 0x632   :  { %1809 = vmatpush1.bf16.msra.mxu1 %v1727_v24  ;;  %1769 = vmatprep.subr.bf16.mxu0 %v1668_v1  ;;  %v1709_v24 = vld [vmem:[#allocation7 + $0x2f0] sm:$0xff]  ;;  %v1650_v1 = vld [vmem:[#allocation7 + $0x118] sm:$0xff] }
 0x633   :  { %1810 = vmatprep.subr.bf16.mxu1 %v1732_v10  ;;  %v1714_v10 = vld [vmem:[#allocation7 + $0x318] sm:$0xff] }
 0x635   :  { %1770 = vmatpush1.bf16.msra.mxu0 %v1667_v12  ;;  %v1649_v12 = vld [vmem:[#allocation7 + $0x110] sm:$0xff] }
 0x636   :  { %1811 = vmatpush1.bf16.msra.mxu1 %v1731_v13  ;;  %1771 = vmatprep.subr.bf16.mxu0 %v1672_v14  ;;  %v1713_v13 = vld [vmem:[#allocation7 + $0x310] sm:$0xff]  ;;  %v1654_v14 = vld [vmem:[#allocation7 + $0x138] sm:$0xff] }
 0x637   :  { %1812 = vmatprep.subr.bf16.mxu1 %v1736_v39  ;;  %v1718_v39 = vld [vmem:[#allocation7 + $0x338] sm:$0xff] }
 0x639   :  { %1772 = vmatpush1.bf16.msra.mxu0 %v1671_v47  ;;  %v1653_v47 = vld [vmem:[#allocation7 + $0x130] sm:$0xff] }
 0x63a   :  { %1813 = vmatpush1.bf16.msra.mxu1 %v1735_v17  ;;  %1773 = vmatprep.subr.bf16.mxu0 %v1676_v18  ;;  %v1717_v17 = vld [vmem:[#allocation7 + $0x330] sm:$0xff]  ;;  %v1658_v18 = vld [vmem:[#allocation7 + $0x158] sm:$0xff] }
 0x63b   :  { %1814 = vmatprep.subr.bf16.mxu1 %v1740_v44  ;;  %v1722_v44 = vld [vmem:[#allocation7 + $0x358] sm:$0xff] }
 0x63d   :  { %1774 = vmatpush1.bf16.msra.mxu0 %v1675_v19  ;;  %v1657_v19 = vld [vmem:[#allocation7 + $0x150] sm:$0xff] }
 0x63e   :  { %1815 = vmatpush1.bf16.msra.mxu1 %v1739_v21  ;;  %1825 = vmatprep.subr.bf16.mxu0 %v1618_v40  ;;  %v1721_v21 = vld [vmem:[#allocation7 + $0x350] sm:$0xff]  ;;  %v1662_v40 = vld [vmem:[#allocation7 + $0x178] sm:$0xff] }
 0x63f   :  { %1866 = vmatprep.subr.bf16.mxu1 %v1682_v48  ;;  %v1726_v48 = vld [vmem:[#allocation7 + $0x378] sm:$0xff] }
 0x640   :  { %1776 = vmatmul.mubr.bf16.vlgmr.msra.gmra.mrb[12].mxu0 %v3596_v0 }
 0x641   :  { %1817 = vmatmul.mubr.bf16.vlgmr.msra.gmra.mrb[16].mxu1 %v3608_v61  ;;  %1826 = vmatpush1.bf16.msra.mxu0 %v1617_v22  ;;  %v1661_v22 = vld [vmem:[#allocation7 + $0x170] sm:$0xff] }
 0x642   :  { %1867 = vmatpush1.bf16.msra.mxu1 %v1681_v23  ;;  %1827 = vmatprep.subr.bf16.mxu0 %v1622_v25  ;;  %v1725_v23 = vld [vmem:[#allocation7 + $0x370] sm:$0xff]  ;;  %v1666_v25 = vld [vmem:[#allocation7 + $0x198] sm:$0xff] }
 0x643   :  { %1868 = vmatprep.subr.bf16.mxu1 %v1686_v26  ;;  %1857 = vmatprep.mubr.bf16.mxu0 %v3590_v38  ;;  %v1633_v38 = vld [vmem:[#allocation7 + $0x90] sm:$0xff]  ;;  %v1730_v26 = vld [vmem:[#allocation7 + $0x398] sm:$0xff] }
 0x644   :  { %1898 = vmatprep.mubr.bf16.mxu1 %v3601_v20  ;;  %v1697_v20 = vld [vmem:[#allocation7 + $0x290] sm:$0xff] }
 0x645   :  { %1828 = vmatpush1.bf16.msra.mxu0 %v1621_v27  ;;  %v1665_v27 = vld [vmem:[#allocation7 + $0x190] sm:$0xff] }
 0x646   :  { %1869 = vmatpush1.bf16.msra.mxu1 %v1685_v28  ;;  %1829 = vmatprep.subr.bf16.mxu0 %v1626_v29  ;;  %v1729_v28 = vld [vmem:[#allocation7 + $0x390] sm:$0xff]  ;;  %v1670_v29 = vld [vmem:[#allocation7 + $0x1b8] sm:$0xff] }
 0x647   :  { %1870 = vmatprep.subr.bf16.mxu1 %v1690_v11  ;;  %v1734_v11 = vld [vmem:[#allocation7 + $0x3b8] sm:$0xff] }
 0x649   :  { %1830 = vmatpush1.bf16.msra.mxu0 %v1625_v32  ;;  %v1669_v32 = vld [vmem:[#allocation7 + $0x1b0] sm:$0xff] }
 0x64a   :  { %1871 = vmatpush1.bf16.msra.mxu1 %v1689_v15  ;;  %1831 = vmatprep.subr.bf16.mxu0 %v1630_v37  ;;  %v1733_v15 = vld [vmem:[#allocation7 + $0x3b0] sm:$0xff]  ;;  %v1674_v37 = vld [vmem:[#allocation7 + $0x1d8] sm:$0xff] }
 0x64b   :  { %1872 = vmatprep.subr.bf16.mxu1 %v1694_v42  ;;  %v1738_v42 = vld [vmem:[#allocation7 + $0x3d8] sm:$0xff] }
 0x64d   :  { %1832 = vmatpush1.bf16.msra.mxu0 %v1629_v45  ;;  %v1673_v45 = vld [vmem:[#allocation7 + $0x1d0] sm:$0xff] }
 0x64e   :  { %1873 = vmatpush1.bf16.msra.mxu1 %v1693_v46  ;;  %1833 = vmatprep.subr.bf16.mxu0 %v1634_v49  ;;  %v1737_v46 = vld [vmem:[#allocation7 + $0x3d0] sm:$0xff]  ;;  %v1678_v49 = vld [vmem:[#allocation7 + $0x1f8] sm:$0xff] }
 0x64f   :  { %1874 = vmatprep.subr.bf16.mxu1 %v1698_v51  ;;  %v1742_v51 = vld [vmem:[#allocation7 + $0x3f8] sm:$0xff] }
 0x651   :  { %1834 = vmatpush1.bf16.msra.mxu0 %v1633_v38  ;;  %v1677_v38 = vld [vmem:[#allocation7 + $0x1f0] sm:$0xff] }
 0x652   :  { %1875 = vmatpush1.bf16.msra.mxu1 %v1697_v20  ;;  %1835 = vmatprep.subr.bf16.mxu0 %v1638_v55  ;;  %v1741_v20 = vld [vmem:[#allocation7 + $0x3f0] sm:$0xff]  ;;  %v1488_v55 = vld [vmem:[#allocation6 + $0x8] sm:$0xff] }
 0x653   :  { %1876 = vmatprep.subr.bf16.mxu1 %v1702_v57  ;;  %v1552_v57 = vld [vmem:[#allocation6 + $0x208] sm:$0xff] }
 0x655   :  { %1836 = vmatpush1.bf16.msra.mxu0 %v1637_v59  ;;  %v1487_v59 = vld [vmem:[#allocation6] sm:$0xff] }
 0x656   :  { %1877 = vmatpush1.bf16.msra.mxu1 %v1701_v60  ;;  %1837 = vmatprep.subr.bf16.mxu0 %v1642_v62  ;;  %v1551_v60 = vld [vmem:[#allocation6 + $0x200] sm:$0xff]  ;;  %v1492_v62 = vld [vmem:[#allocation6 + $0x28] sm:$0xff] }
 0x657   :  { %1878 = vmatprep.subr.bf16.mxu1 %v1706_v63  ;;  %v1556_v63 = vld [vmem:[#allocation6 + $0x228] sm:$0xff] }
 0x659   :  { %1838 = vmatpush1.bf16.msra.mxu0 %v1641_v2  ;;  %v3658_v2 = vpack.c.bf16 %v1476_v43, %v1476_v43  ;;  %v1495_v43 = vld [vmem:[#allocation6 + $0x40] sm:$0xff] }
 0x65a   :  { %1879 = vmatpush1.bf16.msra.mxu1 %v1705_v3  ;;  %1839 = vmatprep.subr.bf16.mxu0 %v1646_v4  ;;  %v3663_v3 = vpack.c.bf16 %v1478_v58, %v1478_v58  ;;  %v1491_v4 = vld [vmem:[#allocation6 + $0x20] sm:$0xff] }
 0x65b   :  { %1880 = vmatprep.subr.bf16.mxu1 %v1710_v6  ;;  %v1555_v6 = vld [vmem:[#allocation6 + $0x220] sm:$0xff] }
 0x65c   :  { %v1499_v58 = vld [vmem:[#allocation6 + $0x60] sm:$0xff] }
 0x65d   :  { %1840 = vmatpush1.bf16.msra.mxu0 %v1645_v8  ;;  %v1496_v8 = vld [vmem:[#allocation6 + $0x48] sm:$0xff] }
 0x65e   :  { %1881 = vmatpush1.bf16.msra.mxu1 %v1709_v24  ;;  %1841 = vmatprep.subr.bf16.mxu0 %v1650_v1  ;;  %v1563_v24 = vld [vmem:[#allocation6 + $0x260] sm:$0xff]  ;;  %v1504_v1 = vld [vmem:[#allocation6 + $0x88] sm:$0xff] }
 0x65f   :  { %1882 = vmatprep.subr.bf16.mxu1 %v1714_v10  ;;  %v1568_v10 = vld [vmem:[#allocation6 + $0x288] sm:$0xff] }
 0x661   :  { %1842 = vmatpush1.bf16.msra.mxu0 %v1649_v12  ;;  %v1503_v12 = vld [vmem:[#allocation6 + $0x80] sm:$0xff] }
 0x662   :  { %1883 = vmatpush1.bf16.msra.mxu1 %v1713_v13  ;;  %1843 = vmatprep.subr.bf16.mxu0 %v1654_v14  ;;  %v1567_v13 = vld [vmem:[#allocation6 + $0x280] sm:$0xff]  ;;  %v1508_v14 = vld [vmem:[#allocation6 + $0xa8] sm:$0xff] }
 0x663   :  { %1884 = vmatprep.subr.bf16.mxu1 %v1718_v39  ;;  %v1572_v39 = vld [vmem:[#allocation6 + $0x2a8] sm:$0xff] }
 0x665   :  { %1844 = vmatpush1.bf16.msra.mxu0 %v1653_v47  ;;  %v1507_v47 = vld [vmem:[#allocation6 + $0xa0] sm:$0xff] }
 0x666   :  { %1885 = vmatpush1.bf16.msra.mxu1 %v1717_v17  ;;  %1845 = vmatprep.subr.bf16.mxu0 %v1658_v18  ;;  %v1571_v17 = vld [vmem:[#allocation6 + $0x2a0] sm:$0xff]  ;;  %v1512_v18 = vld [vmem:[#allocation6 + $0xc8] sm:$0xff] }
 0x667   :  { %1886 = vmatprep.subr.bf16.mxu1 %v1722_v44  ;;  %v1576_v44 = vld [vmem:[#allocation6 + $0x2c8] sm:$0xff] }
 0x669   :  { %1846 = vmatpush1.bf16.msra.mxu0 %v1657_v19  ;;  %v1511_v19 = vld [vmem:[#allocation6 + $0xc0] sm:$0xff] }
 0x66a   :  { %1887 = vmatpush1.bf16.msra.mxu1 %v1721_v21  ;;  %1847 = vmatprep.subr.bf16.mxu0 %v1662_v40  ;;  %v1575_v21 = vld [vmem:[#allocation6 + $0x2c0] sm:$0xff]  ;;  %v1516_v40 = vld [vmem:[#allocation6 + $0xe8] sm:$0xff] }
 0x66b   :  { %1888 = vmatprep.subr.bf16.mxu1 %v1726_v48  ;;  %v1580_v48 = vld [vmem:[#allocation6 + $0x2e8] sm:$0xff] }
 0x66d   :  { %1848 = vmatpush1.bf16.msra.mxu0 %v1661_v22  ;;  %v1515_v22 = vld [vmem:[#allocation6 + $0xe0] sm:$0xff] }
 0x66e   :  { %1889 = vmatpush1.bf16.msra.mxu1 %v1725_v23  ;;  %1849 = vmatprep.subr.bf16.mxu0 %v1666_v25  ;;  %v1579_v23 = vld [vmem:[#allocation6 + $0x2e0] sm:$0xff]  ;;  %v1520_v25 = vld [vmem:[#allocation6 + $0x108] sm:$0xff] }
 0x66f   :  { %1890 = vmatprep.subr.bf16.mxu1 %v1730_v26  ;;  %v1584_v26 = vld [vmem:[#allocation6 + $0x308] sm:$0xff] }
 0x671   :  { %1850 = vmatpush1.bf16.msra.mxu0 %v1665_v27  ;;  %v1519_v27 = vld [vmem:[#allocation6 + $0x100] sm:$0xff] }
 0x672   :  { %1891 = vmatpush1.bf16.msra.mxu1 %v1729_v28  ;;  %1851 = vmatprep.subr.bf16.mxu0 %v1670_v29  ;;  %v1583_v28 = vld [vmem:[#allocation6 + $0x300] sm:$0xff]  ;;  %v1524_v29 = vld [vmem:[#allocation6 + $0x128] sm:$0xff] }
 0x673   :  { %1892 = vmatprep.subr.bf16.mxu1 %v1734_v11  ;;  %v1588_v11 = vld [vmem:[#allocation6 + $0x328] sm:$0xff] }
 0x675   :  { %1852 = vmatpush1.bf16.msra.mxu0 %v1669_v32  ;;  %v1523_v32 = vld [vmem:[#allocation6 + $0x120] sm:$0xff] }
 0x676   :  { %1893 = vmatpush1.bf16.msra.mxu1 %v1733_v15  ;;  %1853 = vmatprep.subr.bf16.mxu0 %v1674_v37  ;;  %v1587_v15 = vld [vmem:[#allocation6 + $0x320] sm:$0xff]  ;;  %v1528_v37 = vld [vmem:[#allocation6 + $0x148] sm:$0xff] }
 0x677   :  { %1894 = vmatprep.subr.bf16.mxu1 %v1738_v42  ;;  %v1592_v42 = vld [vmem:[#allocation6 + $0x348] sm:$0xff] }
 0x679   :  { %1854 = vmatpush1.bf16.msra.mxu0 %v1673_v45  ;;  %v1527_v45 = vld [vmem:[#allocation6 + $0x140] sm:$0xff] }
 0x67a   :  { %1895 = vmatpush1.bf16.msra.mxu1 %v1737_v46  ;;  %1855 = vmatprep.subr.bf16.mxu0 %v1678_v49  ;;  %v1591_v46 = vld [vmem:[#allocation6 + $0x340] sm:$0xff]  ;;  %v1532_v49 = vld [vmem:[#allocation6 + $0x168] sm:$0xff] }
 0x67b   :  { %1896 = vmatprep.subr.bf16.mxu1 %v1742_v51  ;;  %v1596_v51 = vld [vmem:[#allocation6 + $0x368] sm:$0xff] }
 0x67d   :  { %1856 = vmatpush1.bf16.msra.mxu0 %v1677_v38  ;;  %v1531_v38 = vld [vmem:[#allocation6 + $0x160] sm:$0xff] }
 0x67e   :  { %1897 = vmatpush1.bf16.msra.mxu1 %v1741_v20  ;;  %1907 = vmatprep.subr.bf16.mxu0 %v1488_v55  ;;  %v1595_v20 = vld [vmem:[#allocation6 + $0x360] sm:$0xff]  ;;  %v1536_v55 = vld [vmem:[#allocation6 + $0x188] sm:$0xff] }
 0x67f   :  { %1948 = vmatprep.subr.bf16.mxu1 %v1552_v57  ;;  %v1600_v57 = vld [vmem:[#allocation6 + $0x388] sm:$0xff] }
 0x680   :  { %1858 = vmatmul.mubr.bf16.vlgmr.msra.gmra.mrb[16].mxu0 %v3596_v0  ;;  %v1559_v0 = vld [vmem:[#allocation6 + $0x240] sm:$0xff] }
 0x681   :  { %1899 = vmatmul.mubr.bf16.vlgmr.msra.gmra.mrb[20].mxu1 %v3608_v61  ;;  %1908 = vmatpush1.bf16.msra.mxu0 %v1487_v59  ;;  %v1564_v61 = vld [vmem:[#allocation6 + $0x268] sm:$0xff]  ;;  %v1535_v59 = vld [vmem:[#allocation6 + $0x180] sm:$0xff] }
 0x682   :  { %1949 = vmatpush1.bf16.msra.mxu1 %v1551_v60  ;;  %1909 = vmatprep.subr.bf16.mxu0 %v1492_v62  ;;  %v1599_v60 = vld [vmem:[#allocation6 + $0x380] sm:$0xff]  ;;  %v1540_v62 = vld [vmem:[#allocation6 + $0x1a8] sm:$0xff] }
 0x683   :  { %1950 = vmatprep.subr.bf16.mxu1 %v1556_v63  ;;  %1939 = vmatprep.mubr.bf16.mxu0 %v3658_v2  ;;  %v1604_v63 = vld [vmem:[#allocation6 + $0x3a8] sm:$0xff] }
 0x684   :  { %1980 = vmatprep.mubr.bf16.mxu1 %v3663_v3 }
 0x685   :  { %1910 = vmatpush1.bf16.msra.mxu0 %v1491_v4  ;;  %v1539_v4 = vld [vmem:[#allocation6 + $0x1a0] sm:$0xff] }
 0x686   :  { %1951 = vmatpush1.bf16.msra.mxu1 %v1555_v6  ;;  %1911 = vmatprep.subr.bf16.mxu0 %v1496_v8  ;;  %v1603_v6 = vld [vmem:[#allocation6 + $0x3a0] sm:$0xff]  ;;  %v1544_v8 = vld [vmem:[#allocation6 + $0x1c8] sm:$0xff] }
 0x687   :  { %1952 = vmatprep.subr.bf16.mxu1 %v1560_v36  ;;  %v1608_v36 = vld [vmem:[#allocation6 + $0x3c8] sm:$0xff] }
 0x689   :  { %1912 = vmatpush1.bf16.msra.mxu0 %v1495_v43  ;;  %v1543_v43 = vld [vmem:[#allocation6 + $0x1c0] sm:$0xff] }
 0x68a   :  { %1953 = vmatpush1.bf16.msra.mxu1 %v1559_v0  ;;  %1913 = vmatprep.subr.bf16.mxu0 %v1500_v54  ;;  %v1607_v0 = vld [vmem:[#allocation6 + $0x3c0] sm:$0xff]  ;;  %v1548_v54 = vld [vmem:[#allocation6 + $0x1e8] sm:$0xff] }
 0x68b   :  { %1954 = vmatprep.subr.bf16.mxu1 %v1564_v61  ;;  %v1612_v61 = vld [vmem:[#allocation6 + $0x3e8] sm:$0xff] }
 0x68d   :  { %1914 = vmatpush1.bf16.msra.mxu0 %v1499_v58  ;;  %v1547_v58 = vld [vmem:[#allocation6 + $0x1e0] sm:$0xff] }
 0x68e   :  { %1955 = vmatpush1.bf16.msra.mxu1 %v1563_v24  ;;  %1915 = vmatprep.subr.bf16.mxu0 %v1504_v1  ;;  %v1611_v24 = vld [vmem:[#allocation6 + $0x3e0] sm:$0xff]  ;;  %v1490_v1 = vld [vmem:[#allocation6 + $0x18] sm:$0xff] }
 0x68f   :  { %1956 = vmatprep.subr.bf16.mxu1 %v1568_v10  ;;  %v1554_v10 = vld [vmem:[#allocation6 + $0x218] sm:$0xff] }
 0x691   :  { %1916 = vmatpush1.bf16.msra.mxu0 %v1503_v12  ;;  %v3672_v12 = vpack.c.bf16 %v1475_v41, %v1475_v41  ;;  %v1557_v41 = vld [vmem:[#allocation6 + $0x230] sm:$0xff] }
 0x692   :  { %1957 = vmatpush1.bf16.msra.mxu1 %v1567_v13  ;;  %1917 = vmatprep.subr.bf16.mxu0 %v1508_v14  ;;  %v3677_v13 = vpack.c.bf16 %v1477_v56, %v1477_v56  ;;  %v1489_v14 = vld [vmem:[#allocation6 + $0x10] sm:$0xff]  ;;  %v1562_v56 = vld [vmem:[#allocation6 + $0x258] sm:$0xff] }
 0x693   :  { %1958 = vmatprep.subr.bf16.mxu1 %v1572_v39  ;;  %v1553_v39 = vld [vmem:[#allocation6 + $0x210] sm:$0xff] }
 0x695   :  { %1918 = vmatpush1.bf16.msra.mxu0 %v1507_v47  ;;  %v1494_v47 = vld [vmem:[#allocation6 + $0x38] sm:$0xff] }
 0x696   :  { %1959 = vmatpush1.bf16.msra.mxu1 %v1571_v17  ;;  %1919 = vmatprep.subr.bf16.mxu0 %v1512_v18  ;;  %v1558_v17 = vld [vmem:[#allocation6 + $0x238] sm:$0xff]  ;;  %v1497_v18 = vld [vmem:[#allocation6 + $0x50] sm:$0xff] }
 0x697   :  { %1960 = vmatprep.subr.bf16.mxu1 %v1576_v44  ;;  %v1561_v44 = vld [vmem:[#allocation6 + $0x250] sm:$0xff] }
 0x699   :  { %1920 = vmatpush1.bf16.msra.mxu0 %v1511_v19  ;;  %v1502_v19 = vld [vmem:[#allocation6 + $0x78] sm:$0xff] }
 0x69a   :  { %1961 = vmatpush1.bf16.msra.mxu1 %v1575_v21  ;;  %1921 = vmatprep.subr.bf16.mxu0 %v1516_v40  ;;  %v1566_v21 = vld [vmem:[#allocation6 + $0x278] sm:$0xff]  ;;  %v1501_v40 = vld [vmem:[#allocation6 + $0x70] sm:$0xff] }
 0x69b   :  { %1962 = vmatprep.subr.bf16.mxu1 %v1580_v48  ;;  %v1565_v48 = vld [vmem:[#allocation6 + $0x270] sm:$0xff] }
 0x69d   :  { %1922 = vmatpush1.bf16.msra.mxu0 %v1515_v22  ;;  %v1506_v22 = vld [vmem:[#allocation6 + $0x98] sm:$0xff] }
 0x69e   :  { %1963 = vmatpush1.bf16.msra.mxu1 %v1579_v23  ;;  %1923 = vmatprep.subr.bf16.mxu0 %v1520_v25  ;;  %v1570_v23 = vld [vmem:[#allocation6 + $0x298] sm:$0xff] }
 0x69f   :  { %1964 = vmatprep.subr.bf16.mxu1 %v1584_v26  ;;  %v1510_v25 = vld [vmem:[#allocation6 + $0xb8] sm:$0xff] }
 0x6a0   :  { %v1574_v26 = vld [vmem:[#allocation6 + $0x2b8] sm:$0xff] }
 0x6a1   :  { %1924 = vmatpush1.bf16.msra.mxu0 %v1519_v27  ;;  %v1509_v27 = vld [vmem:[#allocation6 + $0xb0] sm:$0xff] }
 0x6a2   :  { %1965 = vmatpush1.bf16.msra.mxu1 %v1583_v28  ;;  %1925 = vmatprep.subr.bf16.mxu0 %v1524_v29  ;;  %v1573_v28 = vld [vmem:[#allocation6 + $0x2b0] sm:$0xff]  ;;  %v1514_v29 = vld [vmem:[#allocation6 + $0xd8] sm:$0xff] }
 0x6a3   :  { %1966 = vmatprep.subr.bf16.mxu1 %v1588_v11  ;;  %v1578_v11 = vld [vmem:[#allocation6 + $0x2d8] sm:$0xff] }
 0x6a5   :  { %1926 = vmatpush1.bf16.msra.mxu0 %v1523_v32  ;;  %v1513_v32 = vld [vmem:[#allocation6 + $0xd0] sm:$0xff] }
 0x6a6   :  { %1967 = vmatpush1.bf16.msra.mxu1 %v1587_v15  ;;  %1927 = vmatprep.subr.bf16.mxu0 %v1528_v37  ;;  %v1577_v15 = vld [vmem:[#allocation6 + $0x2d0] sm:$0xff]  ;;  %v1518_v37 = vld [vmem:[#allocation6 + $0xf8] sm:$0xff] }
 0x6a7   :  { %1968 = vmatprep.subr.bf16.mxu1 %v1592_v42  ;;  %v1582_v42 = vld [vmem:[#allocation6 + $0x2f8] sm:$0xff] }
 0x6a9   :  { %1928 = vmatpush1.bf16.msra.mxu0 %v1527_v45  ;;  %v1517_v45 = vld [vmem:[#allocation6 + $0xf0] sm:$0xff] }
 0x6aa   :  { %1969 = vmatpush1.bf16.msra.mxu1 %v1591_v46  ;;  %1929 = vmatprep.subr.bf16.mxu0 %v1532_v49  ;;  %v1581_v46 = vld [vmem:[#allocation6 + $0x2f0] sm:$0xff]  ;;  %v1522_v49 = vld [vmem:[#allocation6 + $0x118] sm:$0xff] }
 0x6ab   :  { %1970 = vmatprep.subr.bf16.mxu1 %v1596_v51  ;;  %v1586_v51 = vld [vmem:[#allocation6 + $0x318] sm:$0xff] }
 0x6ad   :  { %1930 = vmatpush1.bf16.msra.mxu0 %v1531_v38  ;;  %v1521_v38 = vld [vmem:[#allocation6 + $0x110] sm:$0xff] }
 0x6ae   :  { %1971 = vmatpush1.bf16.msra.mxu1 %v1595_v20  ;;  %1931 = vmatprep.subr.bf16.mxu0 %v1536_v55  ;;  %v1585_v20 = vld [vmem:[#allocation6 + $0x310] sm:$0xff]  ;;  %v1526_v55 = vld [vmem:[#allocation6 + $0x138] sm:$0xff] }
 0x6af   :  { %1972 = vmatprep.subr.bf16.mxu1 %v1600_v57  ;;  %v1590_v57 = vld [vmem:[#allocation6 + $0x338] sm:$0xff] }
 0x6b1   :  { %1932 = vmatpush1.bf16.msra.mxu0 %v1535_v59  ;;  %v1525_v59 = vld [vmem:[#allocation6 + $0x130] sm:$0xff] }
 0x6b2   :  { %1973 = vmatpush1.bf16.msra.mxu1 %v1599_v60  ;;  %1933 = vmatprep.subr.bf16.mxu0 %v1540_v62  ;;  %v1589_v60 = vld [vmem:[#allocation6 + $0x330] sm:$0xff]  ;;  %v1530_v62 = vld [vmem:[#allocation6 + $0x158] sm:$0xff] }
 0x6b3   :  { %1974 = vmatprep.subr.bf16.mxu1 %v1604_v63  ;;  %v1594_v63 = vld [vmem:[#allocation6 + $0x358] sm:$0xff] }
 0x6b5   :  { %1934 = vmatpush1.bf16.msra.mxu0 %v1539_v4  ;;  %v1529_v4 = vld [vmem:[#allocation6 + $0x150] sm:$0xff] }
 0x6b6   :  { %1975 = vmatpush1.bf16.msra.mxu1 %v1603_v6  ;;  %1935 = vmatprep.subr.bf16.mxu0 %v1544_v8  ;;  %v1593_v6 = vld [vmem:[#allocation6 + $0x350] sm:$0xff]  ;;  %v1534_v8 = vld [vmem:[#allocation6 + $0x178] sm:$0xff] }
 0x6b7   :  { %1976 = vmatprep.subr.bf16.mxu1 %v1608_v36  ;;  %v1598_v36 = vld [vmem:[#allocation6 + $0x378] sm:$0xff] }
 0x6b9   :  { %1936 = vmatpush1.bf16.msra.mxu0 %v1543_v43  ;;  %v1533_v43 = vld [vmem:[#allocation6 + $0x170] sm:$0xff] }
 0x6ba   :  { %1977 = vmatpush1.bf16.msra.mxu1 %v1607_v0  ;;  %1937 = vmatprep.subr.bf16.mxu0 %v1548_v54  ;;  %v1597_v0 = vld [vmem:[#allocation6 + $0x370] sm:$0xff]  ;;  %v1538_v54 = vld [vmem:[#allocation6 + $0x198] sm:$0xff] }
 0x6bb   :  { %1978 = vmatprep.subr.bf16.mxu1 %v1612_v61  ;;  %v1602_v61 = vld [vmem:[#allocation6 + $0x398] sm:$0xff] }
 0x6bd   :  { %1938 = vmatpush1.bf16.msra.mxu0 %v1547_v58  ;;  %v1537_v58 = vld [vmem:[#allocation6 + $0x190] sm:$0xff] }
 0x6be   :  { %1979 = vmatpush1.bf16.msra.mxu1 %v1611_v24  ;;  %1989 = vmatprep.subr.bf16.mxu0 %v1490_v1  ;;  %v1601_v24 = vld [vmem:[#allocation6 + $0x390] sm:$0xff]  ;;  %v1542_v1 = vld [vmem:[#allocation6 + $0x1b8] sm:$0xff] }
 0x6bf   :  { %2030 = vmatprep.subr.bf16.mxu1 %v1554_v10  ;;  %v1606_v10 = vld [vmem:[#allocation6 + $0x3b8] sm:$0xff] }
 0x6c0   :  { %1940 = vmatmul.mubr.bf16.vlgmr.msra.gmra.mrb[20].mxu0 %v3672_v12 }
 0x6c1   :  { %1981 = vmatmul.mubr.bf16.vlgmr.msra.gmra.mrb[24].mxu1 %v3677_v13  ;;  %1990 = vmatpush1.bf16.msra.mxu0 %v1489_v14  ;;  %v1541_v14 = vld [vmem:[#allocation6 + $0x1b0] sm:$0xff] }
 0x6c2   :  { %2031 = vmatpush1.bf16.msra.mxu1 %v1553_v39  ;;  %1991 = vmatprep.subr.bf16.mxu0 %v1494_v47  ;;  %v1605_v39 = vld [vmem:[#allocation6 + $0x3b0] sm:$0xff]  ;;  %v1546_v47 = vld [vmem:[#allocation6 + $0x1d8] sm:$0xff] }
 0x6c3   :  { %2032 = vmatprep.subr.bf16.mxu1 %v1558_v17  ;;  %2021 = vmatprep.mubr.bf16.mxu0 %v3658_v2  ;;  %v1505_v2 = vld [vmem:[#allocation6 + $0x90] sm:$0xff]  ;;  %v1610_v17 = vld [vmem:[#allocation6 + $0x3d8] sm:$0xff] }
 0x6c4   :  { %2062 = vmatprep.mubr.bf16.mxu1 %v3663_v3  ;;  %v1569_v3 = vld [vmem:[#allocation6 + $0x290] sm:$0xff] }
 0x6c5   :  { %1992 = vmatpush1.bf16.msra.mxu0 %v1493_v35  ;;  %v1545_v35 = vld [vmem:[#allocation6 + $0x1d0] sm:$0xff] }
 0x6c6   :  { %2033 = vmatpush1.bf16.msra.mxu1 %v1557_v41  ;;  %1993 = vmatprep.subr.bf16.mxu0 %v1498_v50  ;;  %v1609_v41 = vld [vmem:[#allocation6 + $0x3d0] sm:$0xff]  ;;  %v1550_v50 = vld [vmem:[#allocation6 + $0x1f8] sm:$0xff] }
 0x6c7   :  { %2034 = vmatprep.subr.bf16.mxu1 %v1562_v56  ;;  %v1614_v56 = vld [vmem:[#allocation6 + $0x3f8] sm:$0xff] }
 0x6c9   :  { %1994 = vmatpush1.bf16.msra.mxu0 %v1497_v18  ;;  %v1549_v18 = vld [vmem:[#allocation6 + $0x1f0] sm:$0xff] }
 0x6ca   :  { %2035 = vmatpush1.bf16.msra.mxu1 %v1561_v44  ;;  %1995 = vmatprep.subr.bf16.mxu0 %v1502_v19  ;;  %v1613_v44 = vld [vmem:[#allocation6 + $0x3f0] sm:$0xff] }
 0x6cb   :  { %2036 = vmatprep.subr.bf16.mxu1 %v1566_v21 }
 0x6cd   :  { %1996 = vmatpush1.bf16.msra.mxu0 %v1501_v40 }
 0x6ce   :  { %2037 = vmatpush1.bf16.msra.mxu1 %v1565_v48  ;;  %1997 = vmatprep.subr.bf16.mxu0 %v1506_v22 }
 0x6cf   :  { %2038 = vmatprep.subr.bf16.mxu1 %v1570_v23 }
 0x6d1   :  { %1998 = vmatpush1.bf16.msra.mxu0 %v1505_v2 }
 0x6d2   :  { %2039 = vmatpush1.bf16.msra.mxu1 %v1569_v3  ;;  %1999 = vmatprep.subr.bf16.mxu0 %v1510_v25 }
 0x6d3   :  { %2040 = vmatprep.subr.bf16.mxu1 %v1574_v26 }
 0x6d5   :  { %2000 = vmatpush1.bf16.msra.mxu0 %v1509_v27 }
 0x6d6   :  { %2041 = vmatpush1.bf16.msra.mxu1 %v1573_v28  ;;  %2001 = vmatprep.subr.bf16.mxu0 %v1514_v29 }
 0x6d7   :  { %2042 = vmatprep.subr.bf16.mxu1 %v1578_v11 }
 0x6d9   :  { %2002 = vmatpush1.bf16.msra.mxu0 %v1513_v32 }
 0x6da   :  { %2043 = vmatpush1.bf16.msra.mxu1 %v1577_v15  ;;  %2003 = vmatprep.subr.bf16.mxu0 %v1518_v37 }
 0x6db   :  { %2044 = vmatprep.subr.bf16.mxu1 %v1582_v42 }
 0x6dd   :  { %2004 = vmatpush1.bf16.msra.mxu0 %v1517_v45  ;;  %v2071_v45 = vld [vmem:[%s3792_s1 + $0xe] sm:$0xf] }
 0x6de   :  { %2045 = vmatpush1.bf16.msra.mxu1 %v1581_v46  ;;  %2005 = vmatprep.subr.bf16.mxu0 %v1522_v49 }
 0x6df   :  { %2046 = vmatprep.subr.bf16.mxu1 %v1586_v51 }
 0x6e1   :  { %2006 = vmatpush1.bf16.msra.mxu0 %v1521_v38  ;;  %v2076_v38 = vrot.slane %v2071_v45, %v3522_v30 }
 0x6e2   :  { %2047 = vmatpush1.bf16.msra.mxu1 %v1585_v20  ;;  %2007 = vmatprep.subr.bf16.mxu0 %v1526_v55 }
 0x6e3   :  { %2048 = vmatprep.subr.bf16.mxu1 %v1590_v57 }
 0x6e5   :  { %2008 = vmatpush1.bf16.msra.mxu0 %v1525_v59  ;;  %v2080_v59 = vrot.slane %v2071_v45, %v3531_v33 }
 0x6e6   :  { %2049 = vmatpush1.bf16.msra.mxu1 %v1589_v60  ;;  %2009 = vmatprep.subr.bf16.mxu0 %v1530_v62 }
 0x6e7   :  { %2050 = vmatprep.subr.bf16.mxu1 %v1594_v63 }
 0x6e9   :  { %2010 = vmatpush1.bf16.msra.mxu0 %v1529_v4 }
 0x6ea   :  { %2051 = vmatpush1.bf16.msra.mxu1 %v1593_v6  ;;  %2011 = vmatprep.subr.bf16.mxu0 %v1534_v8 }
 0x6eb   :  { %2052 = vmatprep.subr.bf16.mxu1 %v1598_v36 }
 0x6ed   :  { %2012 = vmatpush1.bf16.msra.mxu0 %v1533_v43 }
 0x6ee   :  { %2053 = vmatpush1.bf16.msra.mxu1 %v1597_v0  ;;  %2013 = vmatprep.subr.bf16.mxu0 %v1538_v54 }
 0x6ef   :  { %2054 = vmatprep.subr.bf16.mxu1 %v1602_v61 }
 0x6f1   :  { %2014 = vmatpush1.bf16.msra.mxu0 %v1537_v58 }
 0x6f2   :  { %2055 = vmatpush1.bf16.msra.mxu1 %v1601_v24  ;;  %2015 = vmatprep.subr.bf16.mxu0 %v1542_v1  ;;  %v2084_v1 = vrot.slane %v2071_v45, %v3525_v31 }
 0x6f3   :  { %2056 = vmatprep.subr.bf16.mxu1 %v1606_v10 }
 0x6f5   :  { %2016 = vmatpush1.bf16.msra.mxu0 %v1541_v14 }
 0x6f6   :  { %2057 = vmatpush1.bf16.msra.mxu1 %v1605_v39  ;;  %2017 = vmatprep.subr.bf16.mxu0 %v1546_v47  ;;  %v2088_v47 = vrot.slane %v2071_v45, %v3534_v34 }
 0x6f7   :  { %2058 = vmatprep.subr.bf16.mxu1 %v1610_v17 }
 0x6f9   :  { %2018 = vmatpush1.bf16.msra.mxu0 %v1545_v35 }
 0x6fa   :  { %2059 = vmatpush1.bf16.msra.mxu1 %v1609_v41  ;;  %2019 = vmatprep.subr.bf16.mxu0 %v1550_v50 }
 0x6fb   :  { %2060 = vmatprep.subr.bf16.mxu1 %v1614_v56 }
 0x6fd   :  { %2020 = vmatpush1.bf16.msra.mxu0 %v1549_v18 }
 0x6fe   :  { %2061 = vmatpush1.bf16.msra.mxu1 %v1613_v44 }
 0x700   :  { %2022 = vmatmul.mubr.bf16.vlgmr.msra.gmra.mrb[24].mxu0 %v3672_v12 }
 0x701   :  { %2063 = vmatmul.mubr.bf16.vlgmr.msra.gmra.mrb[28].mxu1 %v3677_v13 }
 0x713   :  { %v1777_v19 = vpop.f32.mrb[12].mxu0 }
 0x714   :  { %v1818_v21 = vpop.f32.mrb[16].mxu1  ;;  %v1779_v48 = vpop.f32.mrb[13].mxu0 }
 0x715   :  { %v1819_v40 = vadd.f32 %v1818_v21, %v1777_v19  ;;  %v1820_v22 = vpop.f32.mrb[17].mxu1  ;;  %v1781_v2 = vpop.f32.mrb[14].mxu0 }
 0x716   :  { %v1821_v23 = vadd.f32 %v1820_v22, %v1779_v48  ;;  %v1822_v3 = vpop.f32.mrb[18].mxu1  ;;  %v1782_v25 = vpop.f32.mrb[15].mxu0 }
 0x717   :  { %v1823_v26 = vpop.f32.mrb[19].mxu1 }
 0x753   :  { %v1859_v27 = vpop.f32.mrb[16].mxu0 }
 0x754   :  { %v1900_v28 = vpop.f32.mrb[20].mxu1  ;;  %v1861_v11 = vpop.f32.mrb[17].mxu0 }
 0x755   :  { %v1901_v29 = vadd.f32 %v1900_v28, %v1859_v27  ;;  %v1902_v32 = vpop.f32.mrb[21].mxu1  ;;  %v1863_v37 = vpop.f32.mrb[18].mxu0 }
 0x756   :  { %v1903_v15 = vadd.f32 %v1902_v32, %v1861_v11  ;;  %v1904_v12 = vpop.f32.mrb[22].mxu1  ;;  %v1864_v42 = vpop.f32.mrb[19].mxu0 }
 0x757   :  { %v1905_v13 = vpop.f32.mrb[23].mxu1 }
 0x793   :  { %v1941_v46 = vpop.f32.mrb[20].mxu0 }
 0x794   :  { %v1982_v49 = vpop.f32.mrb[24].mxu1  ;;  %v1942_v51 = vadd.f32 %v1941_v46, %v1819_v40  ;;  %v1943_v20 = vpop.f32.mrb[21].mxu0 }
 0x795   :  { %v1984_v55 = vpop.f32.mrb[25].mxu1  ;;  %v1944_v57 = vadd.f32 %v1943_v20, %v1821_v23  ;;  %v1945_v60 = vpop.f32.mrb[22].mxu0 }
 0x796   :  { %v1986_v62 = vpop.f32.mrb[26].mxu1  ;;  %v1983_v63 = vadd.f32 %v1982_v49, %v1942_v51  ;;  %v1946_v4 = vpop.f32.mrb[23].mxu0 }
 0x797   :  { %v1987_v6 = vpop.f32.mrb[27].mxu1  ;;  %v1985_v8 = vadd.f32 %v1984_v55, %v1944_v57 }
 0x798   :  { %v3690_v36 = vadd.f32 %v2076_v38, %v1983_v63 }
 0x799   :  { %v3692_v43 = vadd.f32 %v2080_v59, %v1985_v8 }
 0x79a   :  { %v2097_v0 = vmax.f32 %v3690_v36, 0.0 }
 0x79b   :  { %v2098_v54 = vmax.f32 %v3692_v43, 0.0 }
 0x7d3   :  { %v2023_v61 = vpop.f32.mrb[24].mxu0 }
 0x7d4   :  { %v2064_v58 = vpop.f32.mrb[28].mxu1  ;;  %v2024_v24 = vadd.f32 %v2023_v61, %v1901_v29  ;;  %v2025_v10 = vpop.f32.mrb[25].mxu0 }
 0x7d5   :  { %v2066_v14 = vpop.f32.mrb[29].mxu1  ;;  %v2026_v39 = vadd.f32 %v2025_v10, %v1903_v15  ;;  %v2027_v17 = vpop.f32.mrb[26].mxu0 }
 0x7d6   :  { %v2068_v35 = vpop.f32.mrb[30].mxu1  ;;  %v2065_v41 = vadd.f32 %v2064_v58, %v2024_v24  ;;  %v2028_v50 = vpop.f32.mrb[27].mxu0 }
 0x7d7   :  { %v2069_v56 = vpop.f32.mrb[31].mxu1  ;;  %v2067_v18 = vadd.f32 %v2066_v14, %v2026_v39 }
 0x7d8   :  { %v3698_v44 = vadd.f32 %v2084_v1, %v2065_v41 }
 0x7d9   :  { %v3700_v19 = vadd.f32 %v2088_v47, %v2067_v18 }
 0x7da   :  { %v2099_v21 = vmax.f32 %v3698_v44, 0.0 }
 0x7db   :  { %v2100_v40 = vmax.f32 %v3700_v19, 0.0 }
 0x7dc   :  { %3294 = dma.done.wait [#allocation10 + $0x6], 24576 }
 0x7dd   :  { %3295 = vsyncadd [#allocation10 + $0x6], 4294942720 }
 0x7de   :  { %3296 = dma.done.wait [#allocation10 + $0x7], 24576 }
 0x7df   :  { %3297 = vsyncadd [#allocation10 + $0x7], 4294942720  ;;  %2526 = vmatprep.mubr.bf16.mxu0 %v3549_v53  ;;  %2567 = vmatprep.mubr.bf16.mxu1 %v3561_v16  ;;  %v2303_v48 = vld [vmem:[#allocation9 + $0x8] sm:$0xff]  ;;  %v2302_v23 = vld [vmem:[#allocation9] sm:$0xff] }
 0x7e0   :  { %v2399_v22 = vld [vmem:[#allocation9 + $0x308] sm:$0xff]  ;;  %2494 = vmatprep.subr.bf16.mxu0 %v2303_v48  ;;  %v2398_v2 = vld [vmem:[#allocation9 + $0x300] sm:$0xff]  ;;  %v2309_v3 = vld [vmem:[#allocation9 + $0x38] sm:$0xff] }
 0x7e1   :  { %2535 = vmatprep.subr.bf16.mxu1 %v2399_v22  ;;  %v2405_v25 = vld [vmem:[#allocation9 + $0x338] sm:$0xff]  ;;  %2495 = vmatpush1.bf16.msra.mxu0 %v2302_v23  ;;  %v2308_v26 = vld [vmem:[#allocation9 + $0x30] sm:$0xff]  ;;  %v2315_v28 = vld [vmem:[#allocation9 + $0x68] sm:$0xff] }
 0x7e2   :  { %2536 = vmatpush1.bf16.msra.mxu1 %v2398_v2  ;;  %2496 = vmatprep.subr.bf16.mxu0 %v2309_v3  ;;  %v2404_v27 = vld [vmem:[#allocation9 + $0x330] sm:$0xff]  ;;  %v2411_v29 = vld [vmem:[#allocation9 + $0x368] sm:$0xff]  ;;  %v2314_v11 = vld [vmem:[#allocation9 + $0x60] sm:$0xff] }
 0x7e3   :  { %2537 = vmatprep.subr.bf16.mxu1 %v2405_v25  ;;  %v2410_v32 = vld [vmem:[#allocation9 + $0x360] sm:$0xff]  ;;  %v2321_v15 = vld [vmem:[#allocation9 + $0x98] sm:$0xff]  ;;  %v2320_v12 = vld [vmem:[#allocation9 + $0x90] sm:$0xff] }
 0x7e4   :  { %v2417_v37 = vld [vmem:[#allocation9 + $0x398] sm:$0xff]  ;;  %v2416_v42 = vld [vmem:[#allocation9 + $0x390] sm:$0xff]  ;;  %v2327_v13 = vld [vmem:[#allocation9 + $0xc8] sm:$0xff] }
 0x7e5   :  { %2497 = vmatpush1.bf16.msra.mxu0 %v2308_v26  ;;  %v2423_v45 = vld [vmem:[#allocation9 + $0x3c8] sm:$0xff]  ;;  %v2326_v46 = vld [vmem:[#allocation9 + $0xc0] sm:$0xff]  ;;  %v2333_v51 = vld [vmem:[#allocation9 + $0xf8] sm:$0xff] }
 0x7e6   :  { %2538 = vmatpush1.bf16.msra.mxu1 %v2404_v27  ;;  %2498 = vmatprep.subr.bf16.mxu0 %v2315_v28  ;;  %v2422_v49 = vld [vmem:[#allocation9 + $0x3c0] sm:$0xff]  ;;  %v2429_v38 = vld [vmem:[#allocation9 + $0x3f8] sm:$0xff]  ;;  %v2332_v20 = vld [vmem:[#allocation9 + $0xf0] sm:$0xff] }
 0x7e7   :  { %2539 = vmatprep.subr.bf16.mxu1 %v2411_v29  ;;  %v2428_v55 = vld [vmem:[#allocation9 + $0x3f0] sm:$0xff]  ;;  %v2339_v57 = vld [vmem:[#allocation9 + $0x128] sm:$0xff]  ;;  %v2338_v60 = vld [vmem:[#allocation9 + $0x120] sm:$0xff] }
 0x7e8   :  { %v2435_v59 = vld [vmem:[#allocation9 + $0x428] sm:$0xff]  ;;  %v2434_v62 = vld [vmem:[#allocation9 + $0x420] sm:$0xff]  ;;  %v2345_v63 = vld [vmem:[#allocation9 + $0x158] sm:$0xff] }
 0x7e9   :  { %2499 = vmatpush1.bf16.msra.mxu0 %v2314_v11  ;;  %v2441_v4 = vld [vmem:[#allocation9 + $0x458] sm:$0xff]  ;;  %v2344_v6 = vld [vmem:[#allocation9 + $0x150] sm:$0xff]  ;;  %v2351_v61 = vld [vmem:[#allocation9 + $0x188] sm:$0xff] }
 0x7ea   :  { %2540 = vmatpush1.bf16.msra.mxu1 %v2410_v32  ;;  %2500 = vmatprep.subr.bf16.mxu0 %v2321_v15  ;;  %v2440_v8 = vld [vmem:[#allocation9 + $0x450] sm:$0xff]  ;;  %v2447_v58 = vld [vmem:[#allocation9 + $0x488] sm:$0xff]  ;;  %v2350_v24 = vld [vmem:[#allocation9 + $0x180] sm:$0xff] }
 0x7eb   :  { %2541 = vmatprep.subr.bf16.mxu1 %v2417_v37  ;;  %v2446_v1 = vld [vmem:[#allocation9 + $0x480] sm:$0xff]  ;;  %v2357_v10 = vld [vmem:[#allocation9 + $0x1b8] sm:$0xff]  ;;  %v2356_v39 = vld [vmem:[#allocation9 + $0x1b0] sm:$0xff] }
 0x7ec   :  { %v2453_v14 = vld [vmem:[#allocation9 + $0x4b8] sm:$0xff]  ;;  %v2452_v47 = vld [vmem:[#allocation9 + $0x4b0] sm:$0xff]  ;;  %v2363_v17 = vld [vmem:[#allocation9 + $0x1e8] sm:$0xff] }
 0x7ed   :  { %2501 = vmatpush1.bf16.msra.mxu0 %v2320_v12  ;;  %v2459_v35 = vld [vmem:[#allocation9 + $0x4e8] sm:$0xff]  ;;  %v2362_v41 = vld [vmem:[#allocation9 + $0x1e0] sm:$0xff]  ;;  %v2369_v56 = vld [vmem:[#allocation9 + $0x218] sm:$0xff] }
 0x7ee   :  { %2542 = vmatpush1.bf16.msra.mxu1 %v2416_v42  ;;  %2502 = vmatprep.subr.bf16.mxu0 %v2327_v13  ;;  %v2458_v50 = vld [vmem:[#allocation9 + $0x4e0] sm:$0xff]  ;;  %v2465_v18 = vld [vmem:[#allocation9 + $0x518] sm:$0xff]  ;;  %v2368_v48 = vld [vmem:[#allocation9 + $0x210] sm:$0xff] }
 0x7ef   :  { %2543 = vmatprep.subr.bf16.mxu1 %v2423_v45  ;;  %v2464_v22 = vld [vmem:[#allocation9 + $0x510] sm:$0xff]  ;;  %v2375_v23 = vld [vmem:[#allocation9 + $0x248] sm:$0xff]  ;;  %v2374_v3 = vld [vmem:[#allocation9 + $0x240] sm:$0xff] }
 0x7f0   :  { %v2471_v2 = vld [vmem:[#allocation9 + $0x548] sm:$0xff]  ;;  %v2470_v25 = vld [vmem:[#allocation9 + $0x540] sm:$0xff]  ;;  %v2381_v26 = vld [vmem:[#allocation9 + $0x278] sm:$0xff] }
 0x7f1   :  { %2503 = vmatpush1.bf16.msra.mxu0 %v2326_v46  ;;  %v2477_v27 = vld [vmem:[#allocation9 + $0x578] sm:$0xff]  ;;  %v2380_v28 = vld [vmem:[#allocation9 + $0x270] sm:$0xff]  ;;  %v2387_v11 = vld [vmem:[#allocation9 + $0x2a8] sm:$0xff] }
 0x7f2   :  { %2544 = vmatpush1.bf16.msra.mxu1 %v2422_v49  ;;  %2504 = vmatprep.subr.bf16.mxu0 %v2333_v51  ;;  %v2476_v29 = vld [vmem:[#allocation9 + $0x570] sm:$0xff]  ;;  %v2483_v32 = vld [vmem:[#allocation9 + $0x5a8] sm:$0xff]  ;;  %v2386_v15 = vld [vmem:[#allocation9 + $0x2a0] sm:$0xff] }
 0x7f3   :  { %2545 = vmatprep.subr.bf16.mxu1 %v2429_v38  ;;  %v2482_v37 = vld [vmem:[#allocation9 + $0x5a0] sm:$0xff]  ;;  %v2393_v12 = vld [vmem:[#allocation9 + $0x2d8] sm:$0xff]  ;;  %v2392_v13 = vld [vmem:[#allocation9 + $0x2d0] sm:$0xff] }
 0x7f4   :  { %v2489_v42 = vld [vmem:[#allocation9 + $0x5d8] sm:$0xff]  ;;  %v2488_v45 = vld [vmem:[#allocation9 + $0x5d0] sm:$0xff]  ;;  %v2219_v43 = vld [vmem:[#allocation8 + $0x368] sm:$0xff] }
 0x7f5   :  { %2505 = vmatpush1.bf16.msra.mxu0 %v2332_v20  ;;  %v2305_v46 = vld [vmem:[#allocation9 + $0x18] sm:$0xff]  ;;  %v2304_v51 = vld [vmem:[#allocation9 + $0x10] sm:$0xff]  ;;  %v2311_v20 = vld [vmem:[#allocation9 + $0x48] sm:$0xff] }
 0x7f6   :  { %2546 = vmatpush1.bf16.msra.mxu1 %v2428_v55  ;;  %2506 = vmatprep.subr.bf16.mxu0 %v2339_v57  ;;  %v2401_v49 = vld [vmem:[#allocation9 + $0x318] sm:$0xff]  ;;  %v2400_v38 = vld [vmem:[#allocation9 + $0x310] sm:$0xff]  ;;  %v2407_v55 = vld [vmem:[#allocation9 + $0x348] sm:$0xff] }
 0x7f7   :  { %2547 = vmatprep.subr.bf16.mxu1 %v2435_v59  ;;  %v2310_v57 = vld [vmem:[#allocation9 + $0x40] sm:$0xff]  ;;  %v2129_v19 = vld [vmem:[#allocation8 + $0x98] sm:$0xff] }
 0x7f8   :  { %v2406_v59 = vld [vmem:[#allocation9 + $0x340] sm:$0xff]  ;;  %v2125_v44 = vld [vmem:[#allocation8 + $0x78] sm:$0xff] }
 0x7f9   :  { %2507 = vmatpush1.bf16.msra.mxu0 %v2338_v60  ;;  %v2317_v60 = vld [vmem:[#allocation9 + $0x78] sm:$0xff]  ;;  %v2118_v36 = vld [vmem:[#allocation8 + $0x40] sm:$0xff] }
 0x7fa   :  { %2548 = vmatpush1.bf16.msra.mxu1 %v2434_v62  ;;  %2508 = vmatprep.subr.bf16.mxu0 %v2345_v63  ;;  %v2413_v62 = vld [vmem:[#allocation9 + $0x378] sm:$0xff]  ;;  %v2316_v63 = vld [vmem:[#allocation9 + $0x70] sm:$0xff] }
 0x7fb   :  { %2549 = vmatprep.subr.bf16.mxu1 %v2441_v4  ;;  %v2412_v4 = vld [vmem:[#allocation9 + $0x370] sm:$0xff] }
 0x7fd   :  { %2509 = vmatpush1.bf16.msra.mxu0 %v2344_v6  ;;  %v2323_v6 = vld [vmem:[#allocation9 + $0xa8] sm:$0xff] }
 0x7fe   :  { %2550 = vmatpush1.bf16.msra.mxu1 %v2440_v8  ;;  %2510 = vmatprep.subr.bf16.mxu0 %v2351_v61  ;;  %v2419_v8 = vld [vmem:[#allocation9 + $0x3a8] sm:$0xff]  ;;  %v2322_v61 = vld [vmem:[#allocation9 + $0xa0] sm:$0xff] }
 0x7ff   :  { %2551 = vmatprep.subr.bf16.mxu1 %v2447_v58  ;;  %v2418_v58 = vld [vmem:[#allocation9 + $0x3a0] sm:$0xff] }
 0x801   :  { %2511 = vmatpush1.bf16.msra.mxu0 %v2350_v24  ;;  %v2329_v24 = vld [vmem:[#allocation9 + $0xd8] sm:$0xff] }
 0x802   :  { %2552 = vmatpush1.bf16.msra.mxu1 %v2446_v1  ;;  %2512 = vmatprep.subr.bf16.mxu0 %v2357_v10  ;;  %v2425_v1 = vld [vmem:[#allocation9 + $0x3d8] sm:$0xff]  ;;  %v2328_v10 = vld [vmem:[#allocation9 + $0xd0] sm:$0xff] }
 0x803   :  { %2553 = vmatprep.subr.bf16.mxu1 %v2453_v14  ;;  %v2424_v14 = vld [vmem:[#allocation9 + $0x3d0] sm:$0xff] }
 0x805   :  { %2513 = vmatpush1.bf16.msra.mxu0 %v2356_v39  ;;  %v2335_v39 = vld [vmem:[#allocation9 + $0x108] sm:$0xff] }
 0x806   :  { %2554 = vmatpush1.bf16.msra.mxu1 %v2452_v47  ;;  %2514 = vmatprep.subr.bf16.mxu0 %v2363_v17  ;;  %v2431_v47 = vld [vmem:[#allocation9 + $0x408] sm:$0xff]  ;;  %v2334_v17 = vld [vmem:[#allocation9 + $0x100] sm:$0xff] }
 0x807   :  { %2555 = vmatprep.subr.bf16.mxu1 %v2459_v35  ;;  %v2430_v35 = vld [vmem:[#allocation9 + $0x400] sm:$0xff] }
 0x809   :  { %2515 = vmatpush1.bf16.msra.mxu0 %v2362_v41  ;;  %v2341_v41 = vld [vmem:[#allocation9 + $0x138] sm:$0xff] }
 0x80a   :  { %2556 = vmatpush1.bf16.msra.mxu1 %v2458_v50  ;;  %2516 = vmatprep.subr.bf16.mxu0 %v2369_v56  ;;  %v2437_v50 = vld [vmem:[#allocation9 + $0x438] sm:$0xff]  ;;  %v2340_v56 = vld [vmem:[#allocation9 + $0x130] sm:$0xff] }
 0x80b   :  { %2557 = vmatprep.subr.bf16.mxu1 %v2465_v18  ;;  %v2436_v18 = vld [vmem:[#allocation9 + $0x430] sm:$0xff] }
 0x80d   :  { %2517 = vmatpush1.bf16.msra.mxu0 %v2368_v48  ;;  %v2347_v48 = vld [vmem:[#allocation9 + $0x168] sm:$0xff] }
 0x80e   :  { %2558 = vmatpush1.bf16.msra.mxu1 %v2464_v22  ;;  %2518 = vmatprep.subr.bf16.mxu0 %v2375_v23  ;;  %v2443_v22 = vld [vmem:[#allocation9 + $0x468] sm:$0xff]  ;;  %v2346_v23 = vld [vmem:[#allocation9 + $0x160] sm:$0xff] }
 0x80f   :  { %2559 = vmatprep.subr.bf16.mxu1 %v2471_v2  ;;  %v2442_v2 = vld [vmem:[#allocation9 + $0x460] sm:$0xff] }
 0x811   :  { %2519 = vmatpush1.bf16.msra.mxu0 %v2374_v3  ;;  %v2353_v3 = vld [vmem:[#allocation9 + $0x198] sm:$0xff] }
 0x812   :  { %2560 = vmatpush1.bf16.msra.mxu1 %v2470_v25  ;;  %2520 = vmatprep.subr.bf16.mxu0 %v2381_v26  ;;  %v2449_v25 = vld [vmem:[#allocation9 + $0x498] sm:$0xff]  ;;  %v2352_v26 = vld [vmem:[#allocation9 + $0x190] sm:$0xff] }
 0x813   :  { %2561 = vmatprep.subr.bf16.mxu1 %v2477_v27  ;;  %v2448_v27 = vld [vmem:[#allocation9 + $0x490] sm:$0xff] }
 0x815   :  { %2521 = vmatpush1.bf16.msra.mxu0 %v2380_v28  ;;  %v2359_v28 = vld [vmem:[#allocation9 + $0x1c8] sm:$0xff] }
 0x816   :  { %2562 = vmatpush1.bf16.msra.mxu1 %v2476_v29  ;;  %2522 = vmatprep.subr.bf16.mxu0 %v2387_v11  ;;  %v2455_v29 = vld [vmem:[#allocation9 + $0x4c8] sm:$0xff]  ;;  %v2358_v11 = vld [vmem:[#allocation9 + $0x1c0] sm:$0xff] }
 0x817   :  { %2563 = vmatprep.subr.bf16.mxu1 %v2483_v32  ;;  %v2454_v32 = vld [vmem:[#allocation9 + $0x4c0] sm:$0xff] }
 0x819   :  { %2523 = vmatpush1.bf16.msra.mxu0 %v2386_v15  ;;  %v2365_v15 = vld [vmem:[#allocation9 + $0x1f8] sm:$0xff] }
 0x81a   :  { %2564 = vmatpush1.bf16.msra.mxu1 %v2482_v37  ;;  %2524 = vmatprep.subr.bf16.mxu0 %v2393_v12  ;;  %v2461_v37 = vld [vmem:[#allocation9 + $0x4f8] sm:$0xff]  ;;  %v2364_v12 = vld [vmem:[#allocation9 + $0x1f0] sm:$0xff] }
 0x81b   :  { %2565 = vmatprep.subr.bf16.mxu1 %v2489_v42  ;;  %v2460_v42 = vld [vmem:[#allocation9 + $0x4f0] sm:$0xff] }
 0x81d   :  { %2525 = vmatpush1.bf16.msra.mxu0 %v2392_v13  ;;  %v2371_v13 = vld [vmem:[#allocation9 + $0x228] sm:$0xff] }
 0x81e   :  { %2566 = vmatpush1.bf16.msra.mxu1 %v2488_v45  ;;  %2576 = vmatprep.subr.bf16.mxu0 %v2305_v46  ;;  %v2467_v45 = vld [vmem:[#allocation9 + $0x528] sm:$0xff]  ;;  %v2370_v46 = vld [vmem:[#allocation9 + $0x220] sm:$0xff] }
 0x81f   :  { %2617 = vmatprep.subr.bf16.mxu1 %v2401_v49  ;;  %v2466_v49 = vld [vmem:[#allocation9 + $0x520] sm:$0xff] }
 0x820   :  { %2527 = vmatmul.mubr.bf16.vlgmr.msra.gmra.mrb[28].mxu0 %v3556_v9 }
 0x821   :  { %2568 = vmatmul.mubr.bf16.vlgmr.msra.gmra.mrb[32].mxu1 %v3570_v52  ;;  %2577 = vmatpush1.bf16.msra.mxu0 %v2304_v51  ;;  %v2377_v51 = vld [vmem:[#allocation9 + $0x258] sm:$0xff] }
 0x822   :  { %2618 = vmatpush1.bf16.msra.mxu1 %v2400_v38  ;;  %2578 = vmatprep.subr.bf16.mxu0 %v2311_v20  ;;  %v2473_v38 = vld [vmem:[#allocation9 + $0x558] sm:$0xff]  ;;  %v2376_v20 = vld [vmem:[#allocation9 + $0x250] sm:$0xff] }
 0x823   :  { %2619 = vmatprep.subr.bf16.mxu1 %v2407_v55  ;;  %2608 = vmatprep.mubr.bf16.mxu0 %v3549_v53  ;;  %v2472_v55 = vld [vmem:[#allocation9 + $0x550] sm:$0xff] }
 0x824   :  { %2649 = vmatprep.mubr.bf16.mxu1 %v3561_v16 }
 0x825   :  { %2579 = vmatpush1.bf16.msra.mxu0 %v2310_v57  ;;  %v2383_v57 = vld [vmem:[#allocation9 + $0x288] sm:$0xff] }
 0x826   :  { %2620 = vmatpush1.bf16.msra.mxu1 %v2406_v59  ;;  %2580 = vmatprep.subr.bf16.mxu0 %v2317_v60  ;;  %v2479_v59 = vld [vmem:[#allocation9 + $0x588] sm:$0xff]  ;;  %v2382_v60 = vld [vmem:[#allocation9 + $0x280] sm:$0xff] }
 0x827   :  { %2621 = vmatprep.subr.bf16.mxu1 %v2413_v62  ;;  %v2478_v62 = vld [vmem:[#allocation9 + $0x580] sm:$0xff] }
 0x829   :  { %2581 = vmatpush1.bf16.msra.mxu0 %v2316_v63  ;;  %v2389_v63 = vld [vmem:[#allocation9 + $0x2b8] sm:$0xff] }
 0x82a   :  { %2622 = vmatpush1.bf16.msra.mxu1 %v2412_v4  ;;  %2582 = vmatprep.subr.bf16.mxu0 %v2323_v6  ;;  %v2485_v4 = vld [vmem:[#allocation9 + $0x5b8] sm:$0xff]  ;;  %v2388_v6 = vld [vmem:[#allocation9 + $0x2b0] sm:$0xff] }
 0x82b   :  { %2623 = vmatprep.subr.bf16.mxu1 %v2419_v8  ;;  %v2484_v8 = vld [vmem:[#allocation9 + $0x5b0] sm:$0xff] }
 0x82d   :  { %2583 = vmatpush1.bf16.msra.mxu0 %v2322_v61  ;;  %v2395_v61 = vld [vmem:[#allocation9 + $0x2e8] sm:$0xff] }
 0x82e   :  { %2624 = vmatpush1.bf16.msra.mxu1 %v2418_v58  ;;  %2584 = vmatprep.subr.bf16.mxu0 %v2329_v24  ;;  %v2491_v58 = vld [vmem:[#allocation9 + $0x5e8] sm:$0xff]  ;;  %v2394_v24 = vld [vmem:[#allocation9 + $0x2e0] sm:$0xff] }
 0x82f   :  { %2625 = vmatprep.subr.bf16.mxu1 %v2425_v1  ;;  %v2490_v1 = vld [vmem:[#allocation9 + $0x5e0] sm:$0xff] }
 0x831   :  { %2585 = vmatpush1.bf16.msra.mxu0 %v2328_v10  ;;  %v2307_v10 = vld [vmem:[#allocation9 + $0x28] sm:$0xff] }
 0x832   :  { %2626 = vmatpush1.bf16.msra.mxu1 %v2424_v14  ;;  %2586 = vmatprep.subr.bf16.mxu0 %v2335_v39  ;;  %v2403_v14 = vld [vmem:[#allocation9 + $0x328] sm:$0xff]  ;;  %v2306_v39 = vld [vmem:[#allocation9 + $0x20] sm:$0xff] }
 0x833   :  { %2627 = vmatprep.subr.bf16.mxu1 %v2431_v47  ;;  %v2402_v47 = vld [vmem:[#allocation9 + $0x320] sm:$0xff] }
 0x835   :  { %2587 = vmatpush1.bf16.msra.mxu0 %v2334_v17  ;;  %v2313_v17 = vld [vmem:[#allocation9 + $0x58] sm:$0xff] }
 0x836   :  { %2628 = vmatpush1.bf16.msra.mxu1 %v2430_v35  ;;  %2588 = vmatprep.subr.bf16.mxu0 %v2341_v41  ;;  %v2409_v35 = vld [vmem:[#allocation9 + $0x358] sm:$0xff]  ;;  %v2312_v41 = vld [vmem:[#allocation9 + $0x50] sm:$0xff] }
 0x837   :  { %2629 = vmatprep.subr.bf16.mxu1 %v2437_v50  ;;  %v2408_v50 = vld [vmem:[#allocation9 + $0x350] sm:$0xff] }
 0x839   :  { %2589 = vmatpush1.bf16.msra.mxu0 %v2340_v56  ;;  %v2319_v56 = vld [vmem:[#allocation9 + $0x88] sm:$0xff] }
 0x83a   :  { %2630 = vmatpush1.bf16.msra.mxu1 %v2436_v18  ;;  %2590 = vmatprep.subr.bf16.mxu0 %v2347_v48  ;;  %v2415_v18 = vld [vmem:[#allocation9 + $0x388] sm:$0xff]  ;;  %v2318_v48 = vld [vmem:[#allocation9 + $0x80] sm:$0xff] }
 0x83b   :  { %2631 = vmatprep.subr.bf16.mxu1 %v2443_v22  ;;  %v2414_v22 = vld [vmem:[#allocation9 + $0x380] sm:$0xff] }
 0x83d   :  { %2591 = vmatpush1.bf16.msra.mxu0 %v2346_v23  ;;  %v2325_v23 = vld [vmem:[#allocation9 + $0xb8] sm:$0xff] }
 0x83e   :  { %2632 = vmatpush1.bf16.msra.mxu1 %v2442_v2  ;;  %2592 = vmatprep.subr.bf16.mxu0 %v2353_v3  ;;  %v2421_v2 = vld [vmem:[#allocation9 + $0x3b8] sm:$0xff]  ;;  %v2324_v3 = vld [vmem:[#allocation9 + $0xb0] sm:$0xff] }
 0x83f   :  { %2633 = vmatprep.subr.bf16.mxu1 %v2449_v25  ;;  %v2420_v25 = vld [vmem:[#allocation9 + $0x3b0] sm:$0xff] }
 0x841   :  { %2593 = vmatpush1.bf16.msra.mxu0 %v2352_v26  ;;  %v2331_v26 = vld [vmem:[#allocation9 + $0xe8] sm:$0xff] }
 0x842   :  { %2634 = vmatpush1.bf16.msra.mxu1 %v2448_v27  ;;  %2594 = vmatprep.subr.bf16.mxu0 %v2359_v28  ;;  %v2427_v27 = vld [vmem:[#allocation9 + $0x3e8] sm:$0xff]  ;;  %v2337_v28 = vld [vmem:[#allocation9 + $0x118] sm:$0xff] }
 0x843   :  { %2635 = vmatprep.subr.bf16.mxu1 %v2455_v29  ;;  %v2433_v29 = vld [vmem:[#allocation9 + $0x418] sm:$0xff] }
 0x845   :  { %2595 = vmatpush1.bf16.msra.mxu0 %v2358_v11  ;;  %v2336_v11 = vld [vmem:[#allocation9 + $0x110] sm:$0xff] }
 0x846   :  { %2636 = vmatpush1.bf16.msra.mxu1 %v2454_v32  ;;  %2596 = vmatprep.subr.bf16.mxu0 %v2365_v15  ;;  %v2432_v32 = vld [vmem:[#allocation9 + $0x410] sm:$0xff]  ;;  %v2343_v15 = vld [vmem:[#allocation9 + $0x148] sm:$0xff] }
 0x847   :  { %2637 = vmatprep.subr.bf16.mxu1 %v2461_v37  ;;  %v2439_v37 = vld [vmem:[#allocation9 + $0x448] sm:$0xff] }
 0x849   :  { %2597 = vmatpush1.bf16.msra.mxu0 %v2364_v12  ;;  %v2342_v12 = vld [vmem:[#allocation9 + $0x140] sm:$0xff] }
 0x84a   :  { %2638 = vmatpush1.bf16.msra.mxu1 %v2460_v42  ;;  %2598 = vmatprep.subr.bf16.mxu0 %v2371_v13  ;;  %v2438_v42 = vld [vmem:[#allocation9 + $0x440] sm:$0xff]  ;;  %v2349_v13 = vld [vmem:[#allocation9 + $0x178] sm:$0xff] }
 0x84b   :  { %2639 = vmatprep.subr.bf16.mxu1 %v2467_v45  ;;  %v2445_v45 = vld [vmem:[#allocation9 + $0x478] sm:$0xff] }
 0x84d   :  { %2599 = vmatpush1.bf16.msra.mxu0 %v2370_v46  ;;  %v2348_v46 = vld [vmem:[#allocation9 + $0x170] sm:$0xff] }
 0x84e   :  { %2640 = vmatpush1.bf16.msra.mxu1 %v2466_v49  ;;  %2600 = vmatprep.subr.bf16.mxu0 %v2377_v51  ;;  %v2444_v49 = vld [vmem:[#allocation9 + $0x470] sm:$0xff]  ;;  %v2355_v51 = vld [vmem:[#allocation9 + $0x1a8] sm:$0xff] }
 0x84f   :  { %2641 = vmatprep.subr.bf16.mxu1 %v2473_v38  ;;  %v2451_v38 = vld [vmem:[#allocation9 + $0x4a8] sm:$0xff] }
 0x851   :  { %2601 = vmatpush1.bf16.msra.mxu0 %v2376_v20  ;;  %v2354_v20 = vld [vmem:[#allocation9 + $0x1a0] sm:$0xff] }
 0x852   :  { %2642 = vmatpush1.bf16.msra.mxu1 %v2472_v55  ;;  %2602 = vmatprep.subr.bf16.mxu0 %v2383_v57  ;;  %v2450_v55 = vld [vmem:[#allocation9 + $0x4a0] sm:$0xff]  ;;  %v2361_v57 = vld [vmem:[#allocation9 + $0x1d8] sm:$0xff] }
 0x853   :  { %2643 = vmatprep.subr.bf16.mxu1 %v2479_v59  ;;  %v2457_v59 = vld [vmem:[#allocation9 + $0x4d8] sm:$0xff] }
 0x855   :  { %2603 = vmatpush1.bf16.msra.mxu0 %v2382_v60  ;;  %v2360_v60 = vld [vmem:[#allocation9 + $0x1d0] sm:$0xff] }
 0x856   :  { %2644 = vmatpush1.bf16.msra.mxu1 %v2478_v62  ;;  %2604 = vmatprep.subr.bf16.mxu0 %v2389_v63  ;;  %v2456_v62 = vld [vmem:[#allocation9 + $0x4d0] sm:$0xff]  ;;  %v2367_v63 = vld [vmem:[#allocation9 + $0x208] sm:$0xff] }
 0x857   :  { %2645 = vmatprep.subr.bf16.mxu1 %v2485_v4  ;;  %v2463_v4 = vld [vmem:[#allocation9 + $0x508] sm:$0xff] }
 0x859   :  { %2605 = vmatpush1.bf16.msra.mxu0 %v2388_v6  ;;  %v2366_v6 = vld [vmem:[#allocation9 + $0x200] sm:$0xff] }
 0x85a   :  { %2646 = vmatpush1.bf16.msra.mxu1 %v2484_v8  ;;  %2606 = vmatprep.subr.bf16.mxu0 %v2395_v61  ;;  %v2462_v8 = vld [vmem:[#allocation9 + $0x500] sm:$0xff]  ;;  %v2373_v61 = vld [vmem:[#allocation9 + $0x238] sm:$0xff] }
 0x85b   :  { %2647 = vmatprep.subr.bf16.mxu1 %v2491_v58  ;;  %v2469_v58 = vld [vmem:[#allocation9 + $0x538] sm:$0xff] }
 0x85d   :  { %2607 = vmatpush1.bf16.msra.mxu0 %v2394_v24  ;;  %v2372_v24 = vld [vmem:[#allocation9 + $0x230] sm:$0xff] }
 0x85e   :  { %2648 = vmatpush1.bf16.msra.mxu1 %v2490_v1  ;;  %2658 = vmatprep.subr.bf16.mxu0 %v2307_v10  ;;  %v2468_v1 = vld [vmem:[#allocation9 + $0x530] sm:$0xff]  ;;  %v2379_v10 = vld [vmem:[#allocation9 + $0x268] sm:$0xff] }
 0x85f   :  { %2699 = vmatprep.subr.bf16.mxu1 %v2403_v14  ;;  %v2475_v14 = vld [vmem:[#allocation9 + $0x568] sm:$0xff] }
 0x860   :  { %2609 = vmatmul.mubr.bf16.vlgmr.msra.gmra.mrb[32].mxu0 %v3556_v9 }
 0x861   :  { %2650 = vmatmul.mubr.bf16.vlgmr.msra.gmra.mrb[36].mxu1 %v3570_v52  ;;  %2659 = vmatpush1.bf16.msra.mxu0 %v2306_v39  ;;  %v2378_v39 = vld [vmem:[#allocation9 + $0x260] sm:$0xff] }
 0x862   :  { %2700 = vmatpush1.bf16.msra.mxu1 %v2402_v47  ;;  %2660 = vmatprep.subr.bf16.mxu0 %v2313_v17  ;;  %v2474_v47 = vld [vmem:[#allocation9 + $0x560] sm:$0xff]  ;;  %v2385_v17 = vld [vmem:[#allocation9 + $0x298] sm:$0xff] }
 0x863   :  { %2701 = vmatprep.subr.bf16.mxu1 %v2409_v35  ;;  %2690 = vmatprep.mubr.bf16.mxu0 %v3549_v53  ;;  %v2330_v53 = vld [vmem:[#allocation9 + $0xe0] sm:$0xff]  ;;  %v2481_v35 = vld [vmem:[#allocation9 + $0x598] sm:$0xff] }
 0x864   :  { %2731 = vmatprep.mubr.bf16.mxu1 %v3561_v16  ;;  %v2426_v16 = vld [vmem:[#allocation9 + $0x3e0] sm:$0xff] }
 0x865   :  { %2661 = vmatpush1.bf16.msra.mxu0 %v2312_v41  ;;  %v2384_v41 = vld [vmem:[#allocation9 + $0x290] sm:$0xff] }
 0x866   :  { %2702 = vmatpush1.bf16.msra.mxu1 %v2408_v50  ;;  %2662 = vmatprep.subr.bf16.mxu0 %v2319_v56  ;;  %v2480_v50 = vld [vmem:[#allocation9 + $0x590] sm:$0xff]  ;;  %v2391_v56 = vld [vmem:[#allocation9 + $0x2c8] sm:$0xff] }
 0x867   :  { %2703 = vmatprep.subr.bf16.mxu1 %v2415_v18  ;;  %v2487_v18 = vld [vmem:[#allocation9 + $0x5c8] sm:$0xff] }
 0x869   :  { %2663 = vmatpush1.bf16.msra.mxu0 %v2318_v48  ;;  %v2390_v48 = vld [vmem:[#allocation9 + $0x2c0] sm:$0xff] }
 0x86a   :  { %2704 = vmatpush1.bf16.msra.mxu1 %v2414_v22  ;;  %2664 = vmatprep.subr.bf16.mxu0 %v2325_v23  ;;  %v2486_v22 = vld [vmem:[#allocation9 + $0x5c0] sm:$0xff]  ;;  %v2397_v23 = vld [vmem:[#allocation9 + $0x2f8] sm:$0xff] }
 0x86b   :  { %2705 = vmatprep.subr.bf16.mxu1 %v2421_v2  ;;  %v2493_v2 = vld [vmem:[#allocation9 + $0x5f8] sm:$0xff] }
 0x86d   :  { %2665 = vmatpush1.bf16.msra.mxu0 %v2324_v3  ;;  %v2396_v3 = vld [vmem:[#allocation9 + $0x2f0] sm:$0xff] }
 0x86e   :  { %2706 = vmatpush1.bf16.msra.mxu1 %v2420_v25  ;;  %2666 = vmatprep.subr.bf16.mxu0 %v2331_v26  ;;  %v2492_v25 = vld [vmem:[#allocation9 + $0x5f0] sm:$0xff]  ;;  %v2111_v26 = vld [vmem:[#allocation8 + $0x8] sm:$0xff] }
 0x86f   :  { %2707 = vmatprep.subr.bf16.mxu1 %v2427_v27  ;;  %v2207_v27 = vld [vmem:[#allocation8 + $0x308] sm:$0xff] }
 0x871   :  { %2667 = vmatpush1.bf16.msra.mxu0 %v2330_v53  ;;  %v2110_v53 = vld [vmem:[#allocation8] sm:$0xff] }
 0x872   :  { %2708 = vmatpush1.bf16.msra.mxu1 %v2426_v16  ;;  %2668 = vmatprep.subr.bf16.mxu0 %v2337_v28  ;;  %v2206_v16 = vld [vmem:[#allocation8 + $0x300] sm:$0xff]  ;;  %v2117_v28 = vld [vmem:[#allocation8 + $0x38] sm:$0xff] }
 0x873   :  { %2709 = vmatprep.subr.bf16.mxu1 %v2433_v29  ;;  %v2213_v29 = vld [vmem:[#allocation8 + $0x338] sm:$0xff] }
 0x875   :  { %2669 = vmatpush1.bf16.msra.mxu0 %v2336_v11  ;;  %v3717_v11 = vpack.c.bf16 %v2098_v54, %v2098_v54  ;;  %v2122_v54 = vld [vmem:[#allocation8 + $0x60] sm:$0xff] }
 0x876   :  { %2710 = vmatpush1.bf16.msra.mxu1 %v2432_v32  ;;  %2670 = vmatprep.subr.bf16.mxu0 %v2343_v15  ;;  %v3722_v32 = vpack.c.bf16 %v2100_v40, %v2100_v40  ;;  %v2116_v15 = vld [vmem:[#allocation8 + $0x30] sm:$0xff] }
 0x877   :  { %2711 = vmatprep.subr.bf16.mxu1 %v2439_v37  ;;  %v2212_v37 = vld [vmem:[#allocation8 + $0x330] sm:$0xff] }
 0x878   :  { %v2128_v40 = vld [vmem:[#allocation8 + $0x90] sm:$0xff] }
 0x879   :  { %2671 = vmatpush1.bf16.msra.mxu0 %v2342_v12  ;;  %v2123_v12 = vld [vmem:[#allocation8 + $0x68] sm:$0xff] }
 0x87a   :  { %2712 = vmatpush1.bf16.msra.mxu1 %v2438_v42  ;;  %2672 = vmatprep.subr.bf16.mxu0 %v2349_v13  ;;  %v2224_v42 = vld [vmem:[#allocation8 + $0x390] sm:$0xff]  ;;  %v2135_v13 = vld [vmem:[#allocation8 + $0xc8] sm:$0xff] }
 0x87b   :  { %2713 = vmatprep.subr.bf16.mxu1 %v2445_v45  ;;  %v2231_v45 = vld [vmem:[#allocation8 + $0x3c8] sm:$0xff] }
 0x87d   :  { %2673 = vmatpush1.bf16.msra.mxu0 %v2348_v46  ;;  %v2134_v46 = vld [vmem:[#allocation8 + $0xc0] sm:$0xff] }
 0x87e   :  { %2714 = vmatpush1.bf16.msra.mxu1 %v2444_v49  ;;  %2674 = vmatprep.subr.bf16.mxu0 %v2355_v51  ;;  %v2230_v49 = vld [vmem:[#allocation8 + $0x3c0] sm:$0xff]  ;;  %v2141_v51 = vld [vmem:[#allocation8 + $0xf8] sm:$0xff] }
 0x87f   :  { %2715 = vmatprep.subr.bf16.mxu1 %v2451_v38  ;;  %v2237_v38 = vld [vmem:[#allocation8 + $0x3f8] sm:$0xff] }
 0x881   :  { %2675 = vmatpush1.bf16.msra.mxu0 %v2354_v20  ;;  %v2140_v20 = vld [vmem:[#allocation8 + $0xf0] sm:$0xff] }
 0x882   :  { %2716 = vmatpush1.bf16.msra.mxu1 %v2450_v55  ;;  %2676 = vmatprep.subr.bf16.mxu0 %v2361_v57  ;;  %v2236_v55 = vld [vmem:[#allocation8 + $0x3f0] sm:$0xff]  ;;  %v2147_v57 = vld [vmem:[#allocation8 + $0x128] sm:$0xff] }
 0x883   :  { %2717 = vmatprep.subr.bf16.mxu1 %v2457_v59  ;;  %v2243_v59 = vld [vmem:[#allocation8 + $0x428] sm:$0xff] }
 0x885   :  { %2677 = vmatpush1.bf16.msra.mxu0 %v2360_v60  ;;  %v2146_v60 = vld [vmem:[#allocation8 + $0x120] sm:$0xff] }
 0x886   :  { %2718 = vmatpush1.bf16.msra.mxu1 %v2456_v62  ;;  %2678 = vmatprep.subr.bf16.mxu0 %v2367_v63  ;;  %v2242_v62 = vld [vmem:[#allocation8 + $0x420] sm:$0xff]  ;;  %v2153_v63 = vld [vmem:[#allocation8 + $0x158] sm:$0xff] }
 0x887   :  { %2719 = vmatprep.subr.bf16.mxu1 %v2463_v4  ;;  %v2249_v4 = vld [vmem:[#allocation8 + $0x458] sm:$0xff] }
 0x889   :  { %2679 = vmatpush1.bf16.msra.mxu0 %v2366_v6  ;;  %v2152_v6 = vld [vmem:[#allocation8 + $0x150] sm:$0xff] }
 0x88a   :  { %2720 = vmatpush1.bf16.msra.mxu1 %v2462_v8  ;;  %2680 = vmatprep.subr.bf16.mxu0 %v2373_v61  ;;  %v2248_v8 = vld [vmem:[#allocation8 + $0x450] sm:$0xff]  ;;  %v2159_v61 = vld [vmem:[#allocation8 + $0x188] sm:$0xff] }
 0x88b   :  { %2721 = vmatprep.subr.bf16.mxu1 %v2469_v58  ;;  %v2255_v58 = vld [vmem:[#allocation8 + $0x488] sm:$0xff] }
 0x88d   :  { %2681 = vmatpush1.bf16.msra.mxu0 %v2372_v24  ;;  %v2158_v24 = vld [vmem:[#allocation8 + $0x180] sm:$0xff] }
 0x88e   :  { %2722 = vmatpush1.bf16.msra.mxu1 %v2468_v1  ;;  %2682 = vmatprep.subr.bf16.mxu0 %v2379_v10  ;;  %v2254_v1 = vld [vmem:[#allocation8 + $0x480] sm:$0xff]  ;;  %v2165_v10 = vld [vmem:[#allocation8 + $0x1b8] sm:$0xff] }
 0x88f   :  { %2723 = vmatprep.subr.bf16.mxu1 %v2475_v14  ;;  %v2261_v14 = vld [vmem:[#allocation8 + $0x4b8] sm:$0xff] }
 0x891   :  { %2683 = vmatpush1.bf16.msra.mxu0 %v2378_v39  ;;  %v2164_v39 = vld [vmem:[#allocation8 + $0x1b0] sm:$0xff] }
 0x892   :  { %2724 = vmatpush1.bf16.msra.mxu1 %v2474_v47  ;;  %2684 = vmatprep.subr.bf16.mxu0 %v2385_v17  ;;  %v2260_v47 = vld [vmem:[#allocation8 + $0x4b0] sm:$0xff]  ;;  %v2171_v17 = vld [vmem:[#allocation8 + $0x1e8] sm:$0xff] }
 0x893   :  { %2725 = vmatprep.subr.bf16.mxu1 %v2481_v35  ;;  %v2267_v35 = vld [vmem:[#allocation8 + $0x4e8] sm:$0xff] }
 0x895   :  { %2685 = vmatpush1.bf16.msra.mxu0 %v2384_v41  ;;  %v2170_v41 = vld [vmem:[#allocation8 + $0x1e0] sm:$0xff] }
 0x896   :  { %2726 = vmatpush1.bf16.msra.mxu1 %v2480_v50  ;;  %2686 = vmatprep.subr.bf16.mxu0 %v2391_v56  ;;  %v2266_v50 = vld [vmem:[#allocation8 + $0x4e0] sm:$0xff]  ;;  %v2177_v56 = vld [vmem:[#allocation8 + $0x218] sm:$0xff] }
 0x897   :  { %2727 = vmatprep.subr.bf16.mxu1 %v2487_v18  ;;  %v2273_v18 = vld [vmem:[#allocation8 + $0x518] sm:$0xff] }
 0x899   :  { %2687 = vmatpush1.bf16.msra.mxu0 %v2390_v48  ;;  %v2176_v48 = vld [vmem:[#allocation8 + $0x210] sm:$0xff] }
 0x89a   :  { %2728 = vmatpush1.bf16.msra.mxu1 %v2486_v22  ;;  %2688 = vmatprep.subr.bf16.mxu0 %v2397_v23  ;;  %v2272_v22 = vld [vmem:[#allocation8 + $0x510] sm:$0xff]  ;;  %v2183_v23 = vld [vmem:[#allocation8 + $0x248] sm:$0xff] }
 0x89b   :  { %2729 = vmatprep.subr.bf16.mxu1 %v2493_v2  ;;  %v2279_v2 = vld [vmem:[#allocation8 + $0x548] sm:$0xff] }
 0x89d   :  { %2689 = vmatpush1.bf16.msra.mxu0 %v2396_v3  ;;  %v2182_v3 = vld [vmem:[#allocation8 + $0x240] sm:$0xff] }
 0x89e   :  { %2730 = vmatpush1.bf16.msra.mxu1 %v2492_v25  ;;  %2740 = vmatprep.subr.bf16.mxu0 %v2111_v26  ;;  %v2278_v25 = vld [vmem:[#allocation8 + $0x540] sm:$0xff]  ;;  %v2189_v26 = vld [vmem:[#allocation8 + $0x278] sm:$0xff] }
 0x89f   :  { %2781 = vmatprep.subr.bf16.mxu1 %v2207_v27  ;;  %v2285_v27 = vld [vmem:[#allocation8 + $0x578] sm:$0xff] }
 0x8a0   :  { %2691 = vmatmul.mubr.bf16.vlgmr.msra.gmra.mrb[36].mxu0 %v3556_v9  ;;  %v2218_v9 = vld [vmem:[#allocation8 + $0x360] sm:$0xff] }
 0x8a1   :  { %2732 = vmatmul.mubr.bf16.vlgmr.msra.gmra.mrb[40].mxu1 %v3570_v52  ;;  %2741 = vmatpush1.bf16.msra.mxu0 %v2110_v53  ;;  %v2225_v52 = vld [vmem:[#allocation8 + $0x398] sm:$0xff]  ;;  %v2188_v53 = vld [vmem:[#allocation8 + $0x270] sm:$0xff] }
 0x8a2   :  { %2782 = vmatpush1.bf16.msra.mxu1 %v2206_v16  ;;  %2742 = vmatprep.subr.bf16.mxu0 %v2117_v28  ;;  %v2284_v16 = vld [vmem:[#allocation8 + $0x570] sm:$0xff]  ;;  %v2195_v28 = vld [vmem:[#allocation8 + $0x2a8] sm:$0xff] }
 0x8a3   :  { %2783 = vmatprep.subr.bf16.mxu1 %v2213_v29  ;;  %2772 = vmatprep.mubr.bf16.mxu0 %v3717_v11  ;;  %v2291_v29 = vld [vmem:[#allocation8 + $0x5a8] sm:$0xff] }
 0x8a4   :  { %2813 = vmatprep.mubr.bf16.mxu1 %v3722_v32 }
 0x8a5   :  { %2743 = vmatpush1.bf16.msra.mxu0 %v2116_v15  ;;  %v2194_v15 = vld [vmem:[#allocation8 + $0x2a0] sm:$0xff] }
 0x8a6   :  { %2784 = vmatpush1.bf16.msra.mxu1 %v2212_v37  ;;  %2744 = vmatprep.subr.bf16.mxu0 %v2123_v12  ;;  %v2290_v37 = vld [vmem:[#allocation8 + $0x5a0] sm:$0xff]  ;;  %v2201_v12 = vld [vmem:[#allocation8 + $0x2d8] sm:$0xff] }
 0x8a7   :  { %2785 = vmatprep.subr.bf16.mxu1 %v2219_v43  ;;  %v2297_v43 = vld [vmem:[#allocation8 + $0x5d8] sm:$0xff] }
 0x8a9   :  { %2745 = vmatpush1.bf16.msra.mxu0 %v2122_v54  ;;  %v2200_v54 = vld [vmem:[#allocation8 + $0x2d0] sm:$0xff] }
 0x8aa   :  { %2786 = vmatpush1.bf16.msra.mxu1 %v2218_v9  ;;  %2746 = vmatprep.subr.bf16.mxu0 %v2129_v19  ;;  %v2296_v9 = vld [vmem:[#allocation8 + $0x5d0] sm:$0xff]  ;;  %v2113_v19 = vld [vmem:[#allocation8 + $0x18] sm:$0xff] }
 0x8ab   :  { %2787 = vmatprep.subr.bf16.mxu1 %v2225_v52  ;;  %v2209_v52 = vld [vmem:[#allocation8 + $0x318] sm:$0xff] }
 0x8ad   :  { %2747 = vmatpush1.bf16.msra.mxu0 %v2128_v40  ;;  %v3731_v40 = vpack.c.bf16 %v2097_v0, %v2097_v0  ;;  %v2214_v0 = vld [vmem:[#allocation8 + $0x340] sm:$0xff] }
 0x8ae   :  { %2788 = vmatpush1.bf16.msra.mxu1 %v2224_v42  ;;  %2748 = vmatprep.subr.bf16.mxu0 %v2135_v13  ;;  %v3736_v42 = vpack.c.bf16 %v2099_v21, %v2099_v21  ;;  %v2112_v13 = vld [vmem:[#allocation8 + $0x10] sm:$0xff]  ;;  %v2221_v21 = vld [vmem:[#allocation8 + $0x378] sm:$0xff] }
 0x8af   :  { %2789 = vmatprep.subr.bf16.mxu1 %v2231_v45  ;;  %v2208_v45 = vld [vmem:[#allocation8 + $0x310] sm:$0xff] }
 0x8b1   :  { %2749 = vmatpush1.bf16.msra.mxu0 %v2134_v46  ;;  %v2119_v46 = vld [vmem:[#allocation8 + $0x48] sm:$0xff] }
 0x8b2   :  { %2790 = vmatpush1.bf16.msra.mxu1 %v2230_v49  ;;  %2750 = vmatprep.subr.bf16.mxu0 %v2141_v51  ;;  %v2215_v49 = vld [vmem:[#allocation8 + $0x348] sm:$0xff]  ;;  %v2124_v51 = vld [vmem:[#allocation8 + $0x70] sm:$0xff] }
 0x8b3   :  { %2791 = vmatprep.subr.bf16.mxu1 %v2237_v38  ;;  %v2220_v38 = vld [vmem:[#allocation8 + $0x370] sm:$0xff] }
 0x8b5   :  { %2751 = vmatpush1.bf16.msra.mxu0 %v2140_v20  ;;  %v2131_v20 = vld [vmem:[#allocation8 + $0xa8] sm:$0xff] }
 0x8b6   :  { %2792 = vmatpush1.bf16.msra.mxu1 %v2236_v55  ;;  %2752 = vmatprep.subr.bf16.mxu0 %v2147_v57  ;;  %v2227_v55 = vld [vmem:[#allocation8 + $0x3a8] sm:$0xff]  ;;  %v2130_v57 = vld [vmem:[#allocation8 + $0xa0] sm:$0xff] }
 0x8b7   :  { %2793 = vmatprep.subr.bf16.mxu1 %v2243_v59  ;;  %v2226_v59 = vld [vmem:[#allocation8 + $0x3a0] sm:$0xff] }
 0x8b9   :  { %2753 = vmatpush1.bf16.msra.mxu0 %v2146_v60  ;;  %v2137_v60 = vld [vmem:[#allocation8 + $0xd8] sm:$0xff] }
 0x8ba   :  { %2794 = vmatpush1.bf16.msra.mxu1 %v2242_v62  ;;  %2754 = vmatprep.subr.bf16.mxu0 %v2153_v63  ;;  %v2233_v62 = vld [vmem:[#allocation8 + $0x3d8] sm:$0xff]  ;;  %v2136_v63 = vld [vmem:[#allocation8 + $0xd0] sm:$0xff] }
 0x8bb   :  { %2795 = vmatprep.subr.bf16.mxu1 %v2249_v4  ;;  %v2232_v4 = vld [vmem:[#allocation8 + $0x3d0] sm:$0xff] }
 0x8bd   :  { %2755 = vmatpush1.bf16.msra.mxu0 %v2152_v6  ;;  %v2143_v6 = vld [vmem:[#allocation8 + $0x108] sm:$0xff] }
 0x8be   :  { %2796 = vmatpush1.bf16.msra.mxu1 %v2248_v8  ;;  %2756 = vmatprep.subr.bf16.mxu0 %v2159_v61  ;;  %v2239_v8 = vld [vmem:[#allocation8 + $0x408] sm:$0xff]  ;;  %v2142_v61 = vld [vmem:[#allocation8 + $0x100] sm:$0xff] }
 0x8bf   :  { %2797 = vmatprep.subr.bf16.mxu1 %v2255_v58  ;;  %v2238_v58 = vld [vmem:[#allocation8 + $0x400] sm:$0xff] }
 0x8c1   :  { %2757 = vmatpush1.bf16.msra.mxu0 %v2158_v24 }
 0x8c2   :  { %2798 = vmatpush1.bf16.msra.mxu1 %v2254_v1  ;;  %2758 = vmatprep.subr.bf16.mxu0 %v2165_v10  ;;  %v2149_v10 = vld [vmem:[#allocation8 + $0x138] sm:$0xff] }
 0x8c3   :  { %2799 = vmatprep.subr.bf16.mxu1 %v2261_v14  ;;  %v2245_v14 = vld [vmem:[#allocation8 + $0x438] sm:$0xff] }
 0x8c5   :  { %2759 = vmatpush1.bf16.msra.mxu0 %v2164_v39 }
 0x8c6   :  { %2800 = vmatpush1.bf16.msra.mxu1 %v2260_v47  ;;  %2760 = vmatprep.subr.bf16.mxu0 %v2171_v17 }
 0x8c7   :  { %2801 = vmatprep.subr.bf16.mxu1 %v2267_v35 }
 0x8c9   :  { %2761 = vmatpush1.bf16.msra.mxu0 %v2170_v41 }
 0x8ca   :  { %2802 = vmatpush1.bf16.msra.mxu1 %v2266_v50  ;;  %2762 = vmatprep.subr.bf16.mxu0 %v2177_v56 }
 0x8cb   :  { %2803 = vmatprep.subr.bf16.mxu1 %v2273_v18 }
 0x8cd   :  { %2763 = vmatpush1.bf16.msra.mxu0 %v2176_v48  ;;  %v2148_v48 = vld [vmem:[#allocation8 + $0x130] sm:$0xff] }
 0x8ce   :  { %2804 = vmatpush1.bf16.msra.mxu1 %v2272_v22  ;;  %2764 = vmatprep.subr.bf16.mxu0 %v2183_v23  ;;  %v2244_v22 = vld [vmem:[#allocation8 + $0x430] sm:$0xff]  ;;  %v2155_v23 = vld [vmem:[#allocation8 + $0x168] sm:$0xff] }
 0x8cf   :  { %2805 = vmatprep.subr.bf16.mxu1 %v2279_v2  ;;  %v2251_v2 = vld [vmem:[#allocation8 + $0x468] sm:$0xff] }
 0x8d1   :  { %2765 = vmatpush1.bf16.msra.mxu0 %v2182_v3  ;;  %v2154_v3 = vld [vmem:[#allocation8 + $0x160] sm:$0xff] }
 0x8d2   :  { %2806 = vmatpush1.bf16.msra.mxu1 %v2278_v25  ;;  %2766 = vmatprep.subr.bf16.mxu0 %v2189_v26  ;;  %v2250_v25 = vld [vmem:[#allocation8 + $0x460] sm:$0xff]  ;;  %v2161_v26 = vld [vmem:[#allocation8 + $0x198] sm:$0xff] }
 0x8d3   :  { %2807 = vmatprep.subr.bf16.mxu1 %v2285_v27  ;;  %v2257_v27 = vld [vmem:[#allocation8 + $0x498] sm:$0xff] }
 0x8d5   :  { %2767 = vmatpush1.bf16.msra.mxu0 %v2188_v53  ;;  %v2160_v53 = vld [vmem:[#allocation8 + $0x190] sm:$0xff] }
 0x8d6   :  { %2808 = vmatpush1.bf16.msra.mxu1 %v2284_v16  ;;  %2768 = vmatprep.subr.bf16.mxu0 %v2195_v28  ;;  %v2256_v16 = vld [vmem:[#allocation8 + $0x490] sm:$0xff]  ;;  %v2167_v28 = vld [vmem:[#allocation8 + $0x1c8] sm:$0xff] }
 0x8d7   :  { %2809 = vmatprep.subr.bf16.mxu1 %v2291_v29  ;;  %v2263_v29 = vld [vmem:[#allocation8 + $0x4c8] sm:$0xff] }
 0x8d9   :  { %2769 = vmatpush1.bf16.msra.mxu0 %v2194_v15  ;;  %v2166_v15 = vld [vmem:[#allocation8 + $0x1c0] sm:$0xff] }
 0x8da   :  { %2810 = vmatpush1.bf16.msra.mxu1 %v2290_v37  ;;  %2770 = vmatprep.subr.bf16.mxu0 %v2201_v12  ;;  %v2262_v37 = vld [vmem:[#allocation8 + $0x4c0] sm:$0xff]  ;;  %v2173_v12 = vld [vmem:[#allocation8 + $0x1f8] sm:$0xff] }
 0x8db   :  { %2811 = vmatprep.subr.bf16.mxu1 %v2297_v43  ;;  %v2269_v43 = vld [vmem:[#allocation8 + $0x4f8] sm:$0xff] }
 0x8dd   :  { %2771 = vmatpush1.bf16.msra.mxu0 %v2200_v54  ;;  %v2172_v54 = vld [vmem:[#allocation8 + $0x1f0] sm:$0xff] }
 0x8de   :  { %2812 = vmatpush1.bf16.msra.mxu1 %v2296_v9  ;;  %2822 = vmatprep.subr.bf16.mxu0 %v2113_v19  ;;  %v2268_v9 = vld [vmem:[#allocation8 + $0x4f0] sm:$0xff]  ;;  %v2179_v19 = vld [vmem:[#allocation8 + $0x228] sm:$0xff] }
 0x8df   :  { %2863 = vmatprep.subr.bf16.mxu1 %v2209_v52  ;;  %v2275_v52 = vld [vmem:[#allocation8 + $0x528] sm:$0xff] }
 0x8e0   :  { %2773 = vmatmul.mubr.bf16.vlgmr.msra.gmra.mrb[40].mxu0 %v3731_v40 }
 0x8e1   :  { %2814 = vmatmul.mubr.bf16.vlgmr.msra.gmra.mrb[44].mxu1 %v3736_v42  ;;  %2823 = vmatpush1.bf16.msra.mxu0 %v2112_v13  ;;  %v2178_v13 = vld [vmem:[#allocation8 + $0x220] sm:$0xff] }
 0x8e2   :  { %2864 = vmatpush1.bf16.msra.mxu1 %v2208_v45  ;;  %2824 = vmatprep.subr.bf16.mxu0 %v2119_v46  ;;  %v2274_v45 = vld [vmem:[#allocation8 + $0x520] sm:$0xff]  ;;  %v2185_v46 = vld [vmem:[#allocation8 + $0x258] sm:$0xff] }
 0x8e3   :  { %2865 = vmatprep.subr.bf16.mxu1 %v2215_v49  ;;  %2854 = vmatprep.mubr.bf16.mxu0 %v3717_v11  ;;  %v2281_v49 = vld [vmem:[#allocation8 + $0x558] sm:$0xff] }
 0x8e4   :  { %2895 = vmatprep.mubr.bf16.mxu1 %v3722_v32 }
 0x8e5   :  { %2825 = vmatpush1.bf16.msra.mxu0 %v2118_v36  ;;  %v2184_v36 = vld [vmem:[#allocation8 + $0x250] sm:$0xff] }
 0x8e6   :  { %2866 = vmatpush1.bf16.msra.mxu1 %v2214_v0  ;;  %2826 = vmatprep.subr.bf16.mxu0 %v2125_v44  ;;  %v2280_v0 = vld [vmem:[#allocation8 + $0x550] sm:$0xff]  ;;  %v2191_v44 = vld [vmem:[#allocation8 + $0x288] sm:$0xff] }
 0x8e7   :  { %2867 = vmatprep.subr.bf16.mxu1 %v2221_v21  ;;  %v2287_v21 = vld [vmem:[#allocation8 + $0x588] sm:$0xff] }
 0x8e9   :  { %2827 = vmatpush1.bf16.msra.mxu0 %v2124_v51  ;;  %v2190_v51 = vld [vmem:[#allocation8 + $0x280] sm:$0xff] }
 0x8ea   :  { %2868 = vmatpush1.bf16.msra.mxu1 %v2220_v38  ;;  %2828 = vmatprep.subr.bf16.mxu0 %v2131_v20  ;;  %v2286_v38 = vld [vmem:[#allocation8 + $0x580] sm:$0xff]  ;;  %v2197_v20 = vld [vmem:[#allocation8 + $0x2b8] sm:$0xff] }
 0x8eb   :  { %2869 = vmatprep.subr.bf16.mxu1 %v2227_v55  ;;  %v2293_v55 = vld [vmem:[#allocation8 + $0x5b8] sm:$0xff] }
 0x8ed   :  { %2829 = vmatpush1.bf16.msra.mxu0 %v2130_v57  ;;  %v2196_v57 = vld [vmem:[#allocation8 + $0x2b0] sm:$0xff] }
 0x8ee   :  { %2870 = vmatpush1.bf16.msra.mxu1 %v2226_v59  ;;  %2830 = vmatprep.subr.bf16.mxu0 %v2137_v60  ;;  %v2292_v59 = vld [vmem:[#allocation8 + $0x5b0] sm:$0xff]  ;;  %v2203_v60 = vld [vmem:[#allocation8 + $0x2e8] sm:$0xff] }
 0x8ef   :  { %2871 = vmatprep.subr.bf16.mxu1 %v2233_v62  ;;  %v2299_v62 = vld [vmem:[#allocation8 + $0x5e8] sm:$0xff] }
 0x8f1   :  { %2831 = vmatpush1.bf16.msra.mxu0 %v2136_v63  ;;  %v2202_v63 = vld [vmem:[#allocation8 + $0x2e0] sm:$0xff] }
 0x8f2   :  { %2872 = vmatpush1.bf16.msra.mxu1 %v2232_v4  ;;  %2832 = vmatprep.subr.bf16.mxu0 %v2143_v6  ;;  %v2298_v4 = vld [vmem:[#allocation8 + $0x5e0] sm:$0xff]  ;;  %v2115_v6 = vld [vmem:[#allocation8 + $0x28] sm:$0xff] }
 0x8f3   :  { %2873 = vmatprep.subr.bf16.mxu1 %v2239_v8  ;;  %v2528_v24 = vpop.f32.mrb[28].mxu0  ;;  %v2211_v8 = vld [vmem:[#allocation8 + $0x328] sm:$0xff] }
 0x8f4   :  { %v2569_v1 = vpop.f32.mrb[32].mxu1  ;;  %v2530_v47 = vpop.f32.mrb[29].mxu0 }
 0x8f5   :  { %v3742_v39 = vadd.f32 %v2569_v1, %v2528_v24  ;;  %v2571_v17 = vpop.f32.mrb[33].mxu1  ;;  %v2532_v41 = vpop.f32.mrb[30].mxu0  ;;  %2833 = vmatpush1.bf16.msra.mxu0 %v2142_v61  ;;  %v2114_v61 = vld [vmem:[#allocation8 + $0x20] sm:$0xff]  ;;  %v2121_v24 = vld [vmem:[#allocation8 + $0x58] sm:$0xff] }
 0x8f6   :  { %v3744_v35 = vadd.f32 %v2571_v17, %v2530_v47  ;;  %v2573_v50 = vpop.f32.mrb[34].mxu1  ;;  %2874 = vmatpush1.bf16.msra.mxu1 %v2238_v58  ;;  %v2533_v56 = vpop.f32.mrb[31].mxu0  ;;  %2834 = vmatprep.subr.bf16.mxu0 %v2149_v10  ;;  %v2210_v58 = vld [vmem:[#allocation8 + $0x320] sm:$0xff]  ;;  %v2217_v1 = vld [vmem:[#allocation8 + $0x358] sm:$0xff]  ;;  %v2120_v10 = vld [vmem:[#allocation8 + $0x50] sm:$0xff] }
 0x8f7   :  { %v2574_v18 = vpop.f32.mrb[35].mxu1  ;;  %2875 = vmatprep.subr.bf16.mxu1 %v2245_v14  ;;  %v2216_v14 = vld [vmem:[#allocation8 + $0x350] sm:$0xff]  ;;  %v2127_v47 = vld [vmem:[#allocation8 + $0x88] sm:$0xff]  ;;  %v2126_v41 = vld [vmem:[#allocation8 + $0x80] sm:$0xff] }
 0x8f8   :  { %v2223_v17 = vld [vmem:[#allocation8 + $0x388] sm:$0xff]  ;;  %v2222_v50 = vld [vmem:[#allocation8 + $0x380] sm:$0xff]  ;;  %v2133_v56 = vld [vmem:[#allocation8 + $0xb8] sm:$0xff] }
 0x8f9   :  { %2835 = vmatpush1.bf16.msra.mxu0 %v2148_v48  ;;  %v2229_v18 = vld [vmem:[#allocation8 + $0x3b8] sm:$0xff]  ;;  %v2132_v48 = vld [vmem:[#allocation8 + $0xb0] sm:$0xff] }
 0x8fa   :  { %2876 = vmatpush1.bf16.msra.mxu1 %v2244_v22  ;;  %2836 = vmatprep.subr.bf16.mxu0 %v2155_v23  ;;  %v2228_v22 = vld [vmem:[#allocation8 + $0x3b0] sm:$0xff]  ;;  %v2139_v23 = vld [vmem:[#allocation8 + $0xe8] sm:$0xff] }
 0x8fb   :  { %2877 = vmatprep.subr.bf16.mxu1 %v2251_v2  ;;  %v2235_v2 = vld [vmem:[#allocation8 + $0x3e8] sm:$0xff] }
 0x8fd   :  { %2837 = vmatpush1.bf16.msra.mxu0 %v2154_v3  ;;  %v2145_v3 = vld [vmem:[#allocation8 + $0x118] sm:$0xff] }
 0x8fe   :  { %2878 = vmatpush1.bf16.msra.mxu1 %v2250_v25  ;;  %2838 = vmatprep.subr.bf16.mxu0 %v2161_v26  ;;  %v2241_v25 = vld [vmem:[#allocation8 + $0x418] sm:$0xff]  ;;  %v2144_v26 = vld [vmem:[#allocation8 + $0x110] sm:$0xff] }
 0x8ff   :  { %2879 = vmatprep.subr.bf16.mxu1 %v2257_v27  ;;  %v2240_v27 = vld [vmem:[#allocation8 + $0x410] sm:$0xff] }
 0x901   :  { %2839 = vmatpush1.bf16.msra.mxu0 %v2160_v53 }
 0x902   :  { %2880 = vmatpush1.bf16.msra.mxu1 %v2256_v16  ;;  %2840 = vmatprep.subr.bf16.mxu0 %v2167_v28  ;;  %v2151_v28 = vld [vmem:[#allocation8 + $0x148] sm:$0xff] }
 0x903   :  { %2881 = vmatprep.subr.bf16.mxu1 %v2263_v29  ;;  %v2247_v29 = vld [vmem:[#allocation8 + $0x448] sm:$0xff] }
 0x905   :  { %2841 = vmatpush1.bf16.msra.mxu0 %v2166_v15 }
 0x906   :  { %2882 = vmatpush1.bf16.msra.mxu1 %v2262_v37  ;;  %2842 = vmatprep.subr.bf16.mxu0 %v2173_v12 }
 0x907   :  { %2883 = vmatprep.subr.bf16.mxu1 %v2269_v43 }
 0x909   :  { %2843 = vmatpush1.bf16.msra.mxu0 %v2172_v54 }
 0x90a   :  { %2884 = vmatpush1.bf16.msra.mxu1 %v2268_v9  ;;  %2844 = vmatprep.subr.bf16.mxu0 %v2179_v19 }
 0x90b   :  { %2885 = vmatprep.subr.bf16.mxu1 %v2275_v52 }
 0x90d   :  { %2845 = vmatpush1.bf16.msra.mxu0 %v2178_v13  ;;  %v2150_v13 = vld [vmem:[#allocation8 + $0x140] sm:$0xff] }
 0x90e   :  { %2886 = vmatpush1.bf16.msra.mxu1 %v2274_v45  ;;  %2846 = vmatprep.subr.bf16.mxu0 %v2185_v46  ;;  %v2246_v45 = vld [vmem:[#allocation8 + $0x440] sm:$0xff]  ;;  %v2157_v46 = vld [vmem:[#allocation8 + $0x178] sm:$0xff] }
 0x90f   :  { %2887 = vmatprep.subr.bf16.mxu1 %v2281_v49  ;;  %v2253_v49 = vld [vmem:[#allocation8 + $0x478] sm:$0xff] }
 0x911   :  { %2847 = vmatpush1.bf16.msra.mxu0 %v2184_v36  ;;  %v2156_v36 = vld [vmem:[#allocation8 + $0x170] sm:$0xff] }
 0x912   :  { %2888 = vmatpush1.bf16.msra.mxu1 %v2280_v0  ;;  %2848 = vmatprep.subr.bf16.mxu0 %v2191_v44  ;;  %v2252_v0 = vld [vmem:[#allocation8 + $0x470] sm:$0xff]  ;;  %v2163_v44 = vld [vmem:[#allocation8 + $0x1a8] sm:$0xff] }
 0x913   :  { %2889 = vmatprep.subr.bf16.mxu1 %v2287_v21  ;;  %v2259_v21 = vld [vmem:[#allocation8 + $0x4a8] sm:$0xff] }
 0x915   :  { %2849 = vmatpush1.bf16.msra.mxu0 %v2190_v51  ;;  %v2162_v51 = vld [vmem:[#allocation8 + $0x1a0] sm:$0xff] }
 0x916   :  { %2890 = vmatpush1.bf16.msra.mxu1 %v2286_v38  ;;  %2850 = vmatprep.subr.bf16.mxu0 %v2197_v20  ;;  %v2258_v38 = vld [vmem:[#allocation8 + $0x4a0] sm:$0xff]  ;;  %v2169_v20 = vld [vmem:[#allocation8 + $0x1d8] sm:$0xff] }
 0x917   :  { %2891 = vmatprep.subr.bf16.mxu1 %v2293_v55  ;;  %v2265_v55 = vld [vmem:[#allocation8 + $0x4d8] sm:$0xff] }
 0x919   :  { %2851 = vmatpush1.bf16.msra.mxu0 %v2196_v57  ;;  %v2168_v57 = vld [vmem:[#allocation8 + $0x1d0] sm:$0xff] }
 0x91a   :  { %2892 = vmatpush1.bf16.msra.mxu1 %v2292_v59  ;;  %2852 = vmatprep.subr.bf16.mxu0 %v2203_v60  ;;  %v2264_v59 = vld [vmem:[#allocation8 + $0x4d0] sm:$0xff]  ;;  %v2175_v60 = vld [vmem:[#allocation8 + $0x208] sm:$0xff] }
 0x91b   :  { %2893 = vmatprep.subr.bf16.mxu1 %v2299_v62  ;;  %v2271_v62 = vld [vmem:[#allocation8 + $0x508] sm:$0xff] }
 0x91d   :  { %2853 = vmatpush1.bf16.msra.mxu0 %v2202_v63  ;;  %v2174_v63 = vld [vmem:[#allocation8 + $0x200] sm:$0xff] }
 0x91e   :  { %2894 = vmatpush1.bf16.msra.mxu1 %v2298_v4  ;;  %2904 = vmatprep.subr.bf16.mxu0 %v2115_v6  ;;  %v2270_v4 = vld [vmem:[#allocation8 + $0x500] sm:$0xff]  ;;  %v2181_v6 = vld [vmem:[#allocation8 + $0x238] sm:$0xff] }
 0x91f   :  { %2945 = vmatprep.subr.bf16.mxu1 %v2211_v8  ;;  %v2277_v8 = vld [vmem:[#allocation8 + $0x538] sm:$0xff] }
 0x920   :  { %2855 = vmatmul.mubr.bf16.vlgmr.msra.gmra.mrb[44].mxu0 %v3731_v40 }
 0x921   :  { %2896 = vmatmul.mubr.bf16.vlgmr.msra.gmra.mrb[48].mxu1 %v3736_v42  ;;  %2905 = vmatpush1.bf16.msra.mxu0 %v2114_v61  ;;  %v2180_v61 = vld [vmem:[#allocation8 + $0x230] sm:$0xff] }
 0x922   :  { %2946 = vmatpush1.bf16.msra.mxu1 %v2210_v58  ;;  %2906 = vmatprep.subr.bf16.mxu0 %v2121_v24  ;;  %v2276_v58 = vld [vmem:[#allocation8 + $0x530] sm:$0xff]  ;;  %v2187_v24 = vld [vmem:[#allocation8 + $0x268] sm:$0xff] }
 0x923   :  { %2947 = vmatprep.subr.bf16.mxu1 %v2217_v1  ;;  %2936 = vmatprep.mubr.bf16.mxu0 %v3717_v11  ;;  %v2138_v11 = vld [vmem:[#allocation8 + $0xe0] sm:$0xff]  ;;  %v2283_v1 = vld [vmem:[#allocation8 + $0x568] sm:$0xff] }
 0x924   :  { %2977 = vmatprep.mubr.bf16.mxu1 %v3722_v32  ;;  %v2234_v32 = vld [vmem:[#allocation8 + $0x3e0] sm:$0xff] }
 0x925   :  { %2907 = vmatpush1.bf16.msra.mxu0 %v2120_v10  ;;  %v2186_v10 = vld [vmem:[#allocation8 + $0x260] sm:$0xff] }
 0x926   :  { %2948 = vmatpush1.bf16.msra.mxu1 %v2216_v14  ;;  %2908 = vmatprep.subr.bf16.mxu0 %v2127_v47  ;;  %v2282_v14 = vld [vmem:[#allocation8 + $0x560] sm:$0xff]  ;;  %v2193_v47 = vld [vmem:[#allocation8 + $0x298] sm:$0xff] }
 0x927   :  { %2949 = vmatprep.subr.bf16.mxu1 %v2223_v17  ;;  %v2289_v17 = vld [vmem:[#allocation8 + $0x598] sm:$0xff] }
 0x929   :  { %2909 = vmatpush1.bf16.msra.mxu0 %v2126_v41  ;;  %v2192_v41 = vld [vmem:[#allocation8 + $0x290] sm:$0xff] }
 0x92a   :  { %2950 = vmatpush1.bf16.msra.mxu1 %v2222_v50  ;;  %2910 = vmatprep.subr.bf16.mxu0 %v2133_v56  ;;  %v2288_v50 = vld [vmem:[#allocation8 + $0x590] sm:$0xff]  ;;  %v2199_v56 = vld [vmem:[#allocation8 + $0x2c8] sm:$0xff] }
 0x92b   :  { %2951 = vmatprep.subr.bf16.mxu1 %v2229_v18  ;;  %v2295_v18 = vld [vmem:[#allocation8 + $0x5c8] sm:$0xff] }
 0x92d   :  { %2911 = vmatpush1.bf16.msra.mxu0 %v2132_v48  ;;  %v2198_v48 = vld [vmem:[#allocation8 + $0x2c0] sm:$0xff] }
 0x92e   :  { %2952 = vmatpush1.bf16.msra.mxu1 %v2228_v22  ;;  %2912 = vmatprep.subr.bf16.mxu0 %v2139_v23  ;;  %v2294_v22 = vld [vmem:[#allocation8 + $0x5c0] sm:$0xff]  ;;  %v2205_v23 = vld [vmem:[#allocation8 + $0x2f8] sm:$0xff] }
 0x92f   :  { %2953 = vmatprep.subr.bf16.mxu1 %v2235_v2  ;;  %v2301_v2 = vld [vmem:[#allocation8 + $0x5f8] sm:$0xff] }
 0x931   :  { %2913 = vmatpush1.bf16.msra.mxu0 %v2138_v11  ;;  %v2204_v11 = vld [vmem:[#allocation8 + $0x2f0] sm:$0xff] }
 0x932   :  { %2954 = vmatpush1.bf16.msra.mxu1 %v2234_v32  ;;  %2914 = vmatprep.subr.bf16.mxu0 %v2145_v3  ;;  %v2300_v32 = vld [vmem:[#allocation8 + $0x5f0] sm:$0xff] }
 0x933   :  { %2955 = vmatprep.subr.bf16.mxu1 %v2241_v25  ;;  %v2610_v53 = vpop.f32.mrb[32].mxu0 }
 0x934   :  { %v2651_v16 = vpop.f32.mrb[36].mxu1  ;;  %v2612_v37 = vpop.f32.mrb[33].mxu0 }
 0x935   :  { %v3750_v15 = vadd.f32 %v2651_v16, %v2610_v53  ;;  %v2653_v12 = vpop.f32.mrb[37].mxu1  ;;  %v2614_v54 = vpop.f32.mrb[34].mxu0  ;;  %2915 = vmatpush1.bf16.msra.mxu0 %v2144_v26 }
 0x936   :  { %v3752_v43 = vadd.f32 %v2653_v12, %v2612_v37  ;;  %v2655_v9 = vpop.f32.mrb[38].mxu1  ;;  %2956 = vmatpush1.bf16.msra.mxu1 %v2240_v27  ;;  %v2615_v19 = vpop.f32.mrb[35].mxu0  ;;  %2916 = vmatprep.subr.bf16.mxu0 %v2151_v28  ;;  %v3763_v54 = vld [vmem:[%s3792_s1 + $0x12] sm:$0x3f] }
 0x937   :  { %v2656_v52 = vpop.f32.mrb[39].mxu1  ;;  %2957 = vmatprep.subr.bf16.mxu1 %v2247_v29  ;;  %v2991_v19 = vrot.slane %v3763_v54, %v3522_v30 }
 0x939   :  { %2917 = vmatpush1.bf16.msra.mxu0 %v2150_v13 }
 0x93a   :  { %2958 = vmatpush1.bf16.msra.mxu1 %v2246_v45  ;;  %2918 = vmatprep.subr.bf16.mxu0 %v2157_v46  ;;  %v2995_v46 = vrot.slane %v3763_v54, %v3531_v33 }
 0x93b   :  { %2959 = vmatprep.subr.bf16.mxu1 %v2253_v49 }
 0x93d   :  { %2919 = vmatpush1.bf16.msra.mxu0 %v2156_v36 }
 0x93e   :  { %2960 = vmatpush1.bf16.msra.mxu1 %v2252_v0  ;;  %2920 = vmatprep.subr.bf16.mxu0 %v2163_v44 }
 0x93f   :  { %2961 = vmatprep.subr.bf16.mxu1 %v2259_v21 }
 0x941   :  { %2921 = vmatpush1.bf16.msra.mxu0 %v2162_v51 }
 0x942   :  { %2962 = vmatpush1.bf16.msra.mxu1 %v2258_v38  ;;  %2922 = vmatprep.subr.bf16.mxu0 %v2169_v20 }
 0x943   :  { %2963 = vmatprep.subr.bf16.mxu1 %v2265_v55 }
 0x945   :  { %2923 = vmatpush1.bf16.msra.mxu0 %v2168_v57 }
 0x946   :  { %2964 = vmatpush1.bf16.msra.mxu1 %v2264_v59  ;;  %2924 = vmatprep.subr.bf16.mxu0 %v2175_v60 }
 0x947   :  { %2965 = vmatprep.subr.bf16.mxu1 %v2271_v62 }
 0x949   :  { %2925 = vmatpush1.bf16.msra.mxu0 %v2174_v63 }
 0x94a   :  { %2966 = vmatpush1.bf16.msra.mxu1 %v2270_v4  ;;  %2926 = vmatprep.subr.bf16.mxu0 %v2181_v6 }
 0x94b   :  { %2967 = vmatprep.subr.bf16.mxu1 %v2277_v8  ;;  %v2999_v8 = vrot.slane %v3763_v54, %v3525_v31 }
 0x94d   :  { %2927 = vmatpush1.bf16.msra.mxu0 %v2180_v61 }
 0x94e   :  { %2968 = vmatpush1.bf16.msra.mxu1 %v2276_v58  ;;  %2928 = vmatprep.subr.bf16.mxu0 %v2187_v24 }
 0x94f   :  { %2969 = vmatprep.subr.bf16.mxu1 %v2283_v1  ;;  %v3003_v1 = vrot.slane %v3763_v54, %v3534_v34 }
 0x951   :  { %2929 = vmatpush1.bf16.msra.mxu0 %v2186_v10 }
 0x952   :  { %2970 = vmatpush1.bf16.msra.mxu1 %v2282_v14  ;;  %2930 = vmatprep.subr.bf16.mxu0 %v2193_v47 }
 0x953   :  { %2971 = vmatprep.subr.bf16.mxu1 %v2289_v17 }
 0x955   :  { %2931 = vmatpush1.bf16.msra.mxu0 %v2192_v41 }
 0x956   :  { %2972 = vmatpush1.bf16.msra.mxu1 %v2288_v50  ;;  %2932 = vmatprep.subr.bf16.mxu0 %v2199_v56 }
 0x957   :  { %2973 = vmatprep.subr.bf16.mxu1 %v2295_v18 }
 0x959   :  { %2933 = vmatpush1.bf16.msra.mxu0 %v2198_v48 }
 0x95a   :  { %2974 = vmatpush1.bf16.msra.mxu1 %v2294_v22  ;;  %2934 = vmatprep.subr.bf16.mxu0 %v2205_v23 }
 0x95b   :  { %2975 = vmatprep.subr.bf16.mxu1 %v2301_v2 }
 0x95d   :  { %2935 = vmatpush1.bf16.msra.mxu0 %v2204_v11 }
 0x95e   :  { %2976 = vmatpush1.bf16.msra.mxu1 %v2300_v32 }
 0x960   :  { %2937 = vmatmul.mubr.bf16.vlgmr.msra.gmra.mrb[48].mxu0 %v3731_v40 }
 0x961   :  { %2978 = vmatmul.mubr.bf16.vlgmr.msra.gmra.mrb[52].mxu1 %v3736_v42 }
 0x973   :  { %v2692_v3 = vpop.f32.mrb[36].mxu0 }
 0x974   :  { %v2733_v25 = vpop.f32.mrb[40].mxu1  ;;  %v2694_v27 = vpop.f32.mrb[37].mxu0 }
 0x975   :  { %v3756_v26 = vadd.f32 %v2733_v25, %v2692_v3  ;;  %v2735_v53 = vpop.f32.mrb[41].mxu1  ;;  %v2696_v28 = vpop.f32.mrb[38].mxu0 }
 0x976   :  { %v3758_v16 = vadd.f32 %v2735_v53, %v2694_v27  ;;  %v2737_v29 = vpop.f32.mrb[42].mxu1  ;;  %v2697_v37 = vpop.f32.mrb[39].mxu0  ;;  %v3006_v27 = vsub.s32 4, %v3495_v5  ;;  %v3010_v53 = vsub.s32 5, %v3495_v5 }
 0x977   :  { %v2738_v12 = vpop.f32.mrb[43].mxu1 }
 0x978   :  { %v3007_v12 = vrot.slane %v3763_v54, %v3006_v27 }
 0x9b3   :  { %v2774_v40 = vpop.f32.mrb[40].mxu0 }
 0x9b4   :  { %v2815_v9 = vpop.f32.mrb[44].mxu1  ;;  %v2775_v42 = vadd.f32 %v2774_v40, %v3742_v39  ;;  %v2776_v52 = vpop.f32.mrb[41].mxu0 }
 0x9b5   :  { %v2817_v13 = vpop.f32.mrb[45].mxu1  ;;  %v2777_v45 = vadd.f32 %v2776_v52, %v3744_v35  ;;  %v2778_v49 = vpop.f32.mrb[42].mxu0 }
 0x9b6   :  { %v2819_v36 = vpop.f32.mrb[46].mxu1  ;;  %v2816_v0 = vadd.f32 %v2815_v9, %v2775_v42  ;;  %v2779_v44 = vpop.f32.mrb[43].mxu0 }
 0x9b7   :  { %v2820_v21 = vpop.f32.mrb[47].mxu1  ;;  %v2818_v51 = vadd.f32 %v2817_v13, %v2777_v45 }
 0x9b8   :  { %v3018_v38 = vadd.f32 %v2991_v19, %v2816_v0 }
 0x9b9   :  { %v3019_v20 = vadd.f32 %v2995_v46, %v2818_v51 }
 0x9ba   :  { %v3171_v55 = vmul.f32 -1.442695, %v3018_v38 }
 0x9bb   :  { %v3172_v39 = vmul.f32 -1.442695, %v3019_v20 }
 0x9bc   :  { %3258 = vpow2.f32 %v3171_v55 }
 0x9bd   :  { %3260 = vpow2.f32 %v3172_v39 }
 0x9c6   :  { %v3259_v30 = vpop.eup %3258 }
 0x9c7   :  { %v3261_v57 = vpop.eup %3260  ;;  %v3042_v59 = vadd.f32 1.0, %v3259_v30 }
 0x9c8   :  { %v3043_v60 = vadd.f32 1.0, %v3261_v57 }
 0x9c9   :  { %3262 = vrcp.f32 %v3042_v59 }
 0x9ca   :  { %3264 = vrcp.f32 %v3043_v60 }
 0x9d3   :  { %v3263_v35 = vpop.eup %3262 }
 0x9d4   :  { %v3265_v33 = vpop.eup %3264 }
 0x9d5   :  { %v3066_v62 = vcombine.low %v3263_v35, %v3265_v33 }
 0x9d7   :  { %v3074_v32 = vrot.slane %v3066_v62, %v3498_v7 }
 0x9f3   :  { %v2856_v63 = vpop.f32.mrb[44].mxu0 }
 0x9f4   :  { %v2897_v4 = vpop.f32.mrb[48].mxu1  ;;  %v2857_v6 = vadd.f32 %v2856_v63, %v3750_v15  ;;  %v2858_v61 = vpop.f32.mrb[45].mxu0 }
 0x9f5   :  { %v2899_v58 = vpop.f32.mrb[49].mxu1  ;;  %v2859_v24 = vadd.f32 %v2858_v61, %v3752_v43  ;;  %v2860_v10 = vpop.f32.mrb[46].mxu0 }
 0x9f6   :  { %v2901_v14 = vpop.f32.mrb[50].mxu1  ;;  %v2898_v47 = vadd.f32 %v2897_v4, %v2857_v6  ;;  %v2861_v17 = vpop.f32.mrb[47].mxu0 }
 0x9f7   :  { %v2902_v41 = vpop.f32.mrb[51].mxu1  ;;  %v2900_v50 = vadd.f32 %v2899_v58, %v2859_v24 }
 0x9f8   :  { %v3020_v56 = vadd.f32 %v2999_v8, %v2898_v47 }
 0x9f9   :  { %v3021_v18 = vadd.f32 %v3003_v1, %v2900_v50 }
 0x9fa   :  { %v3173_v48 = vmul.f32 -1.442695, %v3020_v56 }
 0x9fb   :  { %v3174_v15 = vmul.f32 -1.442695, %v3021_v18 }
 0x9fc   :  { %3266 = vpow2.f32 %v3173_v48 }
 0x9fd   :  { %3268 = vpow2.f32 %v3174_v15 }
 0xa06   :  { %v3267_v31 = vpop.eup %3266 }
 0xa07   :  { %v3269_v22 = vpop.eup %3268  ;;  %v3044_v23 = vadd.f32 1.0, %v3267_v31 }
 0xa08   :  { %v3045_v2 = vadd.f32 1.0, %v3269_v22 }
 0xa09   :  { %3270 = vrcp.f32 %v3044_v23 }
 0xa0a   :  { %3272 = vrcp.f32 %v3045_v2 }
 0xa13   :  { %v3271_v43 = vpop.eup %3270 }
 0xa14   :  { %v3273_v34 = vpop.eup %3272 }
 0xa15   :  { %v3067_v11 = vcombine.low %v3271_v43, %v3273_v34 }
 0xa17   :  { %v3081_v3 = vrot.slane %v3067_v11, %v3498_v7  ;;  %v3011_v7 = vrot.slane %v3763_v54, %v3010_v53 }
 0xa19   :  { %v3082_v25 = vcombine.low %v3074_v32, %v3081_v3 }
 0xa1b   :  { %3093 = vst [vmem:[%s3801_s10] sm:$0xff] %v3082_v25 }
 0xa33   :  { %v2938_v28 = vpop.f32.mrb[48].mxu0 }
 0xa34   :  { %v2979_v29 = vpop.f32.mrb[52].mxu1  ;;  %v2939_v37 = vadd.f32 %v2938_v28, %v3756_v26  ;;  %v2940_v40 = vpop.f32.mrb[49].mxu0 }
 0xa35   :  { %v2981_v9 = vpop.f32.mrb[53].mxu1  ;;  %v2941_v42 = vadd.f32 %v2940_v40, %v3758_v16  ;;  %v2942_v19 = vpop.f32.mrb[50].mxu0 }
 0xa36   :  { %v2983_v52 = vpop.f32.mrb[54].mxu1  ;;  %v2980_v13 = vadd.f32 %v2979_v29, %v2939_v37  ;;  %v2943_v45 = vpop.f32.mrb[51].mxu0 }
 0xa37   :  { %v2984_v46 = vpop.f32.mrb[55].mxu1  ;;  %v2982_v49 = vadd.f32 %v2981_v9, %v2941_v42 }
 0xa38   :  { %v3022_v36 = vadd.f32 %v3007_v12, %v2980_v13 }
 0xa39   :  { %v3023_v5 = vadd.f32 %v3011_v7, %v2982_v49 }
 0xa3a   :  { %v3175_v0 = vmul.f32 -1.442695, %v3022_v36 }
 0xa3b   :  { %v3176_v44 = vmul.f32 -1.442695, %v3023_v5 }
 0xa3c   :  { %3274 = vpow2.f32 %v3175_v0 }
 0xa3d   :  { %3276 = vpow2.f32 %v3176_v44 }
 0xa46   :  { %v3275_v26 = vpop.eup %3274 }
 0xa47   :  { %v3277_v21 = vpop.eup %3276  ;;  %v3046_v51 = vadd.f32 1.0, %v3275_v26 }
 0xa48   :  { %v3047_v38 = vadd.f32 1.0, %v3277_v21 }
 0xa49   :  { %3278 = vrcp.f32 %v3046_v51 }
 0xa4a   :  { %3280 = vrcp.f32 %v3047_v38 }
 0xa53   :  { %v3279_v16 = vpop.eup %3278 }
 0xa54   :  { %v3281_v54 = vpop.eup %3280 }
 0xa55   :  { %v3083_v20 = vcombine.low %v3279_v16, %v3281_v54 }
 0xa57   :  { %3177 = vst.sshfl [vmem:[%s3801_s10 + $0x8] sm:$0x33 pattern:$0x76325410] %v3083_v20 }
 0xa58   :  { %3099 = vsyncmov [#allocation10] }
 0xa5b   :  { %s3100_s7 = vpop.sfrf %3099 }
 0xa5c   :  { %p3178_p0 = scmp.ne.s32.totalorder %s3100_s7, 0 }
 0xa5e   :  { %3104 = shalt.err (%p3178_p0)  }
 0xa5f   :  { %3106 = vsyncmov [#allocation10 + $0x1] }
 0xa62   :  { %s3107_s27 = vpop.sfrf %3106 }
 0xa63   :  { %p3179_p1 = scmp.ne.s32.totalorder %s3107_s27, 0 }
 0xa65   :  { %3111 = shalt.err (%p3179_p1)  }
 0xa66   :  { %3113 = vsyncmov [#allocation10 + $0x2] }
 0xa69   :  { %s3114_s28 = vpop.sfrf %3113 }
 0xa6a   :  { %p3180_p2 = scmp.ne.s32.totalorder %s3114_s28, 0 }
 0xa6c   :  { %3118 = shalt.err (%p3180_p2)  }
 0xa6d   :  { %3120 = vsyncmov [#allocation10 + $0x3] }
 0xa70   :  { %s3121_s29 = vpop.sfrf %3120 }
 0xa71   :  { %p3181_p3 = scmp.ne.s32.totalorder %s3121_s29, 0 }
 0xa73   :  { %3125 = shalt.err (%p3181_p3)  }
 0xa74   :  { %3127 = vsyncmov [#allocation10 + $0x4] }
 0xa77   :  { %s3128_s2 = vpop.sfrf %3127 }
 0xa78   :  { %p3182_p4 = scmp.ne.s32.totalorder %s3128_s2, 0 }
 0xa7a   :  { %3132 = shalt.err (%p3182_p4)  }
 0xa7b   :  { %3134 = vsyncmov [#allocation10 + $0x5] }
 0xa7e   :  { %s3135_s10 = vpop.sfrf %3134 }
 0xa7f   :  { %p3183_p5 = scmp.ne.s32.totalorder %s3135_s10, 0 }
 0xa81   :  { %3139 = shalt.err (%p3183_p5)  }
 0xa82   :  { %3141 = vsyncmov [#allocation10 + $0x6] }
 0xa85   :  { %s3142_s30 = vpop.sfrf %3141 }
 0xa86   :  { %p3184_p6 = scmp.ne.s32.totalorder %s3142_s30, 0 }
 0xa88   :  { %3146 = shalt.err (%p3184_p6)  }
 0xa89   :  { %3148 = vsyncmov [#allocation10 + $0x7] }
 0xa8c   :  { %s3149_s5 = vpop.sfrf %3148 }
 0xa8d   :  { %p3185_p7 = scmp.ne.s32.totalorder %s3149_s5, 0 }
 0xa8f   :  { %3153 = shalt.err (%p3185_p7)  }

</bundles_post_ra>
